<compile_context>
chip_gen: v7x
topology: tpu7x:2x2x1
jax: 0.10.0
libtpu: 0.0.40
codegen_flags: <defaults>
</compile_context>

<pallas_src>
from math import sqrt

import jax
import jax.numpy as jnp
from jax.experimental import pallas as pl
from jax.experimental.pallas import tpu as pltpu


def _round_up(x, m):
    return ((x + m - 1) // m) * m


# -----------------------------------------------------------------------------
# The single fused kernel: encoder GRU -> decoder GRU -> Linear head.
# All refs are full arrays resident in VMEM (no grid).
# -----------------------------------------------------------------------------
def _seq2seq_kernel(src_ref, trg_ref,
                    wih_e_ref, whh_e_ref, gib_e_ref, bhn_e_ref,
                    wih_d_ref, whh_d_ref, gib_d_ref, bhn_d_ref,
                    wfc_ref, bfc_ref,
                    out_ref):
    B, T_src, _ = src_ref.shape
    T_trg = trg_ref.shape[1]
    Hp = whh_e_ref.shape[0]          # lane-padded hidden size (multiple of 128)
    O = out_ref.shape[2]             # true (unpadded) output feature count

    # Load every loop-invariant operand exactly once before the loops.
    # (JAX does not CSE broadcast_in_dim; re-reading the (1, Hp)/(1, 3Hp)
    # biases in each unrolled step would add vld + VPU filler to the serial
    # chain.)
    wih_e, gib_e = wih_e_ref[...], gib_e_ref[...]
    whh_e, bhn_e = whh_e_ref[...], bhn_e_ref[...]
    wih_d, gib_d = wih_d_ref[...], gib_d_ref[...]
    whh_d, bhn_d = whh_d_ref[...], bhn_d_ref[...]
    wfc, bfc = wfc_ref[...], bfc_ref[...]

    def cell(x_t, h, wih, gib, whh, bhn):
        # Input projection is tiny (K = input_dim, ~3% of the recurrent matmul)
        # so it is fused per step instead of staged through scratch; b_ih+b_hh
        # for the r/z gates are pre-folded into gib, b_hn is applied inside the
        # r*(.) term as PyTorch requires.
        gi = jnp.dot(x_t, wih, preferred_element_type=jnp.float32) + gib
        # TODO(synk): if the bundle dump shows Mosaic re-pushing the
        # loop-invariant W_hh into the MXU on every unrolled step, drive the
        # MXU explicitly (pltpu.matmul_push_rhs once per phase, then
        # matmul_acc_lhs / matmul_pop per timestep streaming the tiny LHS).
        gh = jnp.dot(h, whh, preferred_element_type=jnp.float32)
        # Gate slices are lane-aligned because Hp % 128 == 0.
        r = jax.nn.sigmoid(gi[:, 0:Hp] + gh[:, 0:Hp])
        z = jax.nn.sigmoid(gi[:, Hp:2 * Hp] + gh[:, Hp:2 * Hp])
        n = jnp.tanh(gi[:, 2 * Hp:3 * Hp] + r * (gh[:, 2 * Hp:3 * Hp] + bhn))
        return n + z * (h - n)          # == (1 - z) * n + z * h

    # ---- encoder: zero initial hidden state, keep only the final h ----------
    h = jnp.zeros((B, Hp), jnp.float32)
    for t in range(T_src):              # static unroll (tiny, fixed T)
        h = cell(src_ref[:, t, :], h, wih_e, gib_e, whh_e, bhn_e)

    # ---- decoder + fused Linear head, written batch-first -------------------
    for t in range(T_trg):
        h = cell(trg_ref[:, t, :], h, wih_d, gib_d, whh_d, bhn_d)
        y = jnp.dot(h, wfc, preferred_element_type=jnp.float32) + bfc  # (B, Op)
        out_ref[:, t, :] = y[:, :O]


def _seq2seq_pallas(src, trg, p):
    B, T_trg, _ = trg.shape
    O = p["o_dim"].shape[0]             # true output dim carried as a shape
    vmem = pl.BlockSpec(memory_space=pltpu.MemorySpace.VMEM)
    return pl.pallas_call(
        _seq2seq_kernel,
        out_shape=jax.ShapeDtypeStruct((B, T_trg, O), jnp.float32),
        in_specs=[vmem] * 12,
        out_specs=vmem,
    )(src, trg,
      p["wih_e"], p["whh_e"], p["gib_e"], p["bhn_e"],
      p["wih_d"], p["whh_d"], p["gib_d"], p["bhn_d"],
      p["wfc"], p["bfc"])


# -----------------------------------------------------------------------------
# One-time weight preparation (NOT in the jitted hot path): gate-wise
# transpose, zero-pad hidden (and fc output) to lane multiples, fold biases
# (b_ih + b_hh for r/z; b_hn kept separate for the n gate).
# -----------------------------------------------------------------------------
def _prep_gru(w_ih, w_hh, b_ih, b_hh, Hp):
    H = w_hh.shape[1]
    ph = Hp - H
    wih_t = jnp.concatenate(
        [jnp.pad(w_ih[g * H:(g + 1) * H, :].T, ((0, 0), (0, ph)))
         for g in range(3)], axis=1)                              # (I, 3Hp)
    whh_t = jnp.concatenate(
        [jnp.pad(w_hh[g * H:(g + 1) * H, :].T, ((0, ph), (0, ph)))
         for g in range(3)], axis=1)                              # (Hp, 3Hp)
    b_r = b_ih[0:H] + b_hh[0:H]
    b_z = b_ih[H:2 * H] + b_hh[H:2 * H]
    b_n = b_ih[2 * H:3 * H]
    gib = jnp.concatenate(
        [jnp.pad(b, (0, ph)) for b in (b_r, b_z, b_n)]).reshape(1, 3 * Hp)
    bhn = jnp.pad(b_hh[2 * H:3 * H], (0, ph)).reshape(1, Hp)
    return wih_t, whh_t, gib, bhn


def prepare_params(params, lane=128):
    """Call once at parameter-load time; returns kernel-ready tensors."""
    H = params["enc_w_hh"].shape[1]
    O = params["fc_w"].shape[0]
    Hp = _round_up(H, lane)
    Op = _round_up(O, lane)

    wih_e, whh_e, gib_e, bhn_e = _prep_gru(
        params["enc_w_ih"], params["enc_w_hh"],
        params["enc_b_ih"], params["enc_b_hh"], Hp)
    wih_d, whh_d, gib_d, bhn_d = _prep_gru(
        params["dec_w_ih"], params["dec_w_hh"],
        params["dec_b_ih"], params["dec_b_hh"], Hp)
    wfc = jnp.pad(params["fc_w"].T, ((0, Hp - H), (0, Op - O)))   # (Hp, Op)
    bfc = jnp.pad(params["fc_b"], (0, Op - O)).reshape(1, Op)     # (1, Op)

    prepped = {
        "wih_e": wih_e, "whh_e": whh_e, "gib_e": gib_e, "bhn_e": bhn_e,
        "wih_d": wih_d, "whh_d": whh_d, "gib_d": gib_d, "bhn_d": bhn_d,
        "wfc": wfc, "bfc": bfc,
        # Shape-only carrier of the true output dim (never read, only .shape).
        "o_dim": jnp.zeros((O,), jnp.float32),
    }
    return jax.tree_util.tree_map(lambda a: jnp.asarray(a, jnp.float32), prepped)


# -----------------------------------------------------------------------------
# Seq2Seq forward: hidden = encoder(src); outputs, _ = decoder(trg, hidden)
# The jitted hot path is exactly one pallas_call — no pads / transposes /
# reshapes / weight prep.
# -----------------------------------------------------------------------------
@jax.jit
def seq2seq_forward(src, trg, prepped):
    return _seq2seq_pallas(jnp.asarray(src, jnp.float32),
                           jnp.asarray(trg, jnp.float32),
                           prepped)


# -----------------------------------------------------------------------------
# Pure-JAX reference (PyTorch GRU semantics) for correctness checking.
# -----------------------------------------------------------------------------
def _seq2seq_reference(src, trg, params):
    H = params["enc_w_hh"].shape[1]

    def gru(x_seq, h, w_ih, w_hh, b_ih, b_hh):
        def step(h, x):
            gi = x @ w_ih.T + b_ih
            gh = h @ w_hh.T + b_hh
            r = jax.nn.sigmoid(gi[:, :H] + gh[:, :H])
            z = jax.nn.sigmoid(gi[:, H:2 * H] + gh[:, H:2 * H])
            n = jnp.tanh(gi[:, 2 * H:] + r * gh[:, 2 * H:])
            h_new = (1.0 - z) * n + z * h
            return h_new, h_new
        h_last, hs = jax.lax.scan(step, h, jnp.transpose(x_seq, (1, 0, 2)))
        return h_last, hs

    B = src.shape[0]
    h0 = jnp.zeros((B, H), jnp.float32)
    h_enc, _ = gru(src, h0, params["enc_w_ih"], params["enc_w_hh"],
                   params["enc_b_ih"], params["enc_b_hh"])
    _, hs = gru(trg, h_enc, params["dec_w_ih"], params["dec_w_hh"],
                params["dec_b_ih"], params["dec_b_hh"])
    out = jnp.einsum("tbh,oh->tbo", hs, params["fc_w"]) + params["fc_b"]
    return jnp.transpose(out, (1, 0, 2))


def init_params(key, input_dim, hidden_dim, output_dim):
    """Deterministic uniform(-1/sqrt(H), 1/sqrt(H)) init, PyTorch GRU-style."""
    k = 1.0 / sqrt(hidden_dim)
    keys = jax.random.split(key, 10)
    u = lambda kk, shape: jax.random.uniform(kk, shape, jnp.float32, -k, k)
    return {
        "enc_w_ih": u(keys[0], (3 * hidden_dim, input_dim)),
        "enc_w_hh": u(keys[1], (3 * hidden_dim, hidden_dim)),
        "enc_b_ih": u(keys[2], (3 * hidden_dim,)),
        "enc_b_hh": u(keys[3], (3 * hidden_dim,)),
        "dec_w_ih": u(keys[4], (3 * hidden_dim, input_dim)),
        "dec_w_hh": u(keys[5], (3 * hidden_dim, hidden_dim)),
        "dec_b_ih": u(keys[6], (3 * hidden_dim,)),
        "dec_b_hh": u(keys[7], (3 * hidden_dim,)),
        "fc_w": u(keys[8], (output_dim, hidden_dim)),
        "fc_b": u(keys[9], (output_dim,)),
    }


if __name__ == "__main__":
    B, T_SRC, T_TRG = 2, 8, 8
    INPUT_DIM, HIDDEN_DIM, OUTPUT_DIM = 4, 32, 4

    key = jax.random.PRNGKey(0)
    k_src, k_trg, k_par = jax.random.split(key, 3)

    src = jax.random.normal(k_src, (B, T_SRC, INPUT_DIM), jnp.float32)
    trg = jax.random.normal(k_trg, (B, T_TRG, INPUT_DIM), jnp.float32)
    params = init_params(k_par, INPUT_DIM, HIDDEN_DIM, OUTPUT_DIM)

    # One-time weight prep, outside the jitted hot path.
    prepped = prepare_params(params)
    prepped = jax.block_until_ready(prepped)

    out = seq2seq_forward(src, trg, prepped)
    jax.block_until_ready(out)
    assert out.shape == (B, T_TRG, OUTPUT_DIM)

    ref = _seq2seq_reference(src, trg, params)
    err = float(jnp.max(jnp.abs(out - ref)))
    assert err < 1e-3, f"max abs error vs reference: {err}"

    print("KERNEL_OK")
</pallas_src>

<mosaic_0001>
module attributes {stable_mosaic.version = 11 : i64} {
  func.func @_seq2seq_kernel(%arg0: memref<2x8x4xf32, #tpu.memory_space<vmem>>, %arg1: memref<2x8x4xf32, #tpu.memory_space<vmem>>, %arg2: memref<4x384xf32, #tpu.memory_space<vmem>>, %arg3: memref<128x384xf32, #tpu.memory_space<vmem>>, %arg4: memref<1x384xf32, #tpu.memory_space<vmem>>, %arg5: memref<1x128xf32, #tpu.memory_space<vmem>>, %arg6: memref<4x384xf32, #tpu.memory_space<vmem>>, %arg7: memref<128x384xf32, #tpu.memory_space<vmem>>, %arg8: memref<1x384xf32, #tpu.memory_space<vmem>>, %arg9: memref<1x128xf32, #tpu.memory_space<vmem>>, %arg10: memref<128x128xf32, #tpu.memory_space<vmem>>, %arg11: memref<1x128xf32, #tpu.memory_space<vmem>>, %arg12: memref<2x8x4xf32, #tpu.memory_space<vmem>>) attributes {dimension_semantics = [], scalar_prefetch = 0 : i64, scratch_operands = 0 : i64, tpu.core_type = #tpu.core_type<tc>} {
    %c0 = arith.constant 0 : index
    %c0_0 = arith.constant 0 : index
    %0 = vector.load %arg2[%c0, %c0_0] : memref<4x384xf32, #tpu.memory_space<vmem>>, vector<4x384xf32>
    %c0_1 = arith.constant 0 : index
    %c0_2 = arith.constant 0 : index
    %1 = vector.load %arg4[%c0_1, %c0_2] : memref<1x384xf32, #tpu.memory_space<vmem>>, vector<1x384xf32>
    %c0_3 = arith.constant 0 : index
    %c0_4 = arith.constant 0 : index
    %2 = vector.load %arg3[%c0_3, %c0_4] : memref<128x384xf32, #tpu.memory_space<vmem>>, vector<128x384xf32>
    %c0_5 = arith.constant 0 : index
    %c0_6 = arith.constant 0 : index
    %3 = vector.load %arg5[%c0_5, %c0_6] : memref<1x128xf32, #tpu.memory_space<vmem>>, vector<1x128xf32>
    %c0_7 = arith.constant 0 : index
    %c0_8 = arith.constant 0 : index
    %4 = vector.load %arg6[%c0_7, %c0_8] : memref<4x384xf32, #tpu.memory_space<vmem>>, vector<4x384xf32>
    %c0_9 = arith.constant 0 : index
    %c0_10 = arith.constant 0 : index
    %5 = vector.load %arg8[%c0_9, %c0_10] : memref<1x384xf32, #tpu.memory_space<vmem>>, vector<1x384xf32>
    %c0_11 = arith.constant 0 : index
    %c0_12 = arith.constant 0 : index
    %6 = vector.load %arg7[%c0_11, %c0_12] : memref<128x384xf32, #tpu.memory_space<vmem>>, vector<128x384xf32>
    %c0_13 = arith.constant 0 : index
    %c0_14 = arith.constant 0 : index
    %7 = vector.load %arg9[%c0_13, %c0_14] : memref<1x128xf32, #tpu.memory_space<vmem>>, vector<1x128xf32>
    %c0_15 = arith.constant 0 : index
    %c0_16 = arith.constant 0 : index
    %8 = vector.load %arg10[%c0_15, %c0_16] : memref<128x128xf32, #tpu.memory_space<vmem>>, vector<128x128xf32>
    %c0_17 = arith.constant 0 : index
    %c0_18 = arith.constant 0 : index
    %9 = vector.load %arg11[%c0_17, %c0_18] : memref<1x128xf32, #tpu.memory_space<vmem>>, vector<1x128xf32>
    %cst = arith.constant 0.000000e+00 : f32
    %10 = vector.broadcast %cst : f32 to vector<2x128xf32>
    %c0_19 = arith.constant 0 : index
    %c0_20 = arith.constant 0 : index
    %c0_21 = arith.constant 0 : index
    %11 = vector.load %arg0[%c0_19, %c0_20, %c0_21] : memref<2x8x4xf32, #tpu.memory_space<vmem>>, vector<2x1x4xf32>
    %12 = vector.shape_cast %11 : vector<2x1x4xf32> to vector<2x4xf32>
    %cst_22 = arith.constant dense<0.000000e+00> : vector<2x384xf32>
    %13 = tpu.matmul %12, %0, %cst_22 {dimension_numbers = #tpu.dot_dimension_numbers<[1], [0], [0], [1], [0, 0, 1, 1], [], []>} : vector<2x4xf32>, vector<4x384xf32>, vector<2x384xf32> -> vector<2x384xf32>
    %14 = vector.broadcast %1 : vector<1x384xf32> to vector<2x384xf32>
    %15 = arith.addf %13, %14 : vector<2x384xf32>
    %cst_23 = arith.constant dense<0.000000e+00> : vector<2x384xf32>
    %16 = tpu.matmul %10, %2, %cst_23 {dimension_numbers = #tpu.dot_dimension_numbers<[1], [0], [0], [1], [0, 0, 1, 1], [], []>} : vector<2x128xf32>, vector<128x384xf32>, vector<2x384xf32> -> vector<2x384xf32>
    %17 = vector.extract_strided_slice %15 {offsets = [0, 0], sizes = [2, 128], strides = [1, 1]} : vector<2x384xf32> to vector<2x128xf32>
    %18 = vector.extract_strided_slice %16 {offsets = [0, 0], sizes = [2, 128], strides = [1, 1]} : vector<2x384xf32> to vector<2x128xf32>
    %19 = arith.addf %17, %18 : vector<2x128xf32>
    %20 = arith.negf %19 : vector<2x128xf32>
    %21 = math.exp %20 : vector<2x128xf32>
    %cst_24 = arith.constant 1.000000e+00 : f32
    %22 = vector.broadcast %cst_24 : f32 to vector<2x128xf32>
    %23 = arith.addf %22, %21 : vector<2x128xf32>
    %24 = arith.divf %22, %23 : vector<2x128xf32>
    %25 = vector.extract_strided_slice %15 {offsets = [0, 128], sizes = [2, 128], strides = [1, 1]} : vector<2x384xf32> to vector<2x128xf32>
    %26 = vector.extract_strided_slice %16 {offsets = [0, 128], sizes = [2, 128], strides = [1, 1]} : vector<2x384xf32> to vector<2x128xf32>
    %27 = arith.addf %25, %26 : vector<2x128xf32>
    %28 = arith.negf %27 : vector<2x128xf32>
    %29 = math.exp %28 : vector<2x128xf32>
    %cst_25 = arith.constant 1.000000e+00 : f32
    %30 = vector.broadcast %cst_25 : f32 to vector<2x128xf32>
    %31 = arith.addf %30, %29 : vector<2x128xf32>
    %32 = arith.divf %30, %31 : vector<2x128xf32>
    %33 = vector.extract_strided_slice %15 {offsets = [0, 256], sizes = [2, 128], strides = [1, 1]} : vector<2x384xf32> to vector<2x128xf32>
    %34 = vector.extract_strided_slice %16 {offsets = [0, 256], sizes = [2, 128], strides = [1, 1]} : vector<2x384xf32> to vector<2x128xf32>
    %35 = vector.broadcast %3 : vector<1x128xf32> to vector<2x128xf32>
    %36 = arith.addf %34, %35 : vector<2x128xf32>
    %37 = arith.mulf %24, %36 : vector<2x128xf32>
    %38 = arith.addf %33, %37 : vector<2x128xf32>
    %39 = math.tanh %38 : vector<2x128xf32>
    %40 = arith.subf %10, %39 : vector<2x128xf32>
    %41 = arith.mulf %32, %40 : vector<2x128xf32>
    %42 = arith.addf %39, %41 : vector<2x128xf32>
    %c0_26 = arith.constant 0 : index
    %c1 = arith.constant 1 : index
    %c0_27 = arith.constant 0 : index
    %43 = vector.load %arg0[%c0_26, %c1, %c0_27] : memref<2x8x4xf32, #tpu.memory_space<vmem>>, vector<2x1x4xf32>
    %44 = vector.shape_cast %43 : vector<2x1x4xf32> to vector<2x4xf32>
    %cst_28 = arith.constant dense<0.000000e+00> : vector<2x384xf32>
    %45 = tpu.matmul %44, %0, %cst_28 {dimension_numbers = #tpu.dot_dimension_numbers<[1], [0], [0], [1], [0, 0, 1, 1], [], []>} : vector<2x4xf32>, vector<4x384xf32>, vector<2x384xf32> -> vector<2x384xf32>
    %46 = vector.broadcast %1 : vector<1x384xf32> to vector<2x384xf32>
    %47 = arith.addf %45, %46 : vector<2x384xf32>
    %cst_29 = arith.constant dense<0.000000e+00> : vector<2x384xf32>
    %48 = tpu.matmul %42, %2, %cst_29 {dimension_numbers = #tpu.dot_dimension_numbers<[1], [0], [0], [1], [0, 0, 1, 1], [], []>} : vector<2x128xf32>, vector<128x384xf32>, vector<2x384xf32> -> vector<2x384xf32>
    %49 = vector.extract_strided_slice %47 {offsets = [0, 0], sizes = [2, 128], strides = [1, 1]} : vector<2x384xf32> to vector<2x128xf32>
    %50 = vector.extract_strided_slice %48 {offsets = [0, 0], sizes = [2, 128], strides = [1, 1]} : vector<2x384xf32> to vector<2x128xf32>
    %51 = arith.addf %49, %50 : vector<2x128xf32>
    %52 = arith.negf %51 : vector<2x128xf32>
    %53 = math.exp %52 : vector<2x128xf32>
    %cst_30 = arith.constant 1.000000e+00 : f32
    %54 = vector.broadcast %cst_30 : f32 to vector<2x128xf32>
    %55 = arith.addf %54, %53 : vector<2x128xf32>
    %56 = arith.divf %54, %55 : vector<2x128xf32>
    %57 = vector.extract_strided_slice %47 {offsets = [0, 128], sizes = [2, 128], strides = [1, 1]} : vector<2x384xf32> to vector<2x128xf32>
    %58 = vector.extract_strided_slice %48 {offsets = [0, 128], sizes = [2, 128], strides = [1, 1]} : vector<2x384xf32> to vector<2x128xf32>
    %59 = arith.addf %57, %58 : vector<2x128xf32>
    %60 = arith.negf %59 : vector<2x128xf32>
    %61 = math.exp %60 : vector<2x128xf32>
    %cst_31 = arith.constant 1.000000e+00 : f32
    %62 = vector.broadcast %cst_31 : f32 to vector<2x128xf32>
    %63 = arith.addf %62, %61 : vector<2x128xf32>
    %64 = arith.divf %62, %63 : vector<2x128xf32>
    %65 = vector.extract_strided_slice %47 {offsets = [0, 256], sizes = [2, 128], strides = [1, 1]} : vector<2x384xf32> to vector<2x128xf32>
    %66 = vector.extract_strided_slice %48 {offsets = [0, 256], sizes = [2, 128], strides = [1, 1]} : vector<2x384xf32> to vector<2x128xf32>
    %67 = vector.broadcast %3 : vector<1x128xf32> to vector<2x128xf32>
    %68 = arith.addf %66, %67 : vector<2x128xf32>
    %69 = arith.mulf %56, %68 : vector<2x128xf32>
    %70 = arith.addf %65, %69 : vector<2x128xf32>
    %71 = math.tanh %70 : vector<2x128xf32>
    %72 = arith.subf %42, %71 : vector<2x128xf32>
    %73 = arith.mulf %64, %72 : vector<2x128xf32>
    %74 = arith.addf %71, %73 : vector<2x128xf32>
    %c0_32 = arith.constant 0 : index
    %c2 = arith.constant 2 : index
    %c0_33 = arith.constant 0 : index
    %75 = vector.load %arg0[%c0_32, %c2, %c0_33] : memref<2x8x4xf32, #tpu.memory_space<vmem>>, vector<2x1x4xf32>
    %76 = vector.shape_cast %75 : vector<2x1x4xf32> to vector<2x4xf32>
    %cst_34 = arith.constant dense<0.000000e+00> : vector<2x384xf32>
    %77 = tpu.matmul %76, %0, %cst_34 {dimension_numbers = #tpu.dot_dimension_numbers<[1], [0], [0], [1], [0, 0, 1, 1], [], []>} : vector<2x4xf32>, vector<4x384xf32>, vector<2x384xf32> -> vector<2x384xf32>
    %78 = vector.broadcast %1 : vector<1x384xf32> to vector<2x384xf32>
    %79 = arith.addf %77, %78 : vector<2x384xf32>
    %cst_35 = arith.constant dense<0.000000e+00> : vector<2x384xf32>
    %80 = tpu.matmul %74, %2, %cst_35 {dimension_numbers = #tpu.dot_dimension_numbers<[1], [0], [0], [1], [0, 0, 1, 1], [], []>} : vector<2x128xf32>, vector<128x384xf32>, vector<2x384xf32> -> vector<2x384xf32>
    %81 = vector.extract_strided_slice %79 {offsets = [0, 0], sizes = [2, 128], strides = [1, 1]} : vector<2x384xf32> to vector<2x128xf32>
    %82 = vector.extract_strided_slice %80 {offsets = [0, 0], sizes = [2, 128], strides = [1, 1]} : vector<2x384xf32> to vector<2x128xf32>
    %83 = arith.addf %81, %82 : vector<2x128xf32>
    %84 = arith.negf %83 : vector<2x128xf32>
    %85 = math.exp %84 : vector<2x128xf32>
    %cst_36 = arith.constant 1.000000e+00 : f32
    %86 = vector.broadcast %cst_36 : f32 to vector<2x128xf32>
    %87 = arith.addf %86, %85 : vector<2x128xf32>
    %88 = arith.divf %86, %87 : vector<2x128xf32>
    %89 = vector.extract_strided_slice %79 {offsets = [0, 128], sizes = [2, 128], strides = [1, 1]} : vector<2x384xf32> to vector<2x128xf32>
    %90 = vector.extract_strided_slice %80 {offsets = [0, 128], sizes = [2, 128], strides = [1, 1]} : vector<2x384xf32> to vector<2x128xf32>
    %91 = arith.addf %89, %90 : vector<2x128xf32>
    %92 = arith.negf %91 : vector<2x128xf32>
    %93 = math.exp %92 : vector<2x128xf32>
    %cst_37 = arith.constant 1.000000e+00 : f32
    %94 = vector.broadcast %cst_37 : f32 to vector<2x128xf32>
    %95 = arith.addf %94, %93 : vector<2x128xf32>
    %96 = arith.divf %94, %95 : vector<2x128xf32>
    %97 = vector.extract_strided_slice %79 {offsets = [0, 256], sizes = [2, 128], strides = [1, 1]} : vector<2x384xf32> to vector<2x128xf32>
    %98 = vector.extract_strided_slice %80 {offsets = [0, 256], sizes = [2, 128], strides = [1, 1]} : vector<2x384xf32> to vector<2x128xf32>
    %99 = vector.broadcast %3 : vector<1x128xf32> to vector<2x128xf32>
    %100 = arith.addf %98, %99 : vector<2x128xf32>
    %101 = arith.mulf %88, %100 : vector<2x128xf32>
    %102 = arith.addf %97, %101 : vector<2x128xf32>
    %103 = math.tanh %102 : vector<2x128xf32>
    %104 = arith.subf %74, %103 : vector<2x128xf32>
    %105 = arith.mulf %96, %104 : vector<2x128xf32>
    %106 = arith.addf %103, %105 : vector<2x128xf32>
    %c0_38 = arith.constant 0 : index
    %c3 = arith.constant 3 : index
    %c0_39 = arith.constant 0 : index
    %107 = vector.load %arg0[%c0_38, %c3, %c0_39] : memref<2x8x4xf32, #tpu.memory_space<vmem>>, vector<2x1x4xf32>
    %108 = vector.shape_cast %107 : vector<2x1x4xf32> to vector<2x4xf32>
    %cst_40 = arith.constant dense<0.000000e+00> : vector<2x384xf32>
    %109 = tpu.matmul %108, %0, %cst_40 {dimension_numbers = #tpu.dot_dimension_numbers<[1], [0], [0], [1], [0, 0, 1, 1], [], []>} : vector<2x4xf32>, vector<4x384xf32>, vector<2x384xf32> -> vector<2x384xf32>
    %110 = vector.broadcast %1 : vector<1x384xf32> to vector<2x384xf32>
    %111 = arith.addf %109, %110 : vector<2x384xf32>
    %cst_41 = arith.constant dense<0.000000e+00> : vector<2x384xf32>
    %112 = tpu.matmul %106, %2, %cst_41 {dimension_numbers = #tpu.dot_dimension_numbers<[1], [0], [0], [1], [0, 0, 1, 1], [], []>} : vector<2x128xf32>, vector<128x384xf32>, vector<2x384xf32> -> vector<2x384xf32>
    %113 = vector.extract_strided_slice %111 {offsets = [0, 0], sizes = [2, 128], strides = [1, 1]} : vector<2x384xf32> to vector<2x128xf32>
    %114 = vector.extract_strided_slice %112 {offsets = [0, 0], sizes = [2, 128], strides = [1, 1]} : vector<2x384xf32> to vector<2x128xf32>
    %115 = arith.addf %113, %114 : vector<2x128xf32>
    %116 = arith.negf %115 : vector<2x128xf32>
    %117 = math.exp %116 : vector<2x128xf32>
    %cst_42 = arith.constant 1.000000e+00 : f32
    %118 = vector.broadcast %cst_42 : f32 to vector<2x128xf32>
    %119 = arith.addf %118, %117 : vector<2x128xf32>
    %120 = arith.divf %118, %119 : vector<2x128xf32>
    %121 = vector.extract_strided_slice %111 {offsets = [0, 128], sizes = [2, 128], strides = [1, 1]} : vector<2x384xf32> to vector<2x128xf32>
    %122 = vector.extract_strided_slice %112 {offsets = [0, 128], sizes = [2, 128], strides = [1, 1]} : vector<2x384xf32> to vector<2x128xf32>
    %123 = arith.addf %121, %122 : vector<2x128xf32>
    %124 = arith.negf %123 : vector<2x128xf32>
    %125 = math.exp %124 : vector<2x128xf32>
    %cst_43 = arith.constant 1.000000e+00 : f32
    %126 = vector.broadcast %cst_43 : f32 to vector<2x128xf32>
    %127 = arith.addf %126, %125 : vector<2x128xf32>
    %128 = arith.divf %126, %127 : vector<2x128xf32>
    %129 = vector.extract_strided_slice %111 {offsets = [0, 256], sizes = [2, 128], strides = [1, 1]} : vector<2x384xf32> to vector<2x128xf32>
    %130 = vector.extract_strided_slice %112 {offsets = [0, 256], sizes = [2, 128], strides = [1, 1]} : vector<2x384xf32> to vector<2x128xf32>
    %131 = vector.broadcast %3 : vector<1x128xf32> to vector<2x128xf32>
    %132 = arith.addf %130, %131 : vector<2x128xf32>
    %133 = arith.mulf %120, %132 : vector<2x128xf32>
    %134 = arith.addf %129, %133 : vector<2x128xf32>
    %135 = math.tanh %134 : vector<2x128xf32>
    %136 = arith.subf %106, %135 : vector<2x128xf32>
    %137 = arith.mulf %128, %136 : vector<2x128xf32>
    %138 = arith.addf %135, %137 : vector<2x128xf32>
    %c0_44 = arith.constant 0 : index
    %c4 = arith.constant 4 : index
    %c0_45 = arith.constant 0 : index
    %139 = vector.load %arg0[%c0_44, %c4, %c0_45] : memref<2x8x4xf32, #tpu.memory_space<vmem>>, vector<2x1x4xf32>
    %140 = vector.shape_cast %139 : vector<2x1x4xf32> to vector<2x4xf32>
    %cst_46 = arith.constant dense<0.000000e+00> : vector<2x384xf32>
    %141 = tpu.matmul %140, %0, %cst_46 {dimension_numbers = #tpu.dot_dimension_numbers<[1], [0], [0], [1], [0, 0, 1, 1], [], []>} : vector<2x4xf32>, vector<4x384xf32>, vector<2x384xf32> -> vector<2x384xf32>
    %142 = vector.broadcast %1 : vector<1x384xf32> to vector<2x384xf32>
    %143 = arith.addf %141, %142 : vector<2x384xf32>
    %cst_47 = arith.constant dense<0.000000e+00> : vector<2x384xf32>
    %144 = tpu.matmul %138, %2, %cst_47 {dimension_numbers = #tpu.dot_dimension_numbers<[1], [0], [0], [1], [0, 0, 1, 1], [], []>} : vector<2x128xf32>, vector<128x384xf32>, vector<2x384xf32> -> vector<2x384xf32>
    %145 = vector.extract_strided_slice %143 {offsets = [0, 0], sizes = [2, 128], strides = [1, 1]} : vector<2x384xf32> to vector<2x128xf32>
    %146 = vector.extract_strided_slice %144 {offsets = [0, 0], sizes = [2, 128], strides = [1, 1]} : vector<2x384xf32> to vector<2x128xf32>
    %147 = arith.addf %145, %146 : vector<2x128xf32>
    %148 = arith.negf %147 : vector<2x128xf32>
    %149 = math.exp %148 : vector<2x128xf32>
    %cst_48 = arith.constant 1.000000e+00 : f32
    %150 = vector.broadcast %cst_48 : f32 to vector<2x128xf32>
    %151 = arith.addf %150, %149 : vector<2x128xf32>
    %152 = arith.divf %150, %151 : vector<2x128xf32>
    %153 = vector.extract_strided_slice %143 {offsets = [0, 128], sizes = [2, 128], strides = [1, 1]} : vector<2x384xf32> to vector<2x128xf32>
    %154 = vector.extract_strided_slice %144 {offsets = [0, 128], sizes = [2, 128], strides = [1, 1]} : vector<2x384xf32> to vector<2x128xf32>
    %155 = arith.addf %153, %154 : vector<2x128xf32>
    %156 = arith.negf %155 : vector<2x128xf32>
    %157 = math.exp %156 : vector<2x128xf32>
    %cst_49 = arith.constant 1.000000e+00 : f32
    %158 = vector.broadcast %cst_49 : f32 to vector<2x128xf32>
    %159 = arith.addf %158, %157 : vector<2x128xf32>
    %160 = arith.divf %158, %159 : vector<2x128xf32>
    %161 = vector.extract_strided_slice %143 {offsets = [0, 256], sizes = [2, 128], strides = [1, 1]} : vector<2x384xf32> to vector<2x128xf32>
    %162 = vector.extract_strided_slice %144 {offsets = [0, 256], sizes = [2, 128], strides = [1, 1]} : vector<2x384xf32> to vector<2x128xf32>
    %163 = vector.broadcast %3 : vector<1x128xf32> to vector<2x128xf32>
    %164 = arith.addf %162, %163 : vector<2x128xf32>
    %165 = arith.mulf %152, %164 : vector<2x128xf32>
    %166 = arith.addf %161, %165 : vector<2x128xf32>
    %167 = math.tanh %166 : vector<2x128xf32>
    %168 = arith.subf %138, %167 : vector<2x128xf32>
    %169 = arith.mulf %160, %168 : vector<2x128xf32>
    %170 = arith.addf %167, %169 : vector<2x128xf32>
    %c0_50 = arith.constant 0 : index
    %c5 = arith.constant 5 : index
    %c0_51 = arith.constant 0 : index
    %171 = vector.load %arg0[%c0_50, %c5, %c0_51] : memref<2x8x4xf32, #tpu.memory_space<vmem>>, vector<2x1x4xf32>
    %172 = vector.shape_cast %171 : vector<2x1x4xf32> to vector<2x4xf32>
    %cst_52 = arith.constant dense<0.000000e+00> : vector<2x384xf32>
    %173 = tpu.matmul %172, %0, %cst_52 {dimension_numbers = #tpu.dot_dimension_numbers<[1], [0], [0], [1], [0, 0, 1, 1], [], []>} : vector<2x4xf32>, vector<4x384xf32>, vector<2x384xf32> -> vector<2x384xf32>
    %174 = vector.broadcast %1 : vector<1x384xf32> to vector<2x384xf32>
    %175 = arith.addf %173, %174 : vector<2x384xf32>
    %cst_53 = arith.constant dense<0.000000e+00> : vector<2x384xf32>
    %176 = tpu.matmul %170, %2, %cst_53 {dimension_numbers = #tpu.dot_dimension_numbers<[1], [0], [0], [1], [0, 0, 1, 1], [], []>} : vector<2x128xf32>, vector<128x384xf32>, vector<2x384xf32> -> vector<2x384xf32>
    %177 = vector.extract_strided_slice %175 {offsets = [0, 0], sizes = [2, 128], strides = [1, 1]} : vector<2x384xf32> to vector<2x128xf32>
    %178 = vector.extract_strided_slice %176 {offsets = [0, 0], sizes = [2, 128], strides = [1, 1]} : vector<2x384xf32> to vector<2x128xf32>
    %179 = arith.addf %177, %178 : vector<2x128xf32>
    %180 = arith.negf %179 : vector<2x128xf32>
    %181 = math.exp %180 : vector<2x128xf32>
    %cst_54 = arith.constant 1.000000e+00 : f32
    %182 = vector.broadcast %cst_54 : f32 to vector<2x128xf32>
    %183 = arith.addf %182, %181 : vector<2x128xf32>
    %184 = arith.divf %182, %183 : vector<2x128xf32>
    %185 = vector.extract_strided_slice %175 {offsets = [0, 128], sizes = [2, 128], strides = [1, 1]} : vector<2x384xf32> to vector<2x128xf32>
    %186 = vector.extract_strided_slice %176 {offsets = [0, 128], sizes = [2, 128], strides = [1, 1]} : vector<2x384xf32> to vector<2x128xf32>
    %187 = arith.addf %185, %186 : vector<2x128xf32>
    %188 = arith.negf %187 : vector<2x128xf32>
    %189 = math.exp %188 : vector<2x128xf32>
    %cst_55 = arith.constant 1.000000e+00 : f32
    %190 = vector.broadcast %cst_55 : f32 to vector<2x128xf32>
    %191 = arith.addf %190, %189 : vector<2x128xf32>
    %192 = arith.divf %190, %191 : vector<2x128xf32>
    %193 = vector.extract_strided_slice %175 {offsets = [0, 256], sizes = [2, 128], strides = [1, 1]} : vector<2x384xf32> to vector<2x128xf32>
    %194 = vector.extract_strided_slice %176 {offsets = [0, 256], sizes = [2, 128], strides = [1, 1]} : vector<2x384xf32> to vector<2x128xf32>
    %195 = vector.broadcast %3 : vector<1x128xf32> to vector<2x128xf32>
    %196 = arith.addf %194, %195 : vector<2x128xf32>
    %197 = arith.mulf %184, %196 : vector<2x128xf32>
    %198 = arith.addf %193, %197 : vector<2x128xf32>
    %199 = math.tanh %198 : vector<2x128xf32>
    %200 = arith.subf %170, %199 : vector<2x128xf32>
    %201 = arith.mulf %192, %200 : vector<2x128xf32>
    %202 = arith.addf %199, %201 : vector<2x128xf32>
    %c0_56 = arith.constant 0 : index
    %c6 = arith.constant 6 : index
    %c0_57 = arith.constant 0 : index
    %203 = vector.load %arg0[%c0_56, %c6, %c0_57] : memref<2x8x4xf32, #tpu.memory_space<vmem>>, vector<2x1x4xf32>
    %204 = vector.shape_cast %203 : vector<2x1x4xf32> to vector<2x4xf32>
    %cst_58 = arith.constant dense<0.000000e+00> : vector<2x384xf32>
    %205 = tpu.matmul %204, %0, %cst_58 {dimension_numbers = #tpu.dot_dimension_numbers<[1], [0], [0], [1], [0, 0, 1, 1], [], []>} : vector<2x4xf32>, vector<4x384xf32>, vector<2x384xf32> -> vector<2x384xf32>
    %206 = vector.broadcast %1 : vector<1x384xf32> to vector<2x384xf32>
    %207 = arith.addf %205, %206 : vector<2x384xf32>
    %cst_59 = arith.constant dense<0.000000e+00> : vector<2x384xf32>
    %208 = tpu.matmul %202, %2, %cst_59 {dimension_numbers = #tpu.dot_dimension_numbers<[1], [0], [0], [1], [0, 0, 1, 1], [], []>} : vector<2x128xf32>, vector<128x384xf32>, vector<2x384xf32> -> vector<2x384xf32>
    %209 = vector.extract_strided_slice %207 {offsets = [0, 0], sizes = [2, 128], strides = [1, 1]} : vector<2x384xf32> to vector<2x128xf32>
    %210 = vector.extract_strided_slice %208 {offsets = [0, 0], sizes = [2, 128], strides = [1, 1]} : vector<2x384xf32> to vector<2x128xf32>
    %211 = arith.addf %209, %210 : vector<2x128xf32>
    %212 = arith.negf %211 : vector<2x128xf32>
    %213 = math.exp %212 : vector<2x128xf32>
    %cst_60 = arith.constant 1.000000e+00 : f32
    %214 = vector.broadcast %cst_60 : f32 to vector<2x128xf32>
    %215 = arith.addf %214, %213 : vector<2x128xf32>
    %216 = arith.divf %214, %215 : vector<2x128xf32>
    %217 = vector.extract_strided_slice %207 {offsets = [0, 128], sizes = [2, 128], strides = [1, 1]} : vector<2x384xf32> to vector<2x128xf32>
    %218 = vector.extract_strided_slice %208 {offsets = [0, 128], sizes = [2, 128], strides = [1, 1]} : vector<2x384xf32> to vector<2x128xf32>
    %219 = arith.addf %217, %218 : vector<2x128xf32>
    %220 = arith.negf %219 : vector<2x128xf32>
    %221 = math.exp %220 : vector<2x128xf32>
    %cst_61 = arith.constant 1.000000e+00 : f32
    %222 = vector.broadcast %cst_61 : f32 to vector<2x128xf32>
    %223 = arith.addf %222, %221 : vector<2x128xf32>
    %224 = arith.divf %222, %223 : vector<2x128xf32>
    %225 = vector.extract_strided_slice %207 {offsets = [0, 256], sizes = [2, 128], strides = [1, 1]} : vector<2x384xf32> to vector<2x128xf32>
    %226 = vector.extract_strided_slice %208 {offsets = [0, 256], sizes = [2, 128], strides = [1, 1]} : vector<2x384xf32> to vector<2x128xf32>
    %227 = vector.broadcast %3 : vector<1x128xf32> to vector<2x128xf32>
    %228 = arith.addf %226, %227 : vector<2x128xf32>
    %229 = arith.mulf %216, %228 : vector<2x128xf32>
    %230 = arith.addf %225, %229 : vector<2x128xf32>
    %231 = math.tanh %230 : vector<2x128xf32>
    %232 = arith.subf %202, %231 : vector<2x128xf32>
    %233 = arith.mulf %224, %232 : vector<2x128xf32>
    %234 = arith.addf %231, %233 : vector<2x128xf32>
    %c0_62 = arith.constant 0 : index
    %c7 = arith.constant 7 : index
    %c0_63 = arith.constant 0 : index
    %235 = vector.load %arg0[%c0_62, %c7, %c0_63] : memref<2x8x4xf32, #tpu.memory_space<vmem>>, vector<2x1x4xf32>
    %236 = vector.shape_cast %235 : vector<2x1x4xf32> to vector<2x4xf32>
    %cst_64 = arith.constant dense<0.000000e+00> : vector<2x384xf32>
    %237 = tpu.matmul %236, %0, %cst_64 {dimension_numbers = #tpu.dot_dimension_numbers<[1], [0], [0], [1], [0, 0, 1, 1], [], []>} : vector<2x4xf32>, vector<4x384xf32>, vector<2x384xf32> -> vector<2x384xf32>
    %238 = vector.broadcast %1 : vector<1x384xf32> to vector<2x384xf32>
    %239 = arith.addf %237, %238 : vector<2x384xf32>
    %cst_65 = arith.constant dense<0.000000e+00> : vector<2x384xf32>
    %240 = tpu.matmul %234, %2, %cst_65 {dimension_numbers = #tpu.dot_dimension_numbers<[1], [0], [0], [1], [0, 0, 1, 1], [], []>} : vector<2x128xf32>, vector<128x384xf32>, vector<2x384xf32> -> vector<2x384xf32>
    %241 = vector.extract_strided_slice %239 {offsets = [0, 0], sizes = [2, 128], strides = [1, 1]} : vector<2x384xf32> to vector<2x128xf32>
    %242 = vector.extract_strided_slice %240 {offsets = [0, 0], sizes = [2, 128], strides = [1, 1]} : vector<2x384xf32> to vector<2x128xf32>
    %243 = arith.addf %241, %242 : vector<2x128xf32>
    %244 = arith.negf %243 : vector<2x128xf32>
    %245 = math.exp %244 : vector<2x128xf32>
    %cst_66 = arith.constant 1.000000e+00 : f32
    %246 = vector.broadcast %cst_66 : f32 to vector<2x128xf32>
    %247 = arith.addf %246, %245 : vector<2x128xf32>
    %248 = arith.divf %246, %247 : vector<2x128xf32>
    %249 = vector.extract_strided_slice %239 {offsets = [0, 128], sizes = [2, 128], strides = [1, 1]} : vector<2x384xf32> to vector<2x128xf32>
    %250 = vector.extract_strided_slice %240 {offsets = [0, 128], sizes = [2, 128], strides = [1, 1]} : vector<2x384xf32> to vector<2x128xf32>
    %251 = arith.addf %249, %250 : vector<2x128xf32>
    %252 = arith.negf %251 : vector<2x128xf32>
    %253 = math.exp %252 : vector<2x128xf32>
    %cst_67 = arith.constant 1.000000e+00 : f32
    %254 = vector.broadcast %cst_67 : f32 to vector<2x128xf32>
    %255 = arith.addf %254, %253 : vector<2x128xf32>
    %256 = arith.divf %254, %255 : vector<2x128xf32>
    %257 = vector.extract_strided_slice %239 {offsets = [0, 256], sizes = [2, 128], strides = [1, 1]} : vector<2x384xf32> to vector<2x128xf32>
    %258 = vector.extract_strided_slice %240 {offsets = [0, 256], sizes = [2, 128], strides = [1, 1]} : vector<2x384xf32> to vector<2x128xf32>
    %259 = vector.broadcast %3 : vector<1x128xf32> to vector<2x128xf32>
    %260 = arith.addf %258, %259 : vector<2x128xf32>
    %261 = arith.mulf %248, %260 : vector<2x128xf32>
    %262 = arith.addf %257, %261 : vector<2x128xf32>
    %263 = math.tanh %262 : vector<2x128xf32>
    %264 = arith.subf %234, %263 : vector<2x128xf32>
    %265 = arith.mulf %256, %264 : vector<2x128xf32>
    %266 = arith.addf %263, %265 : vector<2x128xf32>
    %c0_68 = arith.constant 0 : index
    %c0_69 = arith.constant 0 : index
    %c0_70 = arith.constant 0 : index
    %267 = vector.load %arg1[%c0_68, %c0_69, %c0_70] : memref<2x8x4xf32, #tpu.memory_space<vmem>>, vector<2x1x4xf32>
    %268 = vector.shape_cast %267 : vector<2x1x4xf32> to vector<2x4xf32>
    %cst_71 = arith.constant dense<0.000000e+00> : vector<2x384xf32>
    %269 = tpu.matmul %268, %4, %cst_71 {dimension_numbers = #tpu.dot_dimension_numbers<[1], [0], [0], [1], [0, 0, 1, 1], [], []>} : vector<2x4xf32>, vector<4x384xf32>, vector<2x384xf32> -> vector<2x384xf32>
    %270 = vector.broadcast %5 : vector<1x384xf32> to vector<2x384xf32>
    %271 = arith.addf %269, %270 : vector<2x384xf32>
    %cst_72 = arith.constant dense<0.000000e+00> : vector<2x384xf32>
    %272 = tpu.matmul %266, %6, %cst_72 {dimension_numbers = #tpu.dot_dimension_numbers<[1], [0], [0], [1], [0, 0, 1, 1], [], []>} : vector<2x128xf32>, vector<128x384xf32>, vector<2x384xf32> -> vector<2x384xf32>
    %273 = vector.extract_strided_slice %271 {offsets = [0, 0], sizes = [2, 128], strides = [1, 1]} : vector<2x384xf32> to vector<2x128xf32>
    %274 = vector.extract_strided_slice %272 {offsets = [0, 0], sizes = [2, 128], strides = [1, 1]} : vector<2x384xf32> to vector<2x128xf32>
    %275 = arith.addf %273, %274 : vector<2x128xf32>
    %276 = arith.negf %275 : vector<2x128xf32>
    %277 = math.exp %276 : vector<2x128xf32>
    %cst_73 = arith.constant 1.000000e+00 : f32
    %278 = vector.broadcast %cst_73 : f32 to vector<2x128xf32>
    %279 = arith.addf %278, %277 : vector<2x128xf32>
    %280 = arith.divf %278, %279 : vector<2x128xf32>
    %281 = vector.extract_strided_slice %271 {offsets = [0, 128], sizes = [2, 128], strides = [1, 1]} : vector<2x384xf32> to vector<2x128xf32>
    %282 = vector.extract_strided_slice %272 {offsets = [0, 128], sizes = [2, 128], strides = [1, 1]} : vector<2x384xf32> to vector<2x128xf32>
    %283 = arith.addf %281, %282 : vector<2x128xf32>
    %284 = arith.negf %283 : vector<2x128xf32>
    %285 = math.exp %284 : vector<2x128xf32>
    %cst_74 = arith.constant 1.000000e+00 : f32
    %286 = vector.broadcast %cst_74 : f32 to vector<2x128xf32>
    %287 = arith.addf %286, %285 : vector<2x128xf32>
    %288 = arith.divf %286, %287 : vector<2x128xf32>
    %289 = vector.extract_strided_slice %271 {offsets = [0, 256], sizes = [2, 128], strides = [1, 1]} : vector<2x384xf32> to vector<2x128xf32>
    %290 = vector.extract_strided_slice %272 {offsets = [0, 256], sizes = [2, 128], strides = [1, 1]} : vector<2x384xf32> to vector<2x128xf32>
    %291 = vector.broadcast %7 : vector<1x128xf32> to vector<2x128xf32>
    %292 = arith.addf %290, %291 : vector<2x128xf32>
    %293 = arith.mulf %280, %292 : vector<2x128xf32>
    %294 = arith.addf %289, %293 : vector<2x128xf32>
    %295 = math.tanh %294 : vector<2x128xf32>
    %296 = arith.subf %266, %295 : vector<2x128xf32>
    %297 = arith.mulf %288, %296 : vector<2x128xf32>
    %298 = arith.addf %295, %297 : vector<2x128xf32>
    %cst_75 = arith.constant dense<0.000000e+00> : vector<2x128xf32>
    %299 = tpu.matmul %298, %8, %cst_75 {dimension_numbers = #tpu.dot_dimension_numbers<[1], [0], [0], [1], [0, 0, 1, 1], [], []>} : vector<2x128xf32>, vector<128x128xf32>, vector<2x128xf32> -> vector<2x128xf32>
    %300 = vector.broadcast %9 : vector<1x128xf32> to vector<2x128xf32>
    %301 = arith.addf %299, %300 : vector<2x128xf32>
    %302 = vector.extract_strided_slice %301 {offsets = [0, 0], sizes = [2, 4], strides = [1, 1]} : vector<2x128xf32> to vector<2x4xf32>
    %c0_76 = arith.constant 0 : index
    %c0_77 = arith.constant 0 : index
    %c0_78 = arith.constant 0 : index
    %303 = vector.load %arg12[%c0_76, %c0_77, %c0_78] : memref<2x8x4xf32, #tpu.memory_space<vmem>>, vector<2x1x4xf32>
    %304 = vector.shape_cast %303 : vector<2x1x4xf32> to vector<2x4xf32>
    %305 = vector.shape_cast %302 : vector<2x4xf32> to vector<2x1x4xf32>
    tpu.vector_store %arg12[%c0_76, %c0_77, %c0_78], %305 {strides = array<i32>} : memref<2x8x4xf32, #tpu.memory_space<vmem>>, vector<2x1x4xf32>,
    %c0_79 = arith.constant 0 : index
    %c1_80 = arith.constant 1 : index
    %c0_81 = arith.constant 0 : index
    %306 = vector.load %arg1[%c0_79, %c1_80, %c0_81] : memref<2x8x4xf32, #tpu.memory_space<vmem>>, vector<2x1x4xf32>
    %307 = vector.shape_cast %306 : vector<2x1x4xf32> to vector<2x4xf32>
    %cst_82 = arith.constant dense<0.000000e+00> : vector<2x384xf32>
    %308 = tpu.matmul %307, %4, %cst_82 {dimension_numbers = #tpu.dot_dimension_numbers<[1], [0], [0], [1], [0, 0, 1, 1], [], []>} : vector<2x4xf32>, vector<4x384xf32>, vector<2x384xf32> -> vector<2x384xf32>
    %309 = vector.broadcast %5 : vector<1x384xf32> to vector<2x384xf32>
    %310 = arith.addf %308, %309 : vector<2x384xf32>
    %cst_83 = arith.constant dense<0.000000e+00> : vector<2x384xf32>
    %311 = tpu.matmul %298, %6, %cst_83 {dimension_numbers = #tpu.dot_dimension_numbers<[1], [0], [0], [1], [0, 0, 1, 1], [], []>} : vector<2x128xf32>, vector<128x384xf32>, vector<2x384xf32> -> vector<2x384xf32>
    %312 = vector.extract_strided_slice %310 {offsets = [0, 0], sizes = [2, 128], strides = [1, 1]} : vector<2x384xf32> to vector<2x128xf32>
    %313 = vector.extract_strided_slice %311 {offsets = [0, 0], sizes = [2, 128], strides = [1, 1]} : vector<2x384xf32> to vector<2x128xf32>
    %314 = arith.addf %312, %313 : vector<2x128xf32>
    %315 = arith.negf %314 : vector<2x128xf32>
    %316 = math.exp %315 : vector<2x128xf32>
    %cst_84 = arith.constant 1.000000e+00 : f32
    %317 = vector.broadcast %cst_84 : f32 to vector<2x128xf32>
    %318 = arith.addf %317, %316 : vector<2x128xf32>
    %319 = arith.divf %317, %318 : vector<2x128xf32>
    %320 = vector.extract_strided_slice %310 {offsets = [0, 128], sizes = [2, 128], strides = [1, 1]} : vector<2x384xf32> to vector<2x128xf32>
    %321 = vector.extract_strided_slice %311 {offsets = [0, 128], sizes = [2, 128], strides = [1, 1]} : vector<2x384xf32> to vector<2x128xf32>
    %322 = arith.addf %320, %321 : vector<2x128xf32>
    %323 = arith.negf %322 : vector<2x128xf32>
    %324 = math.exp %323 : vector<2x128xf32>
    %cst_85 = arith.constant 1.000000e+00 : f32
    %325 = vector.broadcast %cst_85 : f32 to vector<2x128xf32>
    %326 = arith.addf %325, %324 : vector<2x128xf32>
    %327 = arith.divf %325, %326 : vector<2x128xf32>
    %328 = vector.extract_strided_slice %310 {offsets = [0, 256], sizes = [2, 128], strides = [1, 1]} : vector<2x384xf32> to vector<2x128xf32>
    %329 = vector.extract_strided_slice %311 {offsets = [0, 256], sizes = [2, 128], strides = [1, 1]} : vector<2x384xf32> to vector<2x128xf32>
    %330 = vector.broadcast %7 : vector<1x128xf32> to vector<2x128xf32>
    %331 = arith.addf %329, %330 : vector<2x128xf32>
    %332 = arith.mulf %319, %331 : vector<2x128xf32>
    %333 = arith.addf %328, %332 : vector<2x128xf32>
    %334 = math.tanh %333 : vector<2x128xf32>
    %335 = arith.subf %298, %334 : vector<2x128xf32>
    %336 = arith.mulf %327, %335 : vector<2x128xf32>
    %337 = arith.addf %334, %336 : vector<2x128xf32>
    %cst_86 = arith.constant dense<0.000000e+00> : vector<2x128xf32>
    %338 = tpu.matmul %337, %8, %cst_86 {dimension_numbers = #tpu.dot_dimension_numbers<[1], [0], [0], [1], [0, 0, 1, 1], [], []>} : vector<2x128xf32>, vector<128x128xf32>, vector<2x128xf32> -> vector<2x128xf32>
    %339 = vector.broadcast %9 : vector<1x128xf32> to vector<2x128xf32>
    %340 = arith.addf %338, %339 : vector<2x128xf32>
    %341 = vector.extract_strided_slice %340 {offsets = [0, 0], sizes = [2, 4], strides = [1, 1]} : vector<2x128xf32> to vector<2x4xf32>
    %c0_87 = arith.constant 0 : index
    %c1_88 = arith.constant 1 : index
    %c0_89 = arith.constant 0 : index
    %342 = vector.load %arg12[%c0_87, %c1_88, %c0_89] : memref<2x8x4xf32, #tpu.memory_space<vmem>>, vector<2x1x4xf32>
    %343 = vector.shape_cast %342 : vector<2x1x4xf32> to vector<2x4xf32>
    %344 = vector.shape_cast %341 : vector<2x4xf32> to vector<2x1x4xf32>
    tpu.vector_store %arg12[%c0_87, %c1_88, %c0_89], %344 {strides = array<i32>} : memref<2x8x4xf32, #tpu.memory_space<vmem>>, vector<2x1x4xf32>,
    %c0_90 = arith.constant 0 : index
    %c2_91 = arith.constant 2 : index
    %c0_92 = arith.constant 0 : index
    %345 = vector.load %arg1[%c0_90, %c2_91, %c0_92] : memref<2x8x4xf32, #tpu.memory_space<vmem>>, vector<2x1x4xf32>
    %346 = vector.shape_cast %345 : vector<2x1x4xf32> to vector<2x4xf32>
    %cst_93 = arith.constant dense<0.000000e+00> : vector<2x384xf32>
    %347 = tpu.matmul %346, %4, %cst_93 {dimension_numbers = #tpu.dot_dimension_numbers<[1], [0], [0], [1], [0, 0, 1, 1], [], []>} : vector<2x4xf32>, vector<4x384xf32>, vector<2x384xf32> -> vector<2x384xf32>
    %348 = vector.broadcast %5 : vector<1x384xf32> to vector<2x384xf32>
    %349 = arith.addf %347, %348 : vector<2x384xf32>
    %cst_94 = arith.constant dense<0.000000e+00> : vector<2x384xf32>
    %350 = tpu.matmul %337, %6, %cst_94 {dimension_numbers = #tpu.dot_dimension_numbers<[1], [0], [0], [1], [0, 0, 1, 1], [], []>} : vector<2x128xf32>, vector<128x384xf32>, vector<2x384xf32> -> vector<2x384xf32>
    %351 = vector.extract_strided_slice %349 {offsets = [0, 0], sizes = [2, 128], strides = [1, 1]} : vector<2x384xf32> to vector<2x128xf32>
    %352 = vector.extract_strided_slice %350 {offsets = [0, 0], sizes = [2, 128], strides = [1, 1]} : vector<2x384xf32> to vector<2x128xf32>
    %353 = arith.addf %351, %352 : vector<2x128xf32>
    %354 = arith.negf %353 : vector<2x128xf32>
    %355 = math.exp %354 : vector<2x128xf32>
    %cst_95 = arith.constant 1.000000e+00 : f32
    %356 = vector.broadcast %cst_95 : f32 to vector<2x128xf32>
    %357 = arith.addf %356, %355 : vector<2x128xf32>
    %358 = arith.divf %356, %357 : vector<2x128xf32>
    %359 = vector.extract_strided_slice %349 {offsets = [0, 128], sizes = [2, 128], strides = [1, 1]} : vector<2x384xf32> to vector<2x128xf32>
    %360 = vector.extract_strided_slice %350 {offsets = [0, 128], sizes = [2, 128], strides = [1, 1]} : vector<2x384xf32> to vector<2x128xf32>
    %361 = arith.addf %359, %360 : vector<2x128xf32>
    %362 = arith.negf %361 : vector<2x128xf32>
    %363 = math.exp %362 : vector<2x128xf32>
    %cst_96 = arith.constant 1.000000e+00 : f32
    %364 = vector.broadcast %cst_96 : f32 to vector<2x128xf32>
    %365 = arith.addf %364, %363 : vector<2x128xf32>
    %366 = arith.divf %364, %365 : vector<2x128xf32>
    %367 = vector.extract_strided_slice %349 {offsets = [0, 256], sizes = [2, 128], strides = [1, 1]} : vector<2x384xf32> to vector<2x128xf32>
    %368 = vector.extract_strided_slice %350 {offsets = [0, 256], sizes = [2, 128], strides = [1, 1]} : vector<2x384xf32> to vector<2x128xf32>
    %369 = vector.broadcast %7 : vector<1x128xf32> to vector<2x128xf32>
    %370 = arith.addf %368, %369 : vector<2x128xf32>
    %371 = arith.mulf %358, %370 : vector<2x128xf32>
    %372 = arith.addf %367, %371 : vector<2x128xf32>
    %373 = math.tanh %372 : vector<2x128xf32>
    %374 = arith.subf %337, %373 : vector<2x128xf32>
    %375 = arith.mulf %366, %374 : vector<2x128xf32>
    %376 = arith.addf %373, %375 : vector<2x128xf32>
    %cst_97 = arith.constant dense<0.000000e+00> : vector<2x128xf32>
    %377 = tpu.matmul %376, %8, %cst_97 {dimension_numbers = #tpu.dot_dimension_numbers<[1], [0], [0], [1], [0, 0, 1, 1], [], []>} : vector<2x128xf32>, vector<128x128xf32>, vector<2x128xf32> -> vector<2x128xf32>
    %378 = vector.broadcast %9 : vector<1x128xf32> to vector<2x128xf32>
    %379 = arith.addf %377, %378 : vector<2x128xf32>
    %380 = vector.extract_strided_slice %379 {offsets = [0, 0], sizes = [2, 4], strides = [1, 1]} : vector<2x128xf32> to vector<2x4xf32>
    %c0_98 = arith.constant 0 : index
    %c2_99 = arith.constant 2 : index
    %c0_100 = arith.constant 0 : index
    %381 = vector.load %arg12[%c0_98, %c2_99, %c0_100] : memref<2x8x4xf32, #tpu.memory_space<vmem>>, vector<2x1x4xf32>
    %382 = vector.shape_cast %381 : vector<2x1x4xf32> to vector<2x4xf32>
    %383 = vector.shape_cast %380 : vector<2x4xf32> to vector<2x1x4xf32>
    tpu.vector_store %arg12[%c0_98, %c2_99, %c0_100], %383 {strides = array<i32>} : memref<2x8x4xf32, #tpu.memory_space<vmem>>, vector<2x1x4xf32>,
    %c0_101 = arith.constant 0 : index
    %c3_102 = arith.constant 3 : index
    %c0_103 = arith.constant 0 : index
    %384 = vector.load %arg1[%c0_101, %c3_102, %c0_103] : memref<2x8x4xf32, #tpu.memory_space<vmem>>, vector<2x1x4xf32>
    %385 = vector.shape_cast %384 : vector<2x1x4xf32> to vector<2x4xf32>
    %cst_104 = arith.constant dense<0.000000e+00> : vector<2x384xf32>
    %386 = tpu.matmul %385, %4, %cst_104 {dimension_numbers = #tpu.dot_dimension_numbers<[1], [0], [0], [1], [0, 0, 1, 1], [], []>} : vector<2x4xf32>, vector<4x384xf32>, vector<2x384xf32> -> vector<2x384xf32>
    %387 = vector.broadcast %5 : vector<1x384xf32> to vector<2x384xf32>
    %388 = arith.addf %386, %387 : vector<2x384xf32>
    %cst_105 = arith.constant dense<0.000000e+00> : vector<2x384xf32>
    %389 = tpu.matmul %376, %6, %cst_105 {dimension_numbers = #tpu.dot_dimension_numbers<[1], [0], [0], [1], [0, 0, 1, 1], [], []>} : vector<2x128xf32>, vector<128x384xf32>, vector<2x384xf32> -> vector<2x384xf32>
    %390 = vector.extract_strided_slice %388 {offsets = [0, 0], sizes = [2, 128], strides = [1, 1]} : vector<2x384xf32> to vector<2x128xf32>
    %391 = vector.extract_strided_slice %389 {offsets = [0, 0], sizes = [2, 128], strides = [1, 1]} : vector<2x384xf32> to vector<2x128xf32>
    %392 = arith.addf %390, %391 : vector<2x128xf32>
    %393 = arith.negf %392 : vector<2x128xf32>
    %394 = math.exp %393 : vector<2x128xf32>
    %cst_106 = arith.constant 1.000000e+00 : f32
    %395 = vector.broadcast %cst_106 : f32 to vector<2x128xf32>
    %396 = arith.addf %395, %394 : vector<2x128xf32>
    %397 = arith.divf %395, %396 : vector<2x128xf32>
    %398 = vector.extract_strided_slice %388 {offsets = [0, 128], sizes = [2, 128], strides = [1, 1]} : vector<2x384xf32> to vector<2x128xf32>
    %399 = vector.extract_strided_slice %389 {offsets = [0, 128], sizes = [2, 128], strides = [1, 1]} : vector<2x384xf32> to vector<2x128xf32>
    %400 = arith.addf %398, %399 : vector<2x128xf32>
    %401 = arith.negf %400 : vector<2x128xf32>
    %402 = math.exp %401 : vector<2x128xf32>
    %cst_107 = arith.constant 1.000000e+00 : f32
    %403 = vector.broadcast %cst_107 : f32 to vector<2x128xf32>
    %404 = arith.addf %403, %402 : vector<2x128xf32>
    %405 = arith.divf %403, %404 : vector<2x128xf32>
    %406 = vector.extract_strided_slice %388 {offsets = [0, 256], sizes = [2, 128], strides = [1, 1]} : vector<2x384xf32> to vector<2x128xf32>
    %407 = vector.extract_strided_slice %389 {offsets = [0, 256], sizes = [2, 128], strides = [1, 1]} : vector<2x384xf32> to vector<2x128xf32>
    %408 = vector.broadcast %7 : vector<1x128xf32> to vector<2x128xf32>
    %409 = arith.addf %407, %408 : vector<2x128xf32>
    %410 = arith.mulf %397, %409 : vector<2x128xf32>
    %411 = arith.addf %406, %410 : vector<2x128xf32>
    %412 = math.tanh %411 : vector<2x128xf32>
    %413 = arith.subf %376, %412 : vector<2x128xf32>
    %414 = arith.mulf %405, %413 : vector<2x128xf32>
    %415 = arith.addf %412, %414 : vector<2x128xf32>
    %cst_108 = arith.constant dense<0.000000e+00> : vector<2x128xf32>
    %416 = tpu.matmul %415, %8, %cst_108 {dimension_numbers = #tpu.dot_dimension_numbers<[1], [0], [0], [1], [0, 0, 1, 1], [], []>} : vector<2x128xf32>, vector<128x128xf32>, vector<2x128xf32> -> vector<2x128xf32>
    %417 = vector.broadcast %9 : vector<1x128xf32> to vector<2x128xf32>
    %418 = arith.addf %416, %417 : vector<2x128xf32>
    %419 = vector.extract_strided_slice %418 {offsets = [0, 0], sizes = [2, 4], strides = [1, 1]} : vector<2x128xf32> to vector<2x4xf32>
    %c0_109 = arith.constant 0 : index
    %c3_110 = arith.constant 3 : index
    %c0_111 = arith.constant 0 : index
    %420 = vector.load %arg12[%c0_109, %c3_110, %c0_111] : memref<2x8x4xf32, #tpu.memory_space<vmem>>, vector<2x1x4xf32>
    %421 = vector.shape_cast %420 : vector<2x1x4xf32> to vector<2x4xf32>
    %422 = vector.shape_cast %419 : vector<2x4xf32> to vector<2x1x4xf32>
    tpu.vector_store %arg12[%c0_109, %c3_110, %c0_111], %422 {strides = array<i32>} : memref<2x8x4xf32, #tpu.memory_space<vmem>>, vector<2x1x4xf32>,
    %c0_112 = arith.constant 0 : index
    %c4_113 = arith.constant 4 : index
    %c0_114 = arith.constant 0 : index
    %423 = vector.load %arg1[%c0_112, %c4_113, %c0_114] : memref<2x8x4xf32, #tpu.memory_space<vmem>>, vector<2x1x4xf32>
    %424 = vector.shape_cast %423 : vector<2x1x4xf32> to vector<2x4xf32>
    %cst_115 = arith.constant dense<0.000000e+00> : vector<2x384xf32>
    %425 = tpu.matmul %424, %4, %cst_115 {dimension_numbers = #tpu.dot_dimension_numbers<[1], [0], [0], [1], [0, 0, 1, 1], [], []>} : vector<2x4xf32>, vector<4x384xf32>, vector<2x384xf32> -> vector<2x384xf32>
    %426 = vector.broadcast %5 : vector<1x384xf32> to vector<2x384xf32>
    %427 = arith.addf %425, %426 : vector<2x384xf32>
    %cst_116 = arith.constant dense<0.000000e+00> : vector<2x384xf32>
    %428 = tpu.matmul %415, %6, %cst_116 {dimension_numbers = #tpu.dot_dimension_numbers<[1], [0], [0], [1], [0, 0, 1, 1], [], []>} : vector<2x128xf32>, vector<128x384xf32>, vector<2x384xf32> -> vector<2x384xf32>
    %429 = vector.extract_strided_slice %427 {offsets = [0, 0], sizes = [2, 128], strides = [1, 1]} : vector<2x384xf32> to vector<2x128xf32>
    %430 = vector.extract_strided_slice %428 {offsets = [0, 0], sizes = [2, 128], strides = [1, 1]} : vector<2x384xf32> to vector<2x128xf32>
    %431 = arith.addf %429, %430 : vector<2x128xf32>
    %432 = arith.negf %431 : vector<2x128xf32>
    %433 = math.exp %432 : vector<2x128xf32>
    %cst_117 = arith.constant 1.000000e+00 : f32
    %434 = vector.broadcast %cst_117 : f32 to vector<2x128xf32>
    %435 = arith.addf %434, %433 : vector<2x128xf32>
    %436 = arith.divf %434, %435 : vector<2x128xf32>
    %437 = vector.extract_strided_slice %427 {offsets = [0, 128], sizes = [2, 128], strides = [1, 1]} : vector<2x384xf32> to vector<2x128xf32>
    %438 = vector.extract_strided_slice %428 {offsets = [0, 128], sizes = [2, 128], strides = [1, 1]} : vector<2x384xf32> to vector<2x128xf32>
    %439 = arith.addf %437, %438 : vector<2x128xf32>
    %440 = arith.negf %439 : vector<2x128xf32>
    %441 = math.exp %440 : vector<2x128xf32>
    %cst_118 = arith.constant 1.000000e+00 : f32
    %442 = vector.broadcast %cst_118 : f32 to vector<2x128xf32>
    %443 = arith.addf %442, %441 : vector<2x128xf32>
    %444 = arith.divf %442, %443 : vector<2x128xf32>
    %445 = vector.extract_strided_slice %427 {offsets = [0, 256], sizes = [2, 128], strides = [1, 1]} : vector<2x384xf32> to vector<2x128xf32>
    %446 = vector.extract_strided_slice %428 {offsets = [0, 256], sizes = [2, 128], strides = [1, 1]} : vector<2x384xf32> to vector<2x128xf32>
    %447 = vector.broadcast %7 : vector<1x128xf32> to vector<2x128xf32>
    %448 = arith.addf %446, %447 : vector<2x128xf32>
    %449 = arith.mulf %436, %448 : vector<2x128xf32>
    %450 = arith.addf %445, %449 : vector<2x128xf32>
    %451 = math.tanh %450 : vector<2x128xf32>
    %452 = arith.subf %415, %451 : vector<2x128xf32>
    %453 = arith.mulf %444, %452 : vector<2x128xf32>
    %454 = arith.addf %451, %453 : vector<2x128xf32>
    %cst_119 = arith.constant dense<0.000000e+00> : vector<2x128xf32>
    %455 = tpu.matmul %454, %8, %cst_119 {dimension_numbers = #tpu.dot_dimension_numbers<[1], [0], [0], [1], [0, 0, 1, 1], [], []>} : vector<2x128xf32>, vector<128x128xf32>, vector<2x128xf32> -> vector<2x128xf32>
    %456 = vector.broadcast %9 : vector<1x128xf32> to vector<2x128xf32>
    %457 = arith.addf %455, %456 : vector<2x128xf32>
    %458 = vector.extract_strided_slice %457 {offsets = [0, 0], sizes = [2, 4], strides = [1, 1]} : vector<2x128xf32> to vector<2x4xf32>
    %c0_120 = arith.constant 0 : index
    %c4_121 = arith.constant 4 : index
    %c0_122 = arith.constant 0 : index
    %459 = vector.load %arg12[%c0_120, %c4_121, %c0_122] : memref<2x8x4xf32, #tpu.memory_space<vmem>>, vector<2x1x4xf32>
    %460 = vector.shape_cast %459 : vector<2x1x4xf32> to vector<2x4xf32>
    %461 = vector.shape_cast %458 : vector<2x4xf32> to vector<2x1x4xf32>
    tpu.vector_store %arg12[%c0_120, %c4_121, %c0_122], %461 {strides = array<i32>} : memref<2x8x4xf32, #tpu.memory_space<vmem>>, vector<2x1x4xf32>,
    %c0_123 = arith.constant 0 : index
    %c5_124 = arith.constant 5 : index
    %c0_125 = arith.constant 0 : index
    %462 = vector.load %arg1[%c0_123, %c5_124, %c0_125] : memref<2x8x4xf32, #tpu.memory_space<vmem>>, vector<2x1x4xf32>
    %463 = vector.shape_cast %462 : vector<2x1x4xf32> to vector<2x4xf32>
    %cst_126 = arith.constant dense<0.000000e+00> : vector<2x384xf32>
    %464 = tpu.matmul %463, %4, %cst_126 {dimension_numbers = #tpu.dot_dimension_numbers<[1], [0], [0], [1], [0, 0, 1, 1], [], []>} : vector<2x4xf32>, vector<4x384xf32>, vector<2x384xf32> -> vector<2x384xf32>
    %465 = vector.broadcast %5 : vector<1x384xf32> to vector<2x384xf32>
    %466 = arith.addf %464, %465 : vector<2x384xf32>
    %cst_127 = arith.constant dense<0.000000e+00> : vector<2x384xf32>
    %467 = tpu.matmul %454, %6, %cst_127 {dimension_numbers = #tpu.dot_dimension_numbers<[1], [0], [0], [1], [0, 0, 1, 1], [], []>} : vector<2x128xf32>, vector<128x384xf32>, vector<2x384xf32> -> vector<2x384xf32>
    %468 = vector.extract_strided_slice %466 {offsets = [0, 0], sizes = [2, 128], strides = [1, 1]} : vector<2x384xf32> to vector<2x128xf32>
    %469 = vector.extract_strided_slice %467 {offsets = [0, 0], sizes = [2, 128], strides = [1, 1]} : vector<2x384xf32> to vector<2x128xf32>
    %470 = arith.addf %468, %469 : vector<2x128xf32>
    %471 = arith.negf %470 : vector<2x128xf32>
    %472 = math.exp %471 : vector<2x128xf32>
    %cst_128 = arith.constant 1.000000e+00 : f32
    %473 = vector.broadcast %cst_128 : f32 to vector<2x128xf32>
    %474 = arith.addf %473, %472 : vector<2x128xf32>
    %475 = arith.divf %473, %474 : vector<2x128xf32>
    %476 = vector.extract_strided_slice %466 {offsets = [0, 128], sizes = [2, 128], strides = [1, 1]} : vector<2x384xf32> to vector<2x128xf32>
    %477 = vector.extract_strided_slice %467 {offsets = [0, 128], sizes = [2, 128], strides = [1, 1]} : vector<2x384xf32> to vector<2x128xf32>
    %478 = arith.addf %476, %477 : vector<2x128xf32>
    %479 = arith.negf %478 : vector<2x128xf32>
    %480 = math.exp %479 : vector<2x128xf32>
    %cst_129 = arith.constant 1.000000e+00 : f32
    %481 = vector.broadcast %cst_129 : f32 to vector<2x128xf32>
    %482 = arith.addf %481, %480 : vector<2x128xf32>
    %483 = arith.divf %481, %482 : vector<2x128xf32>
    %484 = vector.extract_strided_slice %466 {offsets = [0, 256], sizes = [2, 128], strides = [1, 1]} : vector<2x384xf32> to vector<2x128xf32>
    %485 = vector.extract_strided_slice %467 {offsets = [0, 256], sizes = [2, 128], strides = [1, 1]} : vector<2x384xf32> to vector<2x128xf32>
    %486 = vector.broadcast %7 : vector<1x128xf32> to vector<2x128xf32>
    %487 = arith.addf %485, %486 : vector<2x128xf32>
    %488 = arith.mulf %475, %487 : vector<2x128xf32>
    %489 = arith.addf %484, %488 : vector<2x128xf32>
    %490 = math.tanh %489 : vector<2x128xf32>
    %491 = arith.subf %454, %490 : vector<2x128xf32>
    %492 = arith.mulf %483, %491 : vector<2x128xf32>
    %493 = arith.addf %490, %492 : vector<2x128xf32>
    %cst_130 = arith.constant dense<0.000000e+00> : vector<2x128xf32>
    %494 = tpu.matmul %493, %8, %cst_130 {dimension_numbers = #tpu.dot_dimension_numbers<[1], [0], [0], [1], [0, 0, 1, 1], [], []>} : vector<2x128xf32>, vector<128x128xf32>, vector<2x128xf32> -> vector<2x128xf32>
    %495 = vector.broadcast %9 : vector<1x128xf32> to vector<2x128xf32>
    %496 = arith.addf %494, %495 : vector<2x128xf32>
    %497 = vector.extract_strided_slice %496 {offsets = [0, 0], sizes = [2, 4], strides = [1, 1]} : vector<2x128xf32> to vector<2x4xf32>
    %c0_131 = arith.constant 0 : index
    %c5_132 = arith.constant 5 : index
    %c0_133 = arith.constant 0 : index
    %498 = vector.load %arg12[%c0_131, %c5_132, %c0_133] : memref<2x8x4xf32, #tpu.memory_space<vmem>>, vector<2x1x4xf32>
    %499 = vector.shape_cast %498 : vector<2x1x4xf32> to vector<2x4xf32>
    %500 = vector.shape_cast %497 : vector<2x4xf32> to vector<2x1x4xf32>
    tpu.vector_store %arg12[%c0_131, %c5_132, %c0_133], %500 {strides = array<i32>} : memref<2x8x4xf32, #tpu.memory_space<vmem>>, vector<2x1x4xf32>,
    %c0_134 = arith.constant 0 : index
    %c6_135 = arith.constant 6 : index
    %c0_136 = arith.constant 0 : index
    %501 = vector.load %arg1[%c0_134, %c6_135, %c0_136] : memref<2x8x4xf32, #tpu.memory_space<vmem>>, vector<2x1x4xf32>
    %502 = vector.shape_cast %501 : vector<2x1x4xf32> to vector<2x4xf32>
    %cst_137 = arith.constant dense<0.000000e+00> : vector<2x384xf32>
    %503 = tpu.matmul %502, %4, %cst_137 {dimension_numbers = #tpu.dot_dimension_numbers<[1], [0], [0], [1], [0, 0, 1, 1], [], []>} : vector<2x4xf32>, vector<4x384xf32>, vector<2x384xf32> -> vector<2x384xf32>
    %504 = vector.broadcast %5 : vector<1x384xf32> to vector<2x384xf32>
    %505 = arith.addf %503, %504 : vector<2x384xf32>
    %cst_138 = arith.constant dense<0.000000e+00> : vector<2x384xf32>
    %506 = tpu.matmul %493, %6, %cst_138 {dimension_numbers = #tpu.dot_dimension_numbers<[1], [0], [0], [1], [0, 0, 1, 1], [], []>} : vector<2x128xf32>, vector<128x384xf32>, vector<2x384xf32> -> vector<2x384xf32>
    %507 = vector.extract_strided_slice %505 {offsets = [0, 0], sizes = [2, 128], strides = [1, 1]} : vector<2x384xf32> to vector<2x128xf32>
    %508 = vector.extract_strided_slice %506 {offsets = [0, 0], sizes = [2, 128], strides = [1, 1]} : vector<2x384xf32> to vector<2x128xf32>
    %509 = arith.addf %507, %508 : vector<2x128xf32>
    %510 = arith.negf %509 : vector<2x128xf32>
    %511 = math.exp %510 : vector<2x128xf32>
    %cst_139 = arith.constant 1.000000e+00 : f32
    %512 = vector.broadcast %cst_139 : f32 to vector<2x128xf32>
    %513 = arith.addf %512, %511 : vector<2x128xf32>
    %514 = arith.divf %512, %513 : vector<2x128xf32>
    %515 = vector.extract_strided_slice %505 {offsets = [0, 128], sizes = [2, 128], strides = [1, 1]} : vector<2x384xf32> to vector<2x128xf32>
    %516 = vector.extract_strided_slice %506 {offsets = [0, 128], sizes = [2, 128], strides = [1, 1]} : vector<2x384xf32> to vector<2x128xf32>
    %517 = arith.addf %515, %516 : vector<2x128xf32>
    %518 = arith.negf %517 : vector<2x128xf32>
    %519 = math.exp %518 : vector<2x128xf32>
    %cst_140 = arith.constant 1.000000e+00 : f32
    %520 = vector.broadcast %cst_140 : f32 to vector<2x128xf32>
    %521 = arith.addf %520, %519 : vector<2x128xf32>
    %522 = arith.divf %520, %521 : vector<2x128xf32>
    %523 = vector.extract_strided_slice %505 {offsets = [0, 256], sizes = [2, 128], strides = [1, 1]} : vector<2x384xf32> to vector<2x128xf32>
    %524 = vector.extract_strided_slice %506 {offsets = [0, 256], sizes = [2, 128], strides = [1, 1]} : vector<2x384xf32> to vector<2x128xf32>
    %525 = vector.broadcast %7 : vector<1x128xf32> to vector<2x128xf32>
    %526 = arith.addf %524, %525 : vector<2x128xf32>
    %527 = arith.mulf %514, %526 : vector<2x128xf32>
    %528 = arith.addf %523, %527 : vector<2x128xf32>
    %529 = math.tanh %528 : vector<2x128xf32>
    %530 = arith.subf %493, %529 : vector<2x128xf32>
    %531 = arith.mulf %522, %530 : vector<2x128xf32>
    %532 = arith.addf %529, %531 : vector<2x128xf32>
    %cst_141 = arith.constant dense<0.000000e+00> : vector<2x128xf32>
    %533 = tpu.matmul %532, %8, %cst_141 {dimension_numbers = #tpu.dot_dimension_numbers<[1], [0], [0], [1], [0, 0, 1, 1], [], []>} : vector<2x128xf32>, vector<128x128xf32>, vector<2x128xf32> -> vector<2x128xf32>
    %534 = vector.broadcast %9 : vector<1x128xf32> to vector<2x128xf32>
    %535 = arith.addf %533, %534 : vector<2x128xf32>
    %536 = vector.extract_strided_slice %535 {offsets = [0, 0], sizes = [2, 4], strides = [1, 1]} : vector<2x128xf32> to vector<2x4xf32>
    %c0_142 = arith.constant 0 : index
    %c6_143 = arith.constant 6 : index
    %c0_144 = arith.constant 0 : index
    %537 = vector.load %arg12[%c0_142, %c6_143, %c0_144] : memref<2x8x4xf32, #tpu.memory_space<vmem>>, vector<2x1x4xf32>
    %538 = vector.shape_cast %537 : vector<2x1x4xf32> to vector<2x4xf32>
    %539 = vector.shape_cast %536 : vector<2x4xf32> to vector<2x1x4xf32>
    tpu.vector_store %arg12[%c0_142, %c6_143, %c0_144], %539 {strides = array<i32>} : memref<2x8x4xf32, #tpu.memory_space<vmem>>, vector<2x1x4xf32>,
    %c0_145 = arith.constant 0 : index
    %c7_146 = arith.constant 7 : index
    %c0_147 = arith.constant 0 : index
    %540 = vector.load %arg1[%c0_145, %c7_146, %c0_147] : memref<2x8x4xf32, #tpu.memory_space<vmem>>, vector<2x1x4xf32>
    %541 = vector.shape_cast %540 : vector<2x1x4xf32> to vector<2x4xf32>
    %cst_148 = arith.constant dense<0.000000e+00> : vector<2x384xf32>
    %542 = tpu.matmul %541, %4, %cst_148 {dimension_numbers = #tpu.dot_dimension_numbers<[1], [0], [0], [1], [0, 0, 1, 1], [], []>} : vector<2x4xf32>, vector<4x384xf32>, vector<2x384xf32> -> vector<2x384xf32>
    %543 = vector.broadcast %5 : vector<1x384xf32> to vector<2x384xf32>
    %544 = arith.addf %542, %543 : vector<2x384xf32>
    %cst_149 = arith.constant dense<0.000000e+00> : vector<2x384xf32>
    %545 = tpu.matmul %532, %6, %cst_149 {dimension_numbers = #tpu.dot_dimension_numbers<[1], [0], [0], [1], [0, 0, 1, 1], [], []>} : vector<2x128xf32>, vector<128x384xf32>, vector<2x384xf32> -> vector<2x384xf32>
    %546 = vector.extract_strided_slice %544 {offsets = [0, 0], sizes = [2, 128], strides = [1, 1]} : vector<2x384xf32> to vector<2x128xf32>
    %547 = vector.extract_strided_slice %545 {offsets = [0, 0], sizes = [2, 128], strides = [1, 1]} : vector<2x384xf32> to vector<2x128xf32>
    %548 = arith.addf %546, %547 : vector<2x128xf32>
    %549 = arith.negf %548 : vector<2x128xf32>
    %550 = math.exp %549 : vector<2x128xf32>
    %cst_150 = arith.constant 1.000000e+00 : f32
    %551 = vector.broadcast %cst_150 : f32 to vector<2x128xf32>
    %552 = arith.addf %551, %550 : vector<2x128xf32>
    %553 = arith.divf %551, %552 : vector<2x128xf32>
    %554 = vector.extract_strided_slice %544 {offsets = [0, 128], sizes = [2, 128], strides = [1, 1]} : vector<2x384xf32> to vector<2x128xf32>
    %555 = vector.extract_strided_slice %545 {offsets = [0, 128], sizes = [2, 128], strides = [1, 1]} : vector<2x384xf32> to vector<2x128xf32>
    %556 = arith.addf %554, %555 : vector<2x128xf32>
    %557 = arith.negf %556 : vector<2x128xf32>
    %558 = math.exp %557 : vector<2x128xf32>
    %cst_151 = arith.constant 1.000000e+00 : f32
    %559 = vector.broadcast %cst_151 : f32 to vector<2x128xf32>
    %560 = arith.addf %559, %558 : vector<2x128xf32>
    %561 = arith.divf %559, %560 : vector<2x128xf32>
    %562 = vector.extract_strided_slice %544 {offsets = [0, 256], sizes = [2, 128], strides = [1, 1]} : vector<2x384xf32> to vector<2x128xf32>
    %563 = vector.extract_strided_slice %545 {offsets = [0, 256], sizes = [2, 128], strides = [1, 1]} : vector<2x384xf32> to vector<2x128xf32>
    %564 = vector.broadcast %7 : vector<1x128xf32> to vector<2x128xf32>
    %565 = arith.addf %563, %564 : vector<2x128xf32>
    %566 = arith.mulf %553, %565 : vector<2x128xf32>
    %567 = arith.addf %562, %566 : vector<2x128xf32>
    %568 = math.tanh %567 : vector<2x128xf32>
    %569 = arith.subf %532, %568 : vector<2x128xf32>
    %570 = arith.mulf %561, %569 : vector<2x128xf32>
    %571 = arith.addf %568, %570 : vector<2x128xf32>
    %cst_152 = arith.constant dense<0.000000e+00> : vector<2x128xf32>
    %572 = tpu.matmul %571, %8, %cst_152 {dimension_numbers = #tpu.dot_dimension_numbers<[1], [0], [0], [1], [0, 0, 1, 1], [], []>} : vector<2x128xf32>, vector<128x128xf32>, vector<2x128xf32> -> vector<2x128xf32>
    %573 = vector.broadcast %9 : vector<1x128xf32> to vector<2x128xf32>
    %574 = arith.addf %572, %573 : vector<2x128xf32>
    %575 = vector.extract_strided_slice %574 {offsets = [0, 0], sizes = [2, 4], strides = [1, 1]} : vector<2x128xf32> to vector<2x4xf32>
    %c0_153 = arith.constant 0 : index
    %c7_154 = arith.constant 7 : index
    %c0_155 = arith.constant 0 : index
    %576 = vector.load %arg12[%c0_153, %c7_154, %c0_155] : memref<2x8x4xf32, #tpu.memory_space<vmem>>, vector<2x1x4xf32>
    %577 = vector.shape_cast %576 : vector<2x1x4xf32> to vector<2x4xf32>
    %578 = vector.shape_cast %575 : vector<2x4xf32> to vector<2x1x4xf32>
    tpu.vector_store %arg12[%c0_153, %c7_154, %c0_155], %578 {strides = array<i32>} : memref<2x8x4xf32, #tpu.memory_space<vmem>>, vector<2x1x4xf32>,
    return
  }
}

</mosaic_0001>

<bundles_post_ra>
// kernel: seq2seq_forward.1
= control target key start
LH: loop header
LB: loop body
LE: loop exit
PB: predicated region body
PF: predicated region fallthrough
CT: control target
= control target key end

     0   :  { %17 = vsyncpa [#allocation3], 0  ;;  %s10509_s0 = inlined_call_operand.vmem [shape: f32[2,8,4], index: 0, kind: input, shape index: {}]   ;;  %s10510_s1 = inlined_call_operand.vmem [shape: f32[2,8,4], index: 1, kind: input, shape index: {}]   ;;  %s10511_s2 = inlined_call_operand.vmem [shape: f32[4,384], index: 2, kind: input, shape index: {}]   ;;  %s10512_s3 = inlined_call_operand.hbm [shape: f32[128,384], index: 3, kind: input, shape index: {}]   ;;  %s10513_s4 = inlined_call_operand.vmem [shape: f32[1,384], index: 4, kind: input, shape index: {}]   ;;  %s10514_s5 = inlined_call_operand.vmem [shape: f32[1,128], index: 5, kind: input, shape index: {}]   ;;  %s10515_s6 = inlined_call_operand.vmem [shape: f32[4,384], index: 6, kind: input, shape index: {}]   ;;  %s10516_s7 = inlined_call_operand.hbm [shape: f32[128,384], index: 7, kind: input, shape index: {}]   ;;  %s10517_s8 = inlined_call_operand.vmem [shape: f32[1,384], index: 8, kind: input, shape index: {}]   ;;  %s10518_s9 = inlined_call_operand.vmem [shape: f32[1,128], index: 9, kind: input, shape index: {}]   ;;  %s10519_s10 = inlined_call_operand.hbm [shape: f32[128,128], index: 10, kind: input, shape index: {}]   ;;  %s10520_s11 = inlined_call_operand.vmem [shape: f32[1,128], index: 11, kind: input, shape index: {}]   ;;  %s10521_s12 = inlined_call_operand.vmem [shape: f32[2,8,4], index: 12, kind: output, shape index: {}]  }
   0x1   :  { %18 = vsyncpa [#allocation5], 0  ;;  %s8910_s21 = smov [#allocation4]   ;;  %s8911_s23 = smov [#allocation2]  }
   0x2   :  { %s48_s22 = sshll.u32 %s8910_s21, 4  ;;  %s30_s24 = sshll.u32 %s8911_s23, 4  ;;  %s49_s22 = int_to_ptr.vmem [resolvable:$true] %s48_s22  ;;  %s8986_s24 = int_to_ptr.vmem [resolvable:$true] %s30_s24 }
   0x3   :  { %s8840_s27 = scalar_lea.hbm %s10516_s7, 6144 }
   0x4   :  { %p8841_p0 = scmp.ne.s32.totalorder %s10516_s7, %s8840_s27  ;;  %p8844_p1 = scmp.lt.u32.totalorder %s8840_s27, %s10516_s7 }
   0x6   :  { %p8846_p2 = pnand %p8844_p1, %p8841_p0 }
   0x8   :  { %8849 = shalt.err (!%p8846_p2)
}
   0x9   :  { %s8850_s14 = scalar_lea.vmem %s49_s22, 6144  ;;  %p8855_p4 = scmp.lt.s32.totalorder %s49_s22, %s49_s22 }
   0xa   :  { %p8851_p3 = scmp.ne.s32.totalorder %s49_s22, %s8850_s14  ;;  %p8856_p5 = scmp.lt.s32.totalorder %s8850_s14, %s8850_s14 }
   0xc   :  { %p8857_p6 = por %p8856_p5, %p8855_p4 }
   0xe   :  { %p8858_p7 = pnand %p8857_p6, %p8851_p3 }
  0x10   :  { %8861 = shalt.err (!%p8858_p7)
}
  0x11   :  { %s8912_s15 = smov 384   ;;  %s8913_s16 = smov 24  }
  0x12   :  { %54 = dma.hbm_to_vmem [thread:$0]  %s10516_s7, 6144, %s49_s22, [#allocation5], %s8912_s15, %s8912_s15, %s8913_s16  }
  0x13   :  { %s8862_s21 = scalar_lea.hbm %s10512_s3, 6144 }
  0x14   :  { %p8863_p8 = scmp.ne.s32.totalorder %s10512_s3, %s8862_s21  ;;  %p8866_p9 = scmp.lt.u32.totalorder %s8862_s21, %s10512_s3 }
  0x16   :  { %p8868_p10 = pnand %p8866_p9, %p8863_p8 }
  0x18   :  { %8871 = shalt.err (!%p8868_p10)
}
  0x19   :  { %s8872_s28 = scalar_lea.vmem %s8986_s24, 6144  ;;  %p8877_p12 = scmp.lt.s32.totalorder %s8986_s24, %s8986_s24 }
  0x1a   :  { %p8873_p11 = scmp.ne.s32.totalorder %s8986_s24, %s8872_s28  ;;  %p8878_p13 = scmp.lt.s32.totalorder %s8872_s28, %s8872_s28 }
  0x1c   :  { %p8879_p0 = por %p8878_p13, %p8877_p12 }
  0x1e   :  { %p8880_p1 = pnand %p8879_p0, %p8873_p11 }
  0x20   :  { %8883 = shalt.err (!%p8880_p1)
}
  0x21   :  { %36 = dma.hbm_to_vmem [thread:$0]  %s10512_s3, 6144, %s8986_s24, [#allocation3], %s8912_s15, %s8912_s15, %s8913_s16  }
  0x22   :  { %s8914_s29 = smov [#allocation6]   ;;  %s8884_s17 = scalar_lea.hbm %s10519_s10, 2048 }
  0x23   :  { %s64_s30 = sshll.u32 %s8914_s29, 4  ;;  %p8885_p2 = scmp.ne.s32.totalorder %s10519_s10, %s8884_s17  ;;  %s65_s30 = int_to_ptr.vmem [resolvable:$true] %s64_s30 }
  0x24   :  { %p8888_p3 = scmp.lt.u32.totalorder %s8884_s17, %s10519_s10 }
  0x26   :  { %p8890_p4 = pnand %p8888_p3, %p8885_p2 }
  0x28   :  { %8893 = shalt.err (!%p8890_p4)
}
  0x29   :  { %s8894_s23 = scalar_lea.vmem %s65_s30, 2048  ;;  %p8899_p6 = scmp.lt.s32.totalorder %s65_s30, %s65_s30 }
  0x2a   :  { %p8895_p5 = scmp.ne.s32.totalorder %s65_s30, %s8894_s23  ;;  %p8900_p7 = scmp.lt.s32.totalorder %s8894_s23, %s8894_s23 }
  0x2c   :  { %p8901_p8 = por %p8900_p7, %p8899_p6 }
  0x2e   :  { %p8902_p9 = pnand %p8901_p8, %p8895_p5 }
  0x30   :  { %8905 = shalt.err (!%p8902_p9)
}
  0x31   :  { %s8915_s3 = smov 128   ;;  %s8916_s24 = smov 8  }
  0x32   :  { %70 = dma.hbm_to_vmem [thread:$0]  %s10519_s10, 2048, %s65_s30, [#allocation5], %s8915_s3, %s8915_s3, %s8916_s24  }
  0x33   :  { %8906 = dma.done.wait [#allocation3], 6144  }
  0x34   :  { %8907 = vsyncadd [#allocation3], 4294961152 }
  0x35   :  { %8908 = dma.done.wait [#allocation5], 8192  }
  0x36   :  { %8909 = vsyncadd [#allocation5], 4294959104  ;;  %v8917_v0 = vmov 0.0   ;;  %vm8918_vm0 = vmmov 0   ;;  %v9036_v1 = vld [vmem:[%s10511_s2] sm:$0xff]  ;;  %vm232_vm1 = vcmask 1043456  }
  0x37   :  { %303 = vmatprep.mubr.f32.mxu0 %v8917_v0  ;;  %6588 = vmatprep.subr.mxu1 %v8917_v0  ;;  %v86_v2 = vld [vmem:[#allocation2 + $0x8] sm:$0xff]  ;;  %v89_v3 = vld [vmem:[#allocation2 + $0x20] sm:$0xff]  ;;  %v9040_v4 = vcombine.high %v9036_v1, %v9036_v1  ;;  %vm224_vm2 = vcmask 1041409   ;;  %vm229_vm3 = vcmask 31744   ;;  %v88_v10 = vld [vmem:[#allocation2 + $0x18] sm:$0xff]  ;;  %v8919_v32 = vmov 0.0|0.0  }
  0x38   :  { %6590 = vmatprep.mubr.msk.f32.mxu1 %vm8918_vm0, %v8917_v0  ;;  %v9042_v5 = vpack.c.bf16 %v89_v3, %v86_v2  ;;  %v203_v6 = vld [vmem:[%s10509_s0] sm:$0x1]  ;;  %v204_v7 = vld [vmem:[%s10509_s0 + $0x8] sm:$0x1]  ;;  %v92_v11 = vld [vmem:[#allocation2 + $0x38] sm:$0xff]  ;;  %vm3168_vm4 = vcmask 24576  }
  0x39   :  { %v85_v8 = vld [vmem:[#allocation2] sm:$0xff]  ;;  %v223_v9 = vrot.slane %v204_v7, 7  ;;  %v95_v12 = vld [vmem:[#allocation2 + $0x50] sm:$0xff]  ;;  %6033 = vmatprep.subr.msk.mxu0 %vm232_vm1, %v9040_v4  ;;  %v94_v16 = vld [vmem:[#allocation2 + $0x48] sm:$0xff] }
  0x3a   :  { %v9052_v13 = vpack.c.bf16 %v88_v10, %v85_v8  ;;  %v9054_v14 = vpack.c.bf16 %v95_v12, %v92_v11  ;;  %v91_v15 = vld [vmem:[#allocation2 + $0x30] sm:$0xff]  ;;  %6034 = vmatpush1.msk.msra.mxu0 %vm232_vm1, %v9036_v1  ;;  %v98_v18 = vld [vmem:[#allocation2 + $0x68] sm:$0xff]  ;;  %v101_v19 = vld [vmem:[#allocation2 + $0x80] sm:$0xff] }
  0x3b   :  { %v225_v17 = vsel %vm224_vm2, %v223_v9, %v203_v6  ;;  %7509 = vmatprep.subr.bf16.mxu0 %v9042_v5  ;;  %v9062_v20 = vpack.c.bf16 %v94_v16, %v91_v15  ;;  %v9066_v21 = vpack.c.bf16 %v101_v19, %v98_v18  ;;  %v97_v22 = vld [vmem:[#allocation2 + $0x60] sm:$0xff]  ;;  %v100_v23 = vld [vmem:[#allocation2 + $0x78] sm:$0xff]  ;;  %v107_v25 = vld [vmem:[#allocation2 + $0xb0] sm:$0xff] }
  0x3c   :  { %6035 = vmatmul.mubr.msk.f32.vlgmr.msra.gmra.mrb[0].mxu0 %vm229_vm3, %v225_v17  ;;  %v104_v24 = vld [vmem:[#allocation2 + $0x98] sm:$0xff]  ;;  %v9071_v26 = vld [vmem:[%s10511_s2 + $0x8] sm:$0xf]  ;;  %v9074_v27 = vpack.c.bf16 %v100_v23, %v97_v22  ;;  %v87_v28 = vld [vmem:[#allocation2 + $0x10] sm:$0xff] }
  0x3d   :  { %7511 = vmatpush1.bf16.msra.mxu0 %v9052_v13  ;;  %444 = vmatprep.mubr.f32.mxu0 %v8917_v0  ;;  %v9079_v29 = vpack.c.bf16 %v107_v25, %v104_v24  ;;  %v103_v30 = vld [vmem:[#allocation2 + $0x90] sm:$0xff]  ;;  %v106_v31 = vld [vmem:[#allocation2 + $0xa8] sm:$0xff]  ;;  %v113_v35 = vld [vmem:[#allocation2 + $0xe0] sm:$0xff] }
  0x3e   :  { %7513 = vmatprep.subr.bf16.mxu0 %v9054_v14  ;;  %6589 = vmatpush3.msk.msra.mxu1 %vm232_vm1, %v9071_v26  ;;  %v90_v33 = vld [vmem:[#allocation2 + $0x28] sm:$0xff]  ;;  %v93_v37 = vld [vmem:[#allocation2 + $0x40] sm:$0xff]  ;;  %v96_v38 = vld [vmem:[#allocation2 + $0x58] sm:$0xff]  ;;  %v9088_v39 = vpack.c.bf16 %v106_v31, %v103_v30 }
  0x3f   :  { %7540 = vmatprep.subr.bf16.mxu1 %v8919_v32  ;;  %v110_v34 = vld [vmem:[#allocation2 + $0xc8] sm:$0xff]  ;;  %6591 = vmatmul.mubr.msk.f32.vlgmr.msra.gmra.mrb[0].mxu1 %vm229_vm3, %v225_v17  ;;  %v9083_v36 = vpack.c.bf16 %v90_v33, %v87_v28  ;;  %v109_v40 = vld [vmem:[#allocation2 + $0xc0] sm:$0xff]  ;;  %v9091_v41 = vpack.c.bf16 %v96_v38, %v93_v37  ;;  %v112_v43 = vld [vmem:[#allocation2 + $0xd8] sm:$0xff] }
  0x40   :  { %6625 = vmatprep.mubr.msk.f32.mxu1 %vm8918_vm0, %v8917_v0  ;;  %v9094_v42 = vpack.c.bf16 %v113_v35, %v110_v34  ;;  %v99_v44 = vld [vmem:[#allocation2 + $0x70] sm:$0xff]  ;;  %v102_v45 = vld [vmem:[#allocation2 + $0x88] sm:$0xff]  ;;  %v116_v46 = vld [vmem:[#allocation2 + $0xf8] sm:$0xff]  ;;  %v9098_v48 = vpack.c.bf16 %v112_v43, %v109_v40  ;;  %v206_v35 = vlaneseq }
  0x41   :  { %7515 = vmatpush1.bf16.msra.mxu0 %v9062_v20  ;;  %7542 = vmatpush3.bf16.msra.mxu1 %v9083_v36  ;;  %v119_v47 = vld [vmem:[#allocation2 + $0x110] sm:$0xff]  ;;  %v9101_v50 = vpack.c.bf16 %v102_v45, %v99_v44  ;;  %v118_v52 = vld [vmem:[#allocation2 + $0x108] sm:$0xff]  ;;  %v105_v53 = vld [vmem:[#allocation2 + $0xa0] sm:$0xff] }
  0x42   :  { %7517 = vmatprep.subr.bf16.mxu0 %v9066_v21  ;;  %7543 = vmatprep.subr.bf16.mxu1 %v8919_v32  ;;  %v115_v49 = vld [vmem:[#allocation2 + $0xf0] sm:$0xff]  ;;  %v9104_v51 = vpack.c.bf16 %v119_v47, %v116_v46  ;;  %v108_v54 = vld [vmem:[#allocation2 + $0xb8] sm:$0xff]  ;;  %v122_v55 = vld [vmem:[#allocation2 + $0x128] sm:$0xff]  ;;  %v9204_v37 = vshrl.u32 %v206_v35, 7 }
  0x43   :  { %v125_v56 = vld [vmem:[#allocation2 + $0x140] sm:$0xff]  ;;  %v9108_v57 = vpack.c.bf16 %v118_v52, %v115_v49  ;;  %v9111_v59 = vpack.c.bf16 %v108_v54, %v105_v53  ;;  %v124_v61 = vld [vmem:[#allocation2 + $0x138] sm:$0xff]  ;;  %v111_v62 = vld [vmem:[#allocation2 + $0xd0] sm:$0xff] }
  0x44   :  { %v121_v58 = vld [vmem:[#allocation2 + $0x120] sm:$0xff]  ;;  %v9114_v60 = vpack.c.bf16 %v125_v56, %v122_v55  ;;  %v114_v63 = vld [vmem:[#allocation2 + $0xe8] sm:$0xff]  ;;  %v128_v2 = vld [vmem:[#allocation2 + $0x158] sm:$0xff]  ;;  %v208_v38 = vsub.s32 0, %v9204_v37  ;;  %v212_v46 = vsub.s32 1, %v9204_v37 }
  0x45   :  { %7519 = vmatpush1.bf16.msra.mxu0 %v9074_v27  ;;  %7545 = vmatpush3.bf16.msra.mxu1 %v9091_v41  ;;  %v131_v3 = vld [vmem:[#allocation2 + $0x170] sm:$0xff]  ;;  %v9118_v6 = vpack.c.bf16 %v124_v61, %v121_v58  ;;  %v9121_v8 = vpack.c.bf16 %v114_v63, %v111_v62  ;;  %v130_v10 = vld [vmem:[#allocation2 + $0x168] sm:$0xff]  ;;  %v117_v11 = vld [vmem:[#allocation2 + $0x100] sm:$0xff]  ;;  %v216_v62 = vsub.s32 2, %v9204_v37 }
  0x46   :  { %7521 = vmatprep.subr.bf16.mxu0 %v9079_v29  ;;  %7546 = vmatprep.subr.bf16.mxu1 %v8919_v32  ;;  %v127_v7 = vld [vmem:[#allocation2 + $0x150] sm:$0xff]  ;;  %v9124_v9 = vpack.c.bf16 %v131_v3, %v128_v2  ;;  %v120_v12 = vld [vmem:[#allocation2 + $0x118] sm:$0xff]  ;;  %v126_v18 = vld [vmem:[#allocation2 + $0x148] sm:$0xff] }
  0x47   :  { %v9128_v15 = vpack.c.bf16 %v130_v10, %v127_v7  ;;  %v9131_v16 = vpack.c.bf16 %v120_v12, %v117_v11  ;;  %v123_v17 = vld [vmem:[#allocation2 + $0x130] sm:$0xff]  ;;  %v129_v22 = vld [vmem:[#allocation2 + $0x160] sm:$0xff]  ;;  %v132_v23 = vld [vmem:[#allocation2 + $0x178] sm:$0xff] }
  0x48   :  { %v9137_v19 = vpack.c.bf16 %v126_v18, %v123_v17  ;;  %v9144_v24 = vpack.c.bf16 %v132_v23, %v129_v22  ;;  %v549_v25 = vld [vmem:[%s10509_s0 + $0x9] sm:$0x1]  ;;  %v548_v30 = vld [vmem:[%s10509_s0 + $0x1] sm:$0x1]  ;;  %v9225_v63 = vld [vmem:[%s10514_s5] ss:$0 sm:$0xff] }
  0x49   :  { %7523 = vmatpush1.bf16.msra.mxu0 %v9088_v39  ;;  %7548 = vmatpush3.bf16.msra.mxu1 %v9101_v50  ;;  %v552_v28 = vrot.slane %v549_v25, 7  ;;  %v84_v40 = vld [vmem:[%s10513_s4] sm:$0x7] }
  0x4a   :  { %7525 = vmatprep.subr.bf16.mxu0 %v9094_v42  ;;  %7549 = vmatprep.subr.bf16.mxu1 %v8919_v32  ;;  %v9212_v43 = vrot.slane %v84_v40, %v208_v38  ;;  %v9218_v52 = vrot.slane %v84_v40, %v212_v46  ;;  %v9229_v2 = vrot.slane %v84_v40, %v216_v62  ;;  %v859_v40 = vld [vmem:[%s10509_s0 + $0x2] sm:$0x1] }
  0x4b   :  { %v553_v31 = vsel %vm224_vm2, %v552_v28, %v548_v30 }
  0x4d   :  { %7527 = vmatpush1.bf16.msra.mxu0 %v9098_v48  ;;  %7551 = vmatpush3.bf16.msra.mxu1 %v9111_v59 }
  0x4e   :  { %7529 = vmatprep.subr.bf16.mxu0 %v9104_v51  ;;  %7552 = vmatprep.subr.bf16.mxu1 %v8919_v32 }
  0x51   :  { %7531 = vmatpush1.bf16.msra.mxu0 %v9108_v57  ;;  %7554 = vmatpush3.bf16.msra.mxu1 %v9121_v8 }
  0x52   :  { %7533 = vmatprep.subr.bf16.mxu0 %v9114_v60  ;;  %7555 = vmatprep.subr.bf16.mxu1 %v8919_v32 }
  0x55   :  { %7535 = vmatpush1.bf16.msra.mxu0 %v9118_v6  ;;  %7557 = vmatpush3.bf16.msra.mxu1 %v9131_v16 }
  0x56   :  { %7537 = vmatprep.subr.bf16.mxu0 %v9124_v9  ;;  %7558 = vmatprep.subr.bf16.mxu1 %v8919_v32 }
  0x59   :  { %7539 = vmatpush1.bf16.msra.mxu0 %v9128_v15  ;;  %7560 = vmatpush3.bf16.msra.mxu1 %v9137_v19 }
  0x5a   :  { %6041 = vmatprep.subr.msk.mxu0 %vm232_vm1, %v9040_v4  ;;  %7561 = vmatprep.subr.bf16.mxu1 %v8919_v32 }
  0x5c   :  { %445 = vmatmul.mubr.f32.vlgmr.msra.gmra.mrb[0].mxu0 %v8917_v0 }
  0x5d   :  { %6042 = vmatpush1.msk.msra.mxu0 %vm232_vm1, %v9036_v1  ;;  %620 = vmatprep.mubr.f32.mxu0 %v8917_v0 }
  0x5e   :  { %6628 = vmatprep.subr.mxu0 %v8917_v0  ;;  %7563 = vmatpush3.bf16.msra.mxu1 %v9144_v24 }
  0x5f   :  { %7596 = vmatprep.subr.bf16.mxu1 %v8919_v32 }
  0x60   :  { %6043 = vmatmul.mubr.msk.f32.vlgmr.msra.gmra.mrb[2].mxu0 %vm229_vm3, %v553_v31 }
  0x61   :  { %6626 = vmatmul.mubr.f32.vlgmr.msra.gmra.mrb[2].mxu1 %v8917_v0  ;;  %6629 = vmatpush3.msk.msra.mxu0 %vm232_vm1, %v9071_v26 }
  0x62   :  { %7598 = vmatpush3.bf16.msra.mxu1 %v9083_v36  ;;  %6665 = vmatprep.mubr.msk.f32.mxu1 %vm8918_vm0, %v8917_v0 }
  0x63   :  { %7599 = vmatprep.subr.bf16.mxu1 %v8919_v32  ;;  %6630 = vmatprep.mubr.msk.f32.mxu0 %vm8918_vm0, %v8917_v0 }
  0x64   :  { %7565 = vmatprep.subr.bf16.mxu0 %v9042_v5  ;;  %6631 = vmatmul.mubr.msk.f32.vlgmr.msra.gmra.mrb[4].mxu0 %vm229_vm3, %v553_v31 }
  0x65   :  { %7567 = vmatpush1.bf16.msra.mxu0 %v9052_v13  ;;  %761 = vmatprep.mubr.f32.mxu0 %v8917_v0 }
  0x66   :  { %7601 = vmatpush3.bf16.msra.mxu1 %v9091_v41  ;;  %7569 = vmatprep.subr.bf16.mxu0 %v9054_v14 }
  0x67   :  { %7602 = vmatprep.subr.bf16.mxu1 %v8919_v32 }
  0x69   :  { %7571 = vmatpush1.bf16.msra.mxu0 %v9062_v20 }
  0x6a   :  { %7604 = vmatpush3.bf16.msra.mxu1 %v9101_v50  ;;  %7573 = vmatprep.subr.bf16.mxu0 %v9066_v21 }
  0x6b   :  { %7605 = vmatprep.subr.bf16.mxu1 %v8919_v32 }
  0x6d   :  { %7575 = vmatpush1.bf16.msra.mxu0 %v9074_v27 }
  0x6e   :  { %7607 = vmatpush3.bf16.msra.mxu1 %v9111_v59  ;;  %7577 = vmatprep.subr.bf16.mxu0 %v9079_v29 }
  0x6f   :  { %7608 = vmatprep.subr.bf16.mxu1 %v8919_v32 }
  0x71   :  { %7579 = vmatpush1.bf16.msra.mxu0 %v9088_v39 }
  0x72   :  { %7610 = vmatpush3.bf16.msra.mxu1 %v9121_v8  ;;  %7581 = vmatprep.subr.bf16.mxu0 %v9094_v42 }
  0x73   :  { %7611 = vmatprep.subr.bf16.mxu1 %v8919_v32 }
  0x75   :  { %7583 = vmatpush1.bf16.msra.mxu0 %v9098_v48 }
  0x76   :  { %7613 = vmatpush3.bf16.msra.mxu1 %v9131_v16  ;;  %7585 = vmatprep.subr.bf16.mxu0 %v9104_v51 }
  0x77   :  { %7614 = vmatprep.subr.bf16.mxu1 %v8919_v32 }
  0x79   :  { %7587 = vmatpush1.bf16.msra.mxu0 %v9108_v57 }
  0x7a   :  { %7616 = vmatpush3.bf16.msra.mxu1 %v9137_v19  ;;  %7589 = vmatprep.subr.bf16.mxu0 %v9114_v60 }
  0x7b   :  { %7617 = vmatprep.subr.bf16.mxu1 %v8919_v32 }
  0x7d   :  { %7591 = vmatpush1.bf16.msra.mxu0 %v9118_v6 }
  0x7e   :  { %7619 = vmatpush3.bf16.msra.mxu1 %v9144_v24  ;;  %7593 = vmatprep.subr.bf16.mxu0 %v9124_v9 }
  0x7f   :  { %6668 = vmatprep.subr.mxu1 %v8917_v0 }
  0x81   :  { %7595 = vmatpush1.bf16.msra.mxu0 %v9128_v15 }
  0x82   :  { %6048 = vmatprep.subr.msk.mxu0 %vm232_vm1, %v9040_v4 }
 0x112   :  { %v376_v33 = vpop.f32.mrb[0].mxu1 }
 0x113   :  { %v6592_v34 = vpop.f32.mrb[1].mxu1  ;;  %v377_v11 = vadd.f32 %v376_v33, %v9229_v2 }
 0x114   :  { %v860_v34 = vld [vmem:[%s10509_s0 + $0xa] sm:$0x1] }
 0x115   :  { %v863_v35 = vrot.slane %v860_v34, 7 }
 0x12f   :  { %v446_v44 = vpop.f32.mrb[0].mxu0 }
 0x130   :  { %v8596_v45 = vadd.f32 %v446_v44, %v9212_v43  ;;  %v448_v47 = vpop.f32.mrb[1].mxu0  ;;  %v864_v44 = vsel %vm224_vm2, %v863_v35, %v859_v40  ;;  %v1171_v35 = vld [vmem:[%s10509_s0 + $0xb] sm:$0x1] }
 0x131   :  { %v8597_v54 = vadd.f32 %v448_v47, %v9218_v52  ;;  %v1174_v40 = vrot.slane %v1171_v35, 7 }
 0x132   :  { %v6038_v49 = vmul.f32 -1.442695, %v8596_v45 }
 0x133   :  { %v6039_v56 = vmul.f32 -1.442695, %v8597_v54 }
 0x134   :  { %8673 = vpow2.f32 %v6038_v49  ;;  %v517_v53 = vpop.f32.mrb[2].mxu1 }
 0x135   :  { %v6627_v55 = vpop.f32.mrb[3].mxu1  ;;  %8675 = vpow2.f32 %v6039_v56  ;;  %v541_v3 = vadd.f32 %v9225_v63, %v517_v53 }
 0x137   :  { %v693_v31 = vpop.f32.mrb[4].mxu0 }
 0x138   :  { %v6632_v33 = vpop.f32.mrb[5].mxu0 }
 0x13e   :  { %v8674_v58 = vpop.eup %8673 }
 0x13f   :  { %v525_v61 = vadd.f32 1.0, %v8674_v58  ;;  %v8676_v7 = vpop.eup %8675 }
 0x140   :  { %v532_v17 = vadd.f32 1.0, %v8676_v7 }
 0x141   :  { %8677 = vrcp.f32 %v525_v61 }
 0x14b   :  { %v8678_v10 = vpop.eup %8677 }
 0x14c   :  { %v542_v12 = vmul.f32 %v8678_v10, %v541_v3 }
 0x14e   :  { %v543_v18 = vadd.f32 %v542_v12, %v377_v11  ;;  %v694_v12 = vadd.f32 %v693_v31, %v9229_v2 }
 0x150   :  { %8679 = vtanh.f32 %v543_v18 }
 0x151   :  { %8681 = vrcp.f32 %v532_v17 }
 0x15a   :  { %v8680_v22 = vpop.eup %8679 }
 0x15b   :  { %v545_v23 = vsub.f32 0.0, %v8680_v22  ;;  %v8682_v25 = vpop.eup %8681 }
 0x15d   :  { %v546_v28 = vmul.f32 %v8682_v25, %v545_v23 }
 0x15f   :  { %v9233_v30 = vadd.f32 %v8680_v22, %v546_v28 }
 0x161   :  { %762 = vmatmul.mubr.f32.vlgmr.msra.gmra.mrb[2].mxu0 %v9233_v30  ;;  %6666 = vmatmul.mubr.f32.vlgmr.msra.gmra.mrb[4].mxu1 %v9233_v30 }
 0x162   :  { %6049 = vmatpush1.msk.msra.mxu0 %vm232_vm1, %v9036_v1  ;;  %6669 = vmatpush3.msk.msra.mxu1 %vm232_vm1, %v9071_v26 }
 0x163   :  { %931 = vmatprep.mubr.f32.mxu0 %v8917_v0  ;;  %6670 = vmatprep.mubr.msk.f32.mxu1 %vm8918_vm0, %v8917_v0 }
 0x164   :  { %7621 = vmatprep.subr.bf16.mxu0 %v9042_v5  ;;  %7652 = vmatprep.subr.bf16.mxu1 %v8919_v32 }
 0x165   :  { %6050 = vmatmul.mubr.msk.f32.vlgmr.msra.gmra.mrb[6].mxu0 %vm229_vm3, %v864_v44  ;;  %6671 = vmatmul.mubr.msk.f32.vlgmr.msra.gmra.mrb[6].mxu1 %vm229_vm3, %v864_v44  ;;  %v1170_v44 = vld [vmem:[%s10509_s0 + $0x3] sm:$0x1] }
 0x166   :  { %7623 = vmatpush1.bf16.msra.mxu0 %v9052_v13  ;;  %7654 = vmatpush3.bf16.msra.mxu1 %v9083_v36 }
 0x167   :  { %7625 = vmatprep.subr.bf16.mxu0 %v9054_v14  ;;  %7655 = vmatprep.subr.bf16.mxu1 %v8919_v32 }
 0x168   :  { %1072 = vmatprep.mubr.f32.mxu0 %v8917_v0  ;;  %6705 = vmatprep.mubr.msk.f32.mxu1 %vm8918_vm0, %v8917_v0 }
 0x16a   :  { %7627 = vmatpush1.bf16.msra.mxu0 %v9062_v20  ;;  %7657 = vmatpush3.bf16.msra.mxu1 %v9091_v41 }
 0x16b   :  { %7629 = vmatprep.subr.bf16.mxu0 %v9066_v21  ;;  %7658 = vmatprep.subr.bf16.mxu1 %v8919_v32 }
 0x16e   :  { %7631 = vmatpush1.bf16.msra.mxu0 %v9074_v27  ;;  %7660 = vmatpush3.bf16.msra.mxu1 %v9101_v50 }
 0x16f   :  { %7633 = vmatprep.subr.bf16.mxu0 %v9079_v29  ;;  %7661 = vmatprep.subr.bf16.mxu1 %v8919_v32 }
 0x172   :  { %7635 = vmatpush1.bf16.msra.mxu0 %v9088_v39  ;;  %7663 = vmatpush3.bf16.msra.mxu1 %v9111_v59 }
 0x173   :  { %7637 = vmatprep.subr.bf16.mxu0 %v9094_v42  ;;  %7664 = vmatprep.subr.bf16.mxu1 %v8919_v32 }
 0x176   :  { %7639 = vmatpush1.bf16.msra.mxu0 %v9098_v48  ;;  %7666 = vmatpush3.bf16.msra.mxu1 %v9121_v8 }
 0x177   :  { %7641 = vmatprep.subr.bf16.mxu0 %v9104_v51  ;;  %7667 = vmatprep.subr.bf16.mxu1 %v8919_v32 }
 0x17a   :  { %7643 = vmatpush1.bf16.msra.mxu0 %v9108_v57  ;;  %7669 = vmatpush3.bf16.msra.mxu1 %v9131_v16 }
 0x17b   :  { %7645 = vmatprep.subr.bf16.mxu0 %v9114_v60  ;;  %7670 = vmatprep.subr.bf16.mxu1 %v8919_v32 }
 0x17e   :  { %7647 = vmatpush1.bf16.msra.mxu0 %v9118_v6  ;;  %7672 = vmatpush3.bf16.msra.mxu1 %v9137_v19 }
 0x17f   :  { %7649 = vmatprep.subr.bf16.mxu0 %v9124_v9  ;;  %7673 = vmatprep.subr.bf16.mxu1 %v8919_v32 }
 0x182   :  { %7651 = vmatpush1.bf16.msra.mxu0 %v9128_v15  ;;  %7675 = vmatpush3.bf16.msra.mxu1 %v9144_v24 }
 0x183   :  { %6055 = vmatprep.subr.msk.mxu0 %vm232_vm1, %v9040_v4  ;;  %6708 = vmatprep.subr.mxu1 %v8917_v0 }
 0x234   :  { %v763_v45 = vpop.f32.mrb[2].mxu0  ;;  %v834_v47 = vpop.f32.mrb[4].mxu1 }
 0x235   :  { %v8598_v49 = vadd.f32 %v763_v45, %v9212_v43  ;;  %v765_v53 = vpop.f32.mrb[3].mxu0  ;;  %v6667_v54 = vpop.f32.mrb[5].mxu1  ;;  %v852_v10 = vadd.f32 %v9225_v63, %v834_v47  ;;  %v1175_v45 = vsel %vm224_vm2, %v1174_v40, %v1170_v44  ;;  %v1482_v40 = vld [vmem:[%s10509_s0 + $0xc] sm:$0x1] }
 0x236   :  { %v8599_v56 = vadd.f32 %v765_v53, %v9218_v52  ;;  %v1485_v44 = vrot.slane %v1482_v40, 7 }
 0x237   :  { %v6046_v55 = vmul.f32 -1.442695, %v8598_v49 }
 0x238   :  { %v6047_v58 = vmul.f32 -1.442695, %v8599_v56 }
 0x239   :  { %8683 = vpow2.f32 %v6046_v55 }
 0x23a   :  { %8685 = vpow2.f32 %v6047_v58 }
 0x243   :  { %v8684_v61 = vpop.eup %8683 }
 0x244   :  { %v842_v3 = vadd.f32 1.0, %v8684_v61  ;;  %v8686_v7 = vpop.eup %8685 }
 0x245   :  { %v849_v22 = vadd.f32 1.0, %v8686_v7 }
 0x246   :  { %8687 = vrcp.f32 %v842_v3 }
 0x250   :  { %v8688_v11 = vpop.eup %8687 }
 0x251   :  { %v853_v17 = vmul.f32 %v8688_v11, %v852_v10 }
 0x253   :  { %v854_v18 = vadd.f32 %v853_v17, %v694_v12 }
 0x255   :  { %8689 = vtanh.f32 %v854_v18 }
 0x256   :  { %8691 = vrcp.f32 %v849_v22 }
 0x25f   :  { %v8690_v23 = vpop.eup %8689 }
 0x260   :  { %v856_v25 = vsub.f32 %v9233_v30, %v8690_v23  ;;  %v8692_v28 = vpop.eup %8691  ;;  %v1004_v30 = vpop.f32.mrb[6].mxu1 }
 0x261   :  { %v6672_v31 = vpop.f32.mrb[7].mxu1  ;;  %v1005_v17 = vadd.f32 %v1004_v30, %v9229_v2 }
 0x262   :  { %v857_v33 = vmul.f32 %v8692_v28, %v856_v25 }
 0x264   :  { %v9296_v34 = vadd.f32 %v8690_v23, %v857_v33 }
 0x266   :  { %1073 = vmatmul.mubr.f32.vlgmr.msra.gmra.mrb[6].mxu0 %v9296_v34  ;;  %6706 = vmatmul.mubr.f32.vlgmr.msra.gmra.mrb[8].mxu1 %v9296_v34 }
 0x267   :  { %6056 = vmatpush1.msk.msra.mxu0 %vm232_vm1, %v9036_v1  ;;  %6709 = vmatpush3.msk.msra.mxu1 %vm232_vm1, %v9071_v26 }
 0x268   :  { %1242 = vmatprep.mubr.f32.mxu0 %v8917_v0  ;;  %6710 = vmatprep.mubr.msk.f32.mxu1 %vm8918_vm0, %v8917_v0 }
 0x269   :  { %7677 = vmatprep.subr.bf16.mxu0 %v9042_v5  ;;  %7708 = vmatprep.subr.bf16.mxu1 %v8919_v32 }
 0x26a   :  { %6057 = vmatmul.mubr.msk.f32.vlgmr.msra.gmra.mrb[8].mxu0 %vm229_vm3, %v1175_v45  ;;  %6711 = vmatmul.mubr.msk.f32.vlgmr.msra.gmra.mrb[10].mxu1 %vm229_vm3, %v1175_v45  ;;  %v1481_v45 = vld [vmem:[%s10509_s0 + $0x4] sm:$0x1] }
 0x26b   :  { %7679 = vmatpush1.bf16.msra.mxu0 %v9052_v13  ;;  %7710 = vmatpush3.bf16.msra.mxu1 %v9083_v36 }
 0x26c   :  { %7681 = vmatprep.subr.bf16.mxu0 %v9054_v14  ;;  %7711 = vmatprep.subr.bf16.mxu1 %v8919_v32 }
 0x26d   :  { %1383 = vmatprep.mubr.f32.mxu0 %v8917_v0  ;;  %6745 = vmatprep.mubr.msk.f32.mxu1 %vm8918_vm0, %v8917_v0 }
 0x26f   :  { %7683 = vmatpush1.bf16.msra.mxu0 %v9062_v20  ;;  %7713 = vmatpush3.bf16.msra.mxu1 %v9091_v41 }
 0x270   :  { %7685 = vmatprep.subr.bf16.mxu0 %v9066_v21  ;;  %7714 = vmatprep.subr.bf16.mxu1 %v8919_v32 }
 0x273   :  { %7687 = vmatpush1.bf16.msra.mxu0 %v9074_v27  ;;  %7716 = vmatpush3.bf16.msra.mxu1 %v9101_v50 }
 0x274   :  { %7689 = vmatprep.subr.bf16.mxu0 %v9079_v29  ;;  %7717 = vmatprep.subr.bf16.mxu1 %v8919_v32 }
 0x277   :  { %7691 = vmatpush1.bf16.msra.mxu0 %v9088_v39  ;;  %7719 = vmatpush3.bf16.msra.mxu1 %v9111_v59 }
 0x278   :  { %7693 = vmatprep.subr.bf16.mxu0 %v9094_v42  ;;  %7720 = vmatprep.subr.bf16.mxu1 %v8919_v32 }
 0x27b   :  { %7695 = vmatpush1.bf16.msra.mxu0 %v9098_v48  ;;  %7722 = vmatpush3.bf16.msra.mxu1 %v9121_v8 }
 0x27c   :  { %7697 = vmatprep.subr.bf16.mxu0 %v9104_v51  ;;  %7723 = vmatprep.subr.bf16.mxu1 %v8919_v32 }
 0x27f   :  { %7699 = vmatpush1.bf16.msra.mxu0 %v9108_v57  ;;  %7725 = vmatpush3.bf16.msra.mxu1 %v9131_v16 }
 0x280   :  { %7701 = vmatprep.subr.bf16.mxu0 %v9114_v60  ;;  %7726 = vmatprep.subr.bf16.mxu1 %v8919_v32 }
 0x283   :  { %7703 = vmatpush1.bf16.msra.mxu0 %v9118_v6  ;;  %7728 = vmatpush3.bf16.msra.mxu1 %v9137_v19 }
 0x284   :  { %7705 = vmatprep.subr.bf16.mxu0 %v9124_v9  ;;  %7729 = vmatprep.subr.bf16.mxu1 %v8919_v32 }
 0x287   :  { %7707 = vmatpush1.bf16.msra.mxu0 %v9128_v15  ;;  %7731 = vmatpush3.bf16.msra.mxu1 %v9144_v24 }
 0x288   :  { %6062 = vmatprep.subr.msk.mxu0 %vm232_vm1, %v9040_v4  ;;  %6748 = vmatprep.subr.mxu1 %v8917_v0 }
 0x339   :  { %v1074_v47 = vpop.f32.mrb[6].mxu0  ;;  %v1145_v49 = vpop.f32.mrb[8].mxu1 }
 0x33a   :  { %v8600_v53 = vadd.f32 %v1074_v47, %v9212_v43  ;;  %v1076_v54 = vpop.f32.mrb[7].mxu0  ;;  %v6707_v55 = vpop.f32.mrb[9].mxu1  ;;  %v1163_v11 = vadd.f32 %v9225_v63, %v1145_v49  ;;  %v1486_v47 = vsel %vm224_vm2, %v1485_v44, %v1481_v45  ;;  %v1793_v44 = vld [vmem:[%s10509_s0 + $0xd] sm:$0x1] }
 0x33b   :  { %v8601_v58 = vadd.f32 %v1076_v54, %v9218_v52  ;;  %v1796_v45 = vrot.slane %v1793_v44, 7 }
 0x33c   :  { %v6053_v56 = vmul.f32 -1.442695, %v8600_v53 }
 0x33d   :  { %v6054_v61 = vmul.f32 -1.442695, %v8601_v58 }
 0x33e   :  { %8693 = vpow2.f32 %v6053_v56 }
 0x33f   :  { %8695 = vpow2.f32 %v6054_v61 }
 0x348   :  { %v8694_v3 = vpop.eup %8693 }
 0x349   :  { %v1153_v7 = vadd.f32 1.0, %v8694_v3  ;;  %v8696_v10 = vpop.eup %8695 }
 0x34a   :  { %v1160_v23 = vadd.f32 1.0, %v8696_v10 }
 0x34b   :  { %8697 = vrcp.f32 %v1153_v7 }
 0x355   :  { %v8698_v12 = vpop.eup %8697 }
 0x356   :  { %v1164_v18 = vmul.f32 %v8698_v12, %v1163_v11 }
 0x358   :  { %v1165_v22 = vadd.f32 %v1164_v18, %v1005_v17 }
 0x35a   :  { %8699 = vtanh.f32 %v1165_v22 }
 0x35b   :  { %8701 = vrcp.f32 %v1160_v23 }
 0x364   :  { %v8700_v25 = vpop.eup %8699 }
 0x365   :  { %v1167_v28 = vsub.f32 %v9296_v34, %v8700_v25  ;;  %v8702_v33 = vpop.eup %8701  ;;  %v1315_v34 = vpop.f32.mrb[10].mxu1 }
 0x366   :  { %v6712_v30 = vpop.f32.mrb[11].mxu1  ;;  %v1316_v18 = vadd.f32 %v1315_v34, %v9229_v2 }
 0x367   :  { %v1168_v31 = vmul.f32 %v8702_v33, %v1167_v28 }
 0x369   :  { %v9359_v35 = vadd.f32 %v8700_v25, %v1168_v31 }
 0x36b   :  { %1384 = vmatmul.mubr.f32.vlgmr.msra.gmra.mrb[8].mxu0 %v9359_v35  ;;  %6746 = vmatmul.mubr.f32.vlgmr.msra.gmra.mrb[12].mxu1 %v9359_v35 }
 0x36c   :  { %6063 = vmatpush1.msk.msra.mxu0 %vm232_vm1, %v9036_v1  ;;  %6749 = vmatpush3.msk.msra.mxu1 %vm232_vm1, %v9071_v26 }
 0x36d   :  { %1553 = vmatprep.mubr.f32.mxu0 %v8917_v0  ;;  %6750 = vmatprep.mubr.msk.f32.mxu1 %vm8918_vm0, %v8917_v0 }
 0x36e   :  { %7733 = vmatprep.subr.bf16.mxu0 %v9042_v5  ;;  %7764 = vmatprep.subr.bf16.mxu1 %v8919_v32 }
 0x36f   :  { %6064 = vmatmul.mubr.msk.f32.vlgmr.msra.gmra.mrb[10].mxu0 %vm229_vm3, %v1486_v47  ;;  %6751 = vmatmul.mubr.msk.f32.vlgmr.msra.gmra.mrb[14].mxu1 %vm229_vm3, %v1486_v47 }
 0x370   :  { %7735 = vmatpush1.bf16.msra.mxu0 %v9052_v13  ;;  %7766 = vmatpush3.bf16.msra.mxu1 %v9083_v36 }
 0x371   :  { %7737 = vmatprep.subr.bf16.mxu0 %v9054_v14  ;;  %7767 = vmatprep.subr.bf16.mxu1 %v8919_v32 }
 0x372   :  { %1694 = vmatprep.mubr.f32.mxu0 %v8917_v0  ;;  %6785 = vmatprep.mubr.msk.f32.mxu1 %vm8918_vm0, %v8917_v0 }
 0x374   :  { %7739 = vmatpush1.bf16.msra.mxu0 %v9062_v20  ;;  %7769 = vmatpush3.bf16.msra.mxu1 %v9091_v41 }
 0x375   :  { %7741 = vmatprep.subr.bf16.mxu0 %v9066_v21  ;;  %7770 = vmatprep.subr.bf16.mxu1 %v8919_v32 }
 0x378   :  { %7743 = vmatpush1.bf16.msra.mxu0 %v9074_v27  ;;  %7772 = vmatpush3.bf16.msra.mxu1 %v9101_v50 }
 0x379   :  { %7745 = vmatprep.subr.bf16.mxu0 %v9079_v29  ;;  %7773 = vmatprep.subr.bf16.mxu1 %v8919_v32 }
 0x37c   :  { %7747 = vmatpush1.bf16.msra.mxu0 %v9088_v39  ;;  %7775 = vmatpush3.bf16.msra.mxu1 %v9111_v59 }
 0x37d   :  { %7749 = vmatprep.subr.bf16.mxu0 %v9094_v42  ;;  %7776 = vmatprep.subr.bf16.mxu1 %v8919_v32 }
 0x380   :  { %7751 = vmatpush1.bf16.msra.mxu0 %v9098_v48  ;;  %7778 = vmatpush3.bf16.msra.mxu1 %v9121_v8 }
 0x381   :  { %7753 = vmatprep.subr.bf16.mxu0 %v9104_v51  ;;  %7779 = vmatprep.subr.bf16.mxu1 %v8919_v32 }
 0x384   :  { %7755 = vmatpush1.bf16.msra.mxu0 %v9108_v57  ;;  %7781 = vmatpush3.bf16.msra.mxu1 %v9131_v16 }
 0x385   :  { %7757 = vmatprep.subr.bf16.mxu0 %v9114_v60  ;;  %7782 = vmatprep.subr.bf16.mxu1 %v8919_v32 }
 0x388   :  { %7759 = vmatpush1.bf16.msra.mxu0 %v9118_v6  ;;  %7784 = vmatpush3.bf16.msra.mxu1 %v9137_v19 }
 0x389   :  { %7761 = vmatprep.subr.bf16.mxu0 %v9124_v9  ;;  %7785 = vmatprep.subr.bf16.mxu1 %v8919_v32 }
 0x38c   :  { %7763 = vmatpush1.bf16.msra.mxu0 %v9128_v15  ;;  %7787 = vmatpush3.bf16.msra.mxu1 %v9144_v24 }
 0x38d   :  { %6069 = vmatprep.subr.msk.mxu0 %vm232_vm1, %v9040_v4  ;;  %6788 = vmatprep.subr.mxu1 %v8917_v0 }
 0x43e   :  { %v1385_v49 = vpop.f32.mrb[8].mxu0  ;;  %v1456_v53 = vpop.f32.mrb[12].mxu1 }
 0x43f   :  { %v8602_v54 = vadd.f32 %v1385_v49, %v9212_v43  ;;  %v1387_v55 = vpop.f32.mrb[9].mxu0  ;;  %v6747_v56 = vpop.f32.mrb[13].mxu1  ;;  %v1474_v12 = vadd.f32 %v9225_v63, %v1456_v53 }
 0x440   :  { %v8603_v61 = vadd.f32 %v1387_v55, %v9218_v52 }
 0x441   :  { %v6060_v58 = vmul.f32 -1.442695, %v8602_v54 }
 0x442   :  { %v6061_v3 = vmul.f32 -1.442695, %v8603_v61 }
 0x443   :  { %8703 = vpow2.f32 %v6060_v58 }
 0x444   :  { %8705 = vpow2.f32 %v6061_v3 }
 0x44d   :  { %v8704_v7 = vpop.eup %8703 }
 0x44e   :  { %v1464_v10 = vadd.f32 1.0, %v8704_v7  ;;  %v8706_v11 = vpop.eup %8705 }
 0x44f   :  { %v1471_v25 = vadd.f32 1.0, %v8706_v11 }
 0x450   :  { %8707 = vrcp.f32 %v1464_v10 }
 0x45a   :  { %v8708_v17 = vpop.eup %8707 }
 0x45b   :  { %v1475_v22 = vmul.f32 %v8708_v17, %v1474_v12 }
 0x45d   :  { %v1476_v23 = vadd.f32 %v1475_v22, %v1316_v18 }
 0x45f   :  { %8709 = vtanh.f32 %v1476_v23 }
 0x460   :  { %8711 = vrcp.f32 %v1471_v25 }
 0x469   :  { %v8710_v28 = vpop.eup %8709 }
 0x46a   :  { %v1478_v33 = vsub.f32 %v9359_v35, %v8710_v28  ;;  %v8712_v31 = vpop.eup %8711  ;;  %v1626_v35 = vpop.f32.mrb[14].mxu1 }
 0x46b   :  { %v6752_v34 = vpop.f32.mrb[15].mxu1  ;;  %v1627_v18 = vadd.f32 %v1626_v35, %v9229_v2  ;;  %v9492_v35 = vld [vmem:[%s10511_s2] sm:$0xff] }
 0x46c   :  { %v1479_v30 = vmul.f32 %v8712_v31, %v1478_v33 }
 0x46e   :  { %v9422_v40 = vadd.f32 %v8710_v28, %v1479_v30 }
 0x470   :  { %1695 = vmatmul.mubr.f32.vlgmr.msra.gmra.mrb[10].mxu0 %v9422_v40  ;;  %6786 = vmatmul.mubr.f32.vlgmr.msra.gmra.mrb[16].mxu1 %v9422_v40 }
 0x471   :  { %6070 = vmatpush1.msk.msra.mxu0 %vm232_vm1, %v9036_v1  ;;  %6789 = vmatpush3.msk.msra.mxu1 %vm232_vm1, %v9071_v26  ;;  %v1792_v1 = vld [vmem:[%s10509_s0 + $0x5] sm:$0x1] }
 0x472   :  { %1864 = vmatprep.mubr.f32.mxu0 %v8917_v0  ;;  %6790 = vmatprep.mubr.msk.f32.mxu1 %vm8918_vm0, %v8917_v0  ;;  %v1797_v47 = vsel %vm224_vm2, %v1796_v45, %v1792_v1  ;;  %v2104_v45 = vld [vmem:[%s10509_s0 + $0xe] sm:$0x1] }
 0x473   :  { %7789 = vmatprep.subr.bf16.mxu0 %v9042_v5  ;;  %7820 = vmatprep.subr.bf16.mxu1 %v8919_v32  ;;  %v2107_v1 = vrot.slane %v2104_v45, 7 }
 0x474   :  { %6071 = vmatmul.mubr.msk.f32.vlgmr.msra.gmra.mrb[12].mxu0 %vm229_vm3, %v1797_v47  ;;  %6791 = vmatmul.mubr.msk.f32.vlgmr.msra.gmra.mrb[18].mxu1 %vm229_vm3, %v1797_v47 }
 0x475   :  { %7791 = vmatpush1.bf16.msra.mxu0 %v9052_v13  ;;  %7822 = vmatpush3.bf16.msra.mxu1 %v9083_v36 }
 0x476   :  { %7793 = vmatprep.subr.bf16.mxu0 %v9054_v14  ;;  %7823 = vmatprep.subr.bf16.mxu1 %v8919_v32 }
 0x477   :  { %2005 = vmatprep.mubr.f32.mxu0 %v8917_v0  ;;  %6825 = vmatprep.mubr.msk.f32.mxu1 %vm8918_vm0, %v8917_v0 }
 0x479   :  { %7795 = vmatpush1.bf16.msra.mxu0 %v9062_v20  ;;  %7825 = vmatpush3.bf16.msra.mxu1 %v9091_v41 }
 0x47a   :  { %7797 = vmatprep.subr.bf16.mxu0 %v9066_v21  ;;  %7826 = vmatprep.subr.bf16.mxu1 %v8919_v32 }
 0x47d   :  { %7799 = vmatpush1.bf16.msra.mxu0 %v9074_v27  ;;  %7828 = vmatpush3.bf16.msra.mxu1 %v9101_v50 }
 0x47e   :  { %7801 = vmatprep.subr.bf16.mxu0 %v9079_v29  ;;  %7829 = vmatprep.subr.bf16.mxu1 %v8919_v32 }
 0x481   :  { %7803 = vmatpush1.bf16.msra.mxu0 %v9088_v39  ;;  %7831 = vmatpush3.bf16.msra.mxu1 %v9111_v59 }
 0x482   :  { %7805 = vmatprep.subr.bf16.mxu0 %v9094_v42  ;;  %7832 = vmatprep.subr.bf16.mxu1 %v8919_v32 }
 0x485   :  { %7807 = vmatpush1.bf16.msra.mxu0 %v9098_v48  ;;  %7834 = vmatpush3.bf16.msra.mxu1 %v9121_v8 }
 0x486   :  { %7809 = vmatprep.subr.bf16.mxu0 %v9104_v51  ;;  %7835 = vmatprep.subr.bf16.mxu1 %v8919_v32 }
 0x489   :  { %7811 = vmatpush1.bf16.msra.mxu0 %v9108_v57  ;;  %7837 = vmatpush3.bf16.msra.mxu1 %v9131_v16 }
 0x48a   :  { %7813 = vmatprep.subr.bf16.mxu0 %v9114_v60  ;;  %7838 = vmatprep.subr.bf16.mxu1 %v8919_v32 }
 0x48d   :  { %7815 = vmatpush1.bf16.msra.mxu0 %v9118_v6  ;;  %7840 = vmatpush3.bf16.msra.mxu1 %v9137_v19 }
 0x48e   :  { %7817 = vmatprep.subr.bf16.mxu0 %v9124_v9  ;;  %7841 = vmatprep.subr.bf16.mxu1 %v8919_v32 }
 0x491   :  { %7819 = vmatpush1.bf16.msra.mxu0 %v9128_v15  ;;  %7843 = vmatpush3.bf16.msra.mxu1 %v9144_v24 }
 0x492   :  { %6076 = vmatprep.subr.msk.mxu0 %vm232_vm1, %v9040_v4  ;;  %6828 = vmatprep.subr.mxu1 %v8917_v0 }
 0x543   :  { %v1696_v49 = vpop.f32.mrb[10].mxu0  ;;  %v1767_v53 = vpop.f32.mrb[16].mxu1 }
 0x544   :  { %v8604_v54 = vadd.f32 %v1696_v49, %v9212_v43  ;;  %v1698_v55 = vpop.f32.mrb[11].mxu0  ;;  %v6787_v56 = vpop.f32.mrb[17].mxu1  ;;  %v1785_v12 = vadd.f32 %v9225_v63, %v1767_v53 }
 0x545   :  { %v8605_v61 = vadd.f32 %v1698_v55, %v9218_v52 }
 0x546   :  { %v6067_v58 = vmul.f32 -1.442695, %v8604_v54 }
 0x547   :  { %v6068_v3 = vmul.f32 -1.442695, %v8605_v61 }
 0x548   :  { %8713 = vpow2.f32 %v6067_v58 }
 0x549   :  { %8715 = vpow2.f32 %v6068_v3 }
 0x552   :  { %v8714_v7 = vpop.eup %8713 }
 0x553   :  { %v1775_v10 = vadd.f32 1.0, %v8714_v7  ;;  %v8716_v11 = vpop.eup %8715 }
 0x554   :  { %v1782_v25 = vadd.f32 1.0, %v8716_v11 }
 0x555   :  { %8717 = vrcp.f32 %v1775_v10 }
 0x55f   :  { %v8718_v17 = vpop.eup %8717 }
 0x560   :  { %v1786_v22 = vmul.f32 %v8718_v17, %v1785_v12 }
 0x562   :  { %v1787_v23 = vadd.f32 %v1786_v22, %v1627_v18 }
 0x564   :  { %8719 = vtanh.f32 %v1787_v23 }
 0x565   :  { %8721 = vrcp.f32 %v1782_v25 }
 0x56e   :  { %v8720_v28 = vpop.eup %8719 }
 0x56f   :  { %v1789_v33 = vsub.f32 %v9422_v40, %v8720_v28  ;;  %v8722_v31 = vpop.eup %8721  ;;  %v1937_v40 = vpop.f32.mrb[18].mxu1 }
 0x570   :  { %v6792_v44 = vpop.f32.mrb[19].mxu1  ;;  %v1938_v17 = vadd.f32 %v1937_v40, %v9229_v2  ;;  %v8834_v40 = vld [vmem:[%s10511_s2 + $0x8] sm:$0xf] }
 0x571   :  { %v1790_v30 = vmul.f32 %v8722_v31, %v1789_v33 }
 0x573   :  { %v9485_v34 = vadd.f32 %v8720_v28, %v1790_v30 }
 0x575   :  { %2006 = vmatmul.mubr.f32.vlgmr.msra.gmra.mrb[12].mxu0 %v9485_v34  ;;  %6826 = vmatmul.mubr.f32.vlgmr.msra.gmra.mrb[20].mxu1 %v9485_v34 }
 0x576   :  { %6077 = vmatpush1.msk.msra.mxu0 %vm232_vm1, %v9492_v35  ;;  %6829 = vmatpush3.msk.msra.mxu1 %vm232_vm1, %v9071_v26  ;;  %v2103_v26 = vld [vmem:[%s10509_s0 + $0x6] sm:$0x1] }
 0x577   :  { %2175 = vmatprep.mubr.f32.mxu0 %v8917_v0  ;;  %6830 = vmatprep.mubr.msk.f32.mxu1 %vm8918_vm0, %v8917_v0  ;;  %v2108_v47 = vsel %vm224_vm2, %v2107_v1, %v2103_v26  ;;  %v2414_v1 = vld [vmem:[%s10509_s0 + $0x7] sm:$0x1] }
 0x578   :  { %7845 = vmatprep.subr.bf16.mxu0 %v9042_v5  ;;  %7876 = vmatprep.subr.bf16.mxu1 %v8919_v32 }
 0x579   :  { %6078 = vmatmul.mubr.msk.f32.vlgmr.msra.gmra.mrb[14].mxu0 %vm229_vm3, %v2108_v47  ;;  %6831 = vmatmul.mubr.msk.f32.vlgmr.msra.gmra.mrb[22].mxu1 %vm229_vm3, %v2108_v47 }
 0x57a   :  { %7847 = vmatpush1.bf16.msra.mxu0 %v9052_v13  ;;  %7878 = vmatpush3.bf16.msra.mxu1 %v9083_v36 }
 0x57b   :  { %7849 = vmatprep.subr.bf16.mxu0 %v9054_v14  ;;  %7879 = vmatprep.subr.bf16.mxu1 %v8919_v32 }
 0x57c   :  { %2316 = vmatprep.mubr.f32.mxu0 %v8917_v0  ;;  %6865 = vmatprep.mubr.msk.f32.mxu1 %vm8918_vm0, %v8917_v0 }
 0x57e   :  { %7851 = vmatpush1.bf16.msra.mxu0 %v9062_v20  ;;  %7881 = vmatpush3.bf16.msra.mxu1 %v9091_v41 }
 0x57f   :  { %7853 = vmatprep.subr.bf16.mxu0 %v9066_v21  ;;  %7882 = vmatprep.subr.bf16.mxu1 %v8919_v32 }
 0x582   :  { %7855 = vmatpush1.bf16.msra.mxu0 %v9074_v27  ;;  %7884 = vmatpush3.bf16.msra.mxu1 %v9101_v50 }
 0x583   :  { %7857 = vmatprep.subr.bf16.mxu0 %v9079_v29  ;;  %7885 = vmatprep.subr.bf16.mxu1 %v8919_v32 }
 0x586   :  { %7859 = vmatpush1.bf16.msra.mxu0 %v9088_v39  ;;  %7887 = vmatpush3.bf16.msra.mxu1 %v9111_v59 }
 0x587   :  { %7861 = vmatprep.subr.bf16.mxu0 %v9094_v42  ;;  %7888 = vmatprep.subr.bf16.mxu1 %v8919_v32 }
 0x58a   :  { %7863 = vmatpush1.bf16.msra.mxu0 %v9098_v48  ;;  %7890 = vmatpush3.bf16.msra.mxu1 %v9121_v8 }
 0x58b   :  { %7865 = vmatprep.subr.bf16.mxu0 %v9104_v51  ;;  %7891 = vmatprep.subr.bf16.mxu1 %v8919_v32 }
 0x58e   :  { %7867 = vmatpush1.bf16.msra.mxu0 %v9108_v57  ;;  %7893 = vmatpush3.bf16.msra.mxu1 %v9131_v16 }
 0x58f   :  { %7869 = vmatprep.subr.bf16.mxu0 %v9114_v60  ;;  %7894 = vmatprep.subr.bf16.mxu1 %v8919_v32 }
 0x592   :  { %7871 = vmatpush1.bf16.msra.mxu0 %v9118_v6  ;;  %7896 = vmatpush3.bf16.msra.mxu1 %v9137_v19 }
 0x593   :  { %7873 = vmatprep.subr.bf16.mxu0 %v9124_v9  ;;  %7897 = vmatprep.subr.bf16.mxu1 %v8919_v32 }
 0x596   :  { %7875 = vmatpush1.bf16.msra.mxu0 %v9128_v15  ;;  %7899 = vmatpush3.bf16.msra.mxu1 %v9144_v24 }
 0x597   :  { %6083 = vmatprep.subr.msk.mxu0 %vm232_vm1, %v9040_v4  ;;  %6868 = vmatprep.subr.mxu1 %v8917_v0 }
 0x648   :  { %v2007_v49 = vpop.f32.mrb[12].mxu0  ;;  %v2078_v53 = vpop.f32.mrb[20].mxu1 }
 0x649   :  { %v8606_v54 = vadd.f32 %v2007_v49, %v9212_v43  ;;  %v2009_v55 = vpop.f32.mrb[13].mxu0  ;;  %v6827_v56 = vpop.f32.mrb[21].mxu1  ;;  %v2096_v4 = vadd.f32 %v9225_v63, %v2078_v53  ;;  %v138_v49 = vld [vmem:[#allocation4 + $0x8] sm:$0xff]  ;;  %v141_v53 = vld [vmem:[#allocation4 + $0x20] sm:$0xff] }
 0x64a   :  { %v8607_v61 = vadd.f32 %v2009_v55, %v9218_v52  ;;  %v9642_v55 = vld [vmem:[%s10515_s6 + $0x8] sm:$0xf]  ;;  %v9644_v56 = vpack.c.bf16 %v141_v53, %v138_v49 }
 0x64b   :  { %v6074_v58 = vmul.f32 -1.442695, %v8606_v54  ;;  %v2726_v54 = vld [vmem:[%s10510_s1 + $0x8] sm:$0x1] }
 0x64c   :  { %v6075_v3 = vmul.f32 -1.442695, %v8607_v61  ;;  %v137_v61 = vld [vmem:[#allocation4] sm:$0xff] }
 0x64d   :  { %8723 = vpow2.f32 %v6074_v58  ;;  %v2745_v58 = vrot.slane %v2726_v54, 7  ;;  %v167_v54 = vld [vmem:[#allocation4 + $0xf0] sm:$0xff] }
 0x64e   :  { %8725 = vpow2.f32 %v6075_v3  ;;  %v140_v3 = vld [vmem:[#allocation4 + $0x18] sm:$0xff] }
 0x657   :  { %v8724_v7 = vpop.eup %8723 }
 0x658   :  { %v2086_v10 = vadd.f32 1.0, %v8724_v7  ;;  %v8726_v11 = vpop.eup %8725  ;;  %v2725_v7 = vld [vmem:[%s10510_s1] sm:$0x1] }
 0x659   :  { %v2093_v23 = vadd.f32 1.0, %v8726_v11  ;;  %v139_v11 = vld [vmem:[#allocation4 + $0x10] sm:$0xff] }
 0x65a   :  { %8727 = vrcp.f32 %v2086_v10  ;;  %v9653_v10 = vpack.c.bf16 %v140_v3, %v137_v61  ;;  %v169_v61 = vld [vmem:[#allocation4 + $0x100] sm:$0xff]  ;;  %v172_v3 = vld [vmem:[#allocation4 + $0x118] sm:$0xff] }
 0x664   :  { %v8728_v12 = vpop.eup %8727 }
 0x665   :  { %v2097_v18 = vmul.f32 %v8728_v12, %v2096_v4  ;;  %v142_v4 = vld [vmem:[#allocation4 + $0x28] sm:$0xff]  ;;  %v2746_v12 = vsel %vm224_vm2, %v2745_v58, %v2725_v7 }
 0x666   :  { %v170_v58 = vld [vmem:[#allocation4 + $0x108] sm:$0xff] }
 0x667   :  { %v2098_v22 = vadd.f32 %v2097_v18, %v1938_v17  ;;  %v9658_v17 = vpack.c.bf16 %v142_v4, %v139_v11  ;;  %v144_v18 = vld [vmem:[#allocation4 + $0x38] sm:$0xff]  ;;  %v174_v7 = vld [vmem:[#allocation4 + $0x128] sm:$0xff]  ;;  %v177_v11 = vld [vmem:[#allocation4 + $0x140] sm:$0xff]  ;;  %v9709_v4 = vpack.c.bf16 %v170_v58, %v167_v54 }
 0x668   :  { %v8835_v58 = vld [vmem:[%s10514_s5] ss:$0 sm:$0xff] }
 0x669   :  { %8729 = vtanh.f32 %v2098_v22  ;;  %v147_v22 = vld [vmem:[#allocation4 + $0x50] sm:$0xff] }
 0x66a   :  { %8731 = vrcp.f32 %v2093_v23  ;;  %v9664_v23 = vpack.c.bf16 %v147_v22, %v144_v18  ;;  %v173_v18 = vld [vmem:[#allocation4 + $0x120] sm:$0xff]  ;;  %v9715_v22 = vpack.c.bf16 %v177_v11, %v174_v7 }
 0x673   :  { %v8730_v25 = vpop.eup %8729 }
 0x674   :  { %v2100_v28 = vsub.f32 %v9485_v34, %v8730_v25  ;;  %v8732_v33 = vpop.eup %8731  ;;  %v2248_v34 = vpop.f32.mrb[22].mxu1 }
 0x675   :  { %v6832_v44 = vpop.f32.mrb[23].mxu1 }
 0x676   :  { %v2101_v31 = vmul.f32 %v8732_v33, %v2100_v28  ;;  %v146_v28 = vld [vmem:[#allocation4 + $0x48] sm:$0xff]  ;;  %v145_v33 = vld [vmem:[#allocation4 + $0x40] sm:$0xff] }
 0x677   :  { %v153_v44 = vld [vmem:[#allocation4 + $0x80] sm:$0xff] }
 0x678   :  { %v9553_v30 = vadd.f32 %v8730_v25, %v2101_v31  ;;  %v143_v25 = vld [vmem:[#allocation4 + $0x30] sm:$0xff] }
 0x679   :  { %v9667_v31 = vpack.c.bf16 %v146_v28, %v143_v25  ;;  %v176_v25 = vld [vmem:[#allocation4 + $0x138] sm:$0xff]  ;;  %v175_v28 = vld [vmem:[#allocation4 + $0x130] sm:$0xff] }
 0x67a   :  { %2317 = vmatmul.mubr.f32.vlgmr.msra.gmra.mrb[14].mxu0 %v9553_v30  ;;  %6866 = vmatmul.mubr.f32.vlgmr.msra.gmra.mrb[24].mxu1 %v9553_v30 }
 0x67b   :  { %6084 = vmatpush1.msk.msra.mxu0 %vm232_vm1, %v9492_v35  ;;  %6869 = vmatpush3.msk.msra.mxu1 %vm232_vm1, %v8834_v40  ;;  %v2415_v35 = vld [vmem:[%s10509_s0 + $0xf] sm:$0x1] }
 0x67c   :  { %2486 = vmatprep.mubr.f32.mxu0 %v8917_v0  ;;  %6870 = vmatprep.mubr.msk.f32.mxu1 %vm8918_vm0, %v8917_v0  ;;  %v2418_v45 = vrot.slane %v2415_v35, 7 }
 0x67d   :  { %7901 = vmatprep.subr.bf16.mxu0 %v9042_v5  ;;  %7932 = vmatprep.subr.bf16.mxu1 %v8919_v32 }
 0x67e   :  { %v2419_v26 = vsel %vm224_vm2, %v2418_v45, %v2414_v1  ;;  %v149_v45 = vld [vmem:[#allocation4 + $0x60] sm:$0xff]  ;;  %v152_v1 = vld [vmem:[#allocation4 + $0x78] sm:$0xff] }
 0x67f   :  { %6085 = vmatmul.mubr.msk.f32.vlgmr.msra.gmra.mrb[16].mxu0 %vm229_vm3, %v2419_v26  ;;  %6871 = vmatmul.mubr.msk.f32.vlgmr.msra.gmra.mrb[26].mxu1 %vm229_vm3, %v2419_v26  ;;  %v151_v26 = vld [vmem:[#allocation4 + $0x70] sm:$0xff] }
 0x680   :  { %7903 = vmatpush1.bf16.msra.mxu0 %v9052_v13  ;;  %7934 = vmatpush3.bf16.msra.mxu1 %v9083_v36 }
 0x681   :  { %7905 = vmatprep.subr.bf16.mxu0 %v9054_v14  ;;  %7935 = vmatprep.subr.bf16.mxu1 %v8919_v32 }
 0x682   :  { %2627 = vmatprep.mubr.f32.mxu0 %v8917_v0  ;;  %6905 = vmatprep.mubr.msk.f32.mxu1 %vm8918_vm0, %v8917_v0 }
 0x684   :  { %7907 = vmatpush1.bf16.msra.mxu0 %v9062_v20  ;;  %7937 = vmatpush3.bf16.msra.mxu1 %v9091_v41 }
 0x685   :  { %7909 = vmatprep.subr.bf16.mxu0 %v9066_v21  ;;  %7938 = vmatprep.subr.bf16.mxu1 %v8919_v32 }
 0x688   :  { %7911 = vmatpush1.bf16.msra.mxu0 %v9074_v27  ;;  %7940 = vmatpush3.bf16.msra.mxu1 %v9101_v50 }
 0x689   :  { %7913 = vmatprep.subr.bf16.mxu0 %v9079_v29  ;;  %7941 = vmatprep.subr.bf16.mxu1 %v8919_v32 }
 0x68c   :  { %7915 = vmatpush1.bf16.msra.mxu0 %v9088_v39  ;;  %7943 = vmatpush3.bf16.msra.mxu1 %v9111_v59 }
 0x68d   :  { %7917 = vmatprep.subr.bf16.mxu0 %v9094_v42  ;;  %7944 = vmatprep.subr.bf16.mxu1 %v8919_v32 }
 0x690   :  { %7919 = vmatpush1.bf16.msra.mxu0 %v9098_v48  ;;  %7946 = vmatpush3.bf16.msra.mxu1 %v9121_v8 }
 0x691   :  { %7921 = vmatprep.subr.bf16.mxu0 %v9104_v51  ;;  %7947 = vmatprep.subr.bf16.mxu1 %v8919_v32  ;;  %v2249_v51 = vadd.f32 %v2248_v34, %v9229_v2  ;;  %v150_v34 = vld [vmem:[#allocation4 + $0x68] sm:$0xff] }
 0x692   :  { %v9677_v35 = vpack.c.bf16 %v153_v44, %v150_v34  ;;  %v183_v34 = vld [vmem:[#allocation4 + $0x170] sm:$0xff]  ;;  %v9719_v44 = vpack.c.bf16 %v176_v25, %v173_v18 }
 0x694   :  { %7923 = vmatpush1.bf16.msra.mxu0 %v9108_v57  ;;  %7949 = vmatpush3.bf16.msra.mxu1 %v9131_v16 }
 0x695   :  { %7925 = vmatprep.subr.bf16.mxu0 %v9114_v60  ;;  %7950 = vmatprep.subr.bf16.mxu1 %v8919_v32 }
 0x698   :  { %7927 = vmatpush1.bf16.msra.mxu0 %v9118_v6  ;;  %7952 = vmatpush3.bf16.msra.mxu1 %v9137_v19 }
 0x699   :  { %7929 = vmatprep.subr.bf16.mxu0 %v9124_v9  ;;  %7953 = vmatprep.subr.bf16.mxu1 %v8919_v32 }
 0x69c   :  { %7931 = vmatpush1.bf16.msra.mxu0 %v9128_v15  ;;  %7955 = vmatpush3.bf16.msra.mxu1 %v9144_v24 }
 0x69d   :  { %6908 = vmatprep.subr.mxu1 %v8917_v0 }
 0x74d   :  { %v2318_v5 = vpop.f32.mrb[14].mxu0  ;;  %v2389_v13 = vpop.f32.mrb[24].mxu1 }
 0x74e   :  { %v8608_v14 = vadd.f32 %v2318_v5, %v9212_v43  ;;  %v2320_v20 = vpop.f32.mrb[15].mxu0  ;;  %v6867_v21 = vpop.f32.mrb[25].mxu1  ;;  %v2407_v48 = vadd.f32 %v9225_v63, %v2389_v13  ;;  %v9628_v63 = vld [vmem:[%s10515_s6] sm:$0xff]  ;;  %v9680_v5 = vpack.c.bf16 %v152_v1, %v149_v45  ;;  %v154_v13 = vld [vmem:[#allocation4 + $0x88] sm:$0xff]  ;;  %v179_v1 = vld [vmem:[#allocation4 + $0x150] sm:$0xff] }
 0x74f   :  { %v8609_v29 = vadd.f32 %v2320_v20, %v9218_v52  ;;  %v9632_v47 = vcombine.high %v9628_v63, %v9628_v63  ;;  %v156_v20 = vld [vmem:[#allocation4 + $0x98] sm:$0xff]  ;;  %v159_v21 = vld [vmem:[#allocation4 + $0xb0] sm:$0xff] }
 0x750   :  { %v6081_v27 = vmul.f32 -1.442695, %v8608_v14  ;;  %v9683_v14 = vpack.c.bf16 %v154_v13, %v151_v26  ;;  %v182_v13 = vld [vmem:[#allocation4 + $0x168] sm:$0xff] }
 0x751   :  { %v6082_v36 = vmul.f32 -1.442695, %v8609_v29  ;;  %6090 = vmatprep.subr.msk.mxu0 %vm232_vm1, %v9632_v47  ;;  %v155_v29 = vld [vmem:[#allocation4 + $0x90] sm:$0xff] }
 0x752   :  { %8733 = vpow2.f32 %v6081_v27  ;;  %v9623_v19 = vpop.f32.mrb[26].mxu1  ;;  %v9687_v27 = vpack.c.bf16 %v159_v21, %v156_v20  ;;  %v181_v20 = vld [vmem:[#allocation4 + $0x160] sm:$0xff]  ;;  %v184_v21 = vld [vmem:[#allocation4 + $0x178] sm:$0xff] }
 0x753   :  { %8735 = vpow2.f32 %v6082_v36  ;;  %v6872_v24 = vpop.f32.mrb[27].mxu1  ;;  %v158_v36 = vld [vmem:[#allocation4 + $0xa8] sm:$0xff] }
 0x754   :  { %v171_v24 = vld [vmem:[#allocation4 + $0x110] sm:$0xff] }
 0x75c   :  { %v8734_v39 = vpop.eup %8733 }
 0x75d   :  { %v2397_v41 = vadd.f32 1.0, %v8734_v39  ;;  %v8736_v42 = vpop.eup %8735  ;;  %v157_v39 = vld [vmem:[#allocation4 + $0xa0] sm:$0xff] }
 0x75e   :  { %v2404_v60 = vadd.f32 1.0, %v8736_v42  ;;  %v160_v42 = vld [vmem:[#allocation4 + $0xb8] sm:$0xff] }
 0x75f   :  { %8737 = vrcp.f32 %v2397_v41  ;;  %v9690_v41 = vpack.c.bf16 %v158_v36, %v155_v29  ;;  %v9729_v29 = vpack.c.bf16 %v182_v13, %v179_v1  ;;  %v9731_v36 = vpack.c.bf16 %v184_v21, %v181_v20  ;;  %v3171_v1 = vld [vmem:[%s10510_s1 + $0x1] sm:$0x1]  ;;  %v187_v21 = vld [vmem:[#allocation6 + $0x8] sm:$0xff] }
 0x760   :  { %v186_v20 = vld [vmem:[#allocation6] sm:$0xff] }
 0x769   :  { %v8738_v50 = vpop.eup %8737 }
 0x76a   :  { %v2408_v57 = vmul.f32 %v8738_v50, %v2407_v48  ;;  %v9693_v48 = vpack.c.bf16 %v160_v42, %v157_v39  ;;  %v162_v50 = vld [vmem:[#allocation4 + $0xc8] sm:$0xff] }
 0x76c   :  { %v2409_v59 = vadd.f32 %v2408_v57, %v2249_v51  ;;  %v165_v51 = vld [vmem:[#allocation4 + $0xe0] sm:$0xff] }
 0x76d   :  { %v9697_v57 = vpack.c.bf16 %v165_v51, %v162_v50 }
 0x76e   :  { %8739 = vtanh.f32 %v2409_v59  ;;  %v161_v59 = vld [vmem:[#allocation4 + $0xc0] sm:$0xff] }
 0x76f   :  { %8741 = vrcp.f32 %v2404_v60  ;;  %v164_v60 = vld [vmem:[#allocation4 + $0xd8] sm:$0xff] }
 0x778   :  { %v8740_v6 = vpop.eup %8739 }
 0x779   :  { %v2411_v8 = vsub.f32 %v9553_v30, %v8740_v6  ;;  %v8742_v9 = vpop.eup %8741  ;;  %v148_v30 = vld [vmem:[#allocation4 + $0x58] sm:$0xff] }
 0x77a   :  { %v9671_v40 = vpack.c.bf16 %v148_v30, %v145_v33  ;;  %v178_v33 = vld [vmem:[#allocation4 + $0x148] sm:$0xff]  ;;  %v180_v30 = vld [vmem:[#allocation4 + $0x158] sm:$0xff] }
 0x77b   :  { %v2412_v15 = vmul.f32 %v8742_v9, %v2411_v8  ;;  %v9700_v8 = vpack.c.bf16 %v164_v60, %v161_v59  ;;  %v166_v9 = vld [vmem:[#allocation4 + $0xe8] sm:$0xff]  ;;  %v9721_v45 = vpack.c.bf16 %v178_v33, %v175_v28  ;;  %v9725_v26 = vpack.c.bf16 %v183_v34, %v180_v30 }
 0x77d   :  { %v9616_v16 = vadd.f32 %v8740_v6, %v2412_v15  ;;  %v163_v6 = vld [vmem:[#allocation4 + $0xd0] sm:$0xff]  ;;  %v168_v15 = vld [vmem:[#allocation4 + $0xf8] sm:$0xff] }
 0x77e   :  { %v9703_v49 = vpack.c.bf16 %v166_v9, %v163_v6  ;;  %v9705_v53 = vpack.c.bf16 %v171_v24, %v168_v15 }
 0x77f   :  { %2628 = vmatmul.mubr.f32.vlgmr.msra.gmra.mrb[16].mxu0 %v9616_v16  ;;  %6906 = vmatmul.mubr.f32.vlgmr.msra.gmra.mrb[28].mxu1 %v9616_v16 }
 0x780   :  { %2822 = vmatprep.mubr.f32.mxu0 %v8917_v0  ;;  %6910 = vmatprep.mubr.msk.f32.mxu1 %vm8918_vm0, %v8917_v0 }
 0x781   :  { %6091 = vmatpush1.msk.msra.mxu0 %vm232_vm1, %v9628_v63  ;;  %6909 = vmatpush3.msk.msra.mxu1 %vm232_vm1, %v9642_v55 }
 0x782   :  { %7957 = vmatprep.subr.bf16.mxu0 %v9644_v56  ;;  %7988 = vmatprep.subr.bf16.mxu1 %v8919_v32 }
 0x783   :  { %6092 = vmatmul.mubr.msk.f32.vlgmr.msra.gmra.mrb[18].mxu0 %vm229_vm3, %v2746_v12  ;;  %6911 = vmatmul.mubr.msk.f32.vlgmr.msra.gmra.mrb[30].mxu1 %vm229_vm3, %v2746_v12  ;;  %v9711_v12 = vpack.c.bf16 %v172_v3, %v169_v61 }
 0x784   :  { %7959 = vmatpush1.bf16.msra.mxu0 %v9653_v10  ;;  %7990 = vmatpush3.bf16.msra.mxu1 %v9658_v17 }
 0x785   :  { %7991 = vmatprep.subr.bf16.mxu1 %v8919_v32  ;;  %2963 = vmatprep.mubr.f32.mxu0 %v8917_v0 }
 0x786   :  { %7961 = vmatprep.subr.bf16.mxu0 %v9664_v23  ;;  %6945 = vmatprep.mubr.msk.f32.mxu1 %vm8918_vm0, %v8917_v0 }
 0x788   :  { %7963 = vmatpush1.bf16.msra.mxu0 %v9667_v31  ;;  %7993 = vmatpush3.bf16.msra.mxu1 %v9671_v40 }
 0x789   :  { %7994 = vmatprep.subr.bf16.mxu1 %v8919_v32  ;;  %7965 = vmatprep.subr.bf16.mxu0 %v9677_v35 }
 0x78c   :  { %7967 = vmatpush1.bf16.msra.mxu0 %v9680_v5  ;;  %7996 = vmatpush3.bf16.msra.mxu1 %v9683_v14 }
 0x78d   :  { %7997 = vmatprep.subr.bf16.mxu1 %v8919_v32  ;;  %7969 = vmatprep.subr.bf16.mxu0 %v9687_v27 }
 0x790   :  { %7971 = vmatpush1.bf16.msra.mxu0 %v9690_v41  ;;  %7999 = vmatpush3.bf16.msra.mxu1 %v9693_v48 }
 0x791   :  { %8000 = vmatprep.subr.bf16.mxu1 %v8919_v32  ;;  %7973 = vmatprep.subr.bf16.mxu0 %v9697_v57 }
 0x794   :  { %7975 = vmatpush1.bf16.msra.mxu0 %v9700_v8  ;;  %8002 = vmatpush3.bf16.msra.mxu1 %v9703_v49 }
 0x795   :  { %7977 = vmatprep.subr.bf16.mxu0 %v9705_v53  ;;  %8003 = vmatprep.subr.bf16.mxu1 %v8919_v32 }
 0x798   :  { %7979 = vmatpush1.bf16.msra.mxu0 %v9709_v4  ;;  %8005 = vmatpush3.bf16.msra.mxu1 %v9711_v12 }
 0x799   :  { %7981 = vmatprep.subr.bf16.mxu0 %v9715_v22  ;;  %8006 = vmatprep.subr.bf16.mxu1 %v8919_v32 }
 0x79c   :  { %7983 = vmatpush1.bf16.msra.mxu0 %v9719_v44  ;;  %8008 = vmatpush3.bf16.msra.mxu1 %v9721_v45 }
 0x79d   :  { %7985 = vmatprep.subr.bf16.mxu0 %v9725_v26  ;;  %8009 = vmatprep.subr.bf16.mxu1 %v8919_v32 }
 0x7a0   :  { %7987 = vmatpush1.bf16.msra.mxu0 %v9729_v29  ;;  %8011 = vmatpush3.bf16.msra.mxu1 %v9731_v36 }
 0x7a1   :  { %6099 = vmatprep.subr.msk.mxu1 %vm232_vm1, %v9632_v47  ;;  %8012 = vmatprep.subr.bf16.mxu0 %v8919_v32 }
 0x852   :  { %v2629_v39 = vpop.f32.mrb[16].mxu0  ;;  %v2700_v42 = vpop.f32.mrb[28].mxu1 }
 0x853   :  { %v8610_v50 = vadd.f32 %v2629_v39, %v9212_v43  ;;  %v2631_v51 = vpop.f32.mrb[17].mxu0  ;;  %v6907_v59 = vpop.f32.mrb[29].mxu1  ;;  %v2718_v61 = vadd.f32 %v8835_v58, %v2700_v42  ;;  %v2560_v43 = vadd.f32 %v9623_v19, %v9229_v2  ;;  %v3172_v19 = vld [vmem:[%s10510_s1 + $0x9] sm:$0x1]  ;;  %v9770_v39 = vpack.c.bf16 %v187_v21, %v186_v20  ;;  %v188_v42 = vld [vmem:[#allocation6 + $0x10] sm:$0xff] }
 0x854   :  { %v8611_v6 = vadd.f32 %v2631_v51, %v9218_v52  ;;  %v3175_v34 = vrot.slane %v3172_v19, 7  ;;  %v190_v59 = vld [vmem:[#allocation6 + $0x20] sm:$0xff]  ;;  %v195_v58 = vld [vmem:[#allocation6 + $0x48] sm:$0xff] }
 0x855   :  { %v6088_v60 = vmul.f32 -1.442695, %v8610_v50  ;;  %v189_v50 = vld [vmem:[#allocation6 + $0x18] sm:$0xff] }
 0x856   :  { %v6089_v9 = vmul.f32 -1.442695, %v8611_v6  ;;  %v9758_v2 = vpop.f32.mrb[30].mxu1  ;;  %v3176_v13 = vsel %vm224_vm2, %v3175_v34, %v3171_v1  ;;  %v9779_v51 = vpack.c.bf16 %v189_v50, %v188_v42 }
 0x857   :  { %8743 = vpow2.f32 %v6088_v60  ;;  %v191_v60 = vld [vmem:[#allocation6 + $0x28] sm:$0xff] }
 0x858   :  { %8745 = vpow2.f32 %v6089_v9  ;;  %v9786_v6 = vpack.c.bf16 %v191_v60, %v190_v59  ;;  %v192_v9 = vld [vmem:[#allocation6 + $0x30] sm:$0xff] }
 0x861   :  { %v8744_v15 = vpop.eup %8743 }
 0x862   :  { %v2708_v24 = vadd.f32 1.0, %v8744_v15  ;;  %v8746_v54 = vpop.eup %8745  ;;  %v193_v15 = vld [vmem:[#allocation6 + $0x38] sm:$0xff] }
 0x863   :  { %v2715_v18 = vadd.f32 1.0, %v8746_v54  ;;  %v194_v54 = vld [vmem:[#allocation6 + $0x40] sm:$0xff] }
 0x864   :  { %8747 = vrcp.f32 %v2708_v24  ;;  %v9792_v24 = vpack.c.bf16 %v193_v15, %v192_v9 }
 0x86e   :  { %v8748_v3 = vpop.eup %8747 }
 0x86f   :  { %v2719_v7 = vmul.f32 %v8748_v3, %v2718_v61  ;;  %v9798_v61 = vpack.c.bf16 %v195_v58, %v194_v54  ;;  %v196_v3 = vld [vmem:[#allocation6 + $0x50] sm:$0xff] }
 0x871   :  { %v2720_v11 = vadd.f32 %v2719_v7, %v2560_v43  ;;  %v197_v43 = vld [vmem:[#allocation6 + $0x58] sm:$0xff] }
 0x872   :  { %v9802_v7 = vpack.c.bf16 %v197_v43, %v196_v3 }
 0x873   :  { %8749 = vtanh.f32 %v2720_v11  ;;  %v198_v11 = vld [vmem:[#allocation6 + $0x60] sm:$0xff] }
 0x874   :  { %8751 = vrcp.f32 %v2715_v18  ;;  %v199_v18 = vld [vmem:[#allocation6 + $0x68] sm:$0xff] }
 0x87d   :  { %v8750_v52 = vpop.eup %8749 }
 0x87e   :  { %v2722_v25 = vsub.f32 %v9616_v16, %v8750_v52  ;;  %v8752_v28 = vpop.eup %8751  ;;  %v6912_v16 = vpop.f32.mrb[31].mxu1 }
 0x87f   :  { %v136_v16 = vld [vmem:[%s10517_s8] sm:$0x7] }
 0x880   :  { %v2723_v33 = vmul.f32 %v8752_v28, %v2722_v25  ;;  %v200_v25 = vld [vmem:[#allocation6 + $0x70] sm:$0xff]  ;;  %v201_v28 = vld [vmem:[#allocation6 + $0x78] sm:$0xff]  ;;  %v9828_v19 = vrot.slane %v136_v16, %v208_v38  ;;  %v9833_v50 = vrot.slane %v136_v16, %v212_v46  ;;  %v9839_v38 = vld [vmem:[%s10518_s9] ss:$0 sm:$0xff]  ;;  %v9843_v54 = vrot.slane %v136_v16, %v216_v62 }
 0x882   :  { %v9748_v30 = vadd.f32 %v8750_v52, %v2723_v33  ;;  %v9808_v52 = vpack.c.bf16 %v199_v18, %v198_v11  ;;  %v9814_v33 = vpack.c.bf16 %v201_v28, %v200_v25  ;;  %v2896_v43 = vadd.f32 %v9758_v2, %v9843_v54  ;;  %v3580_v2 = vld [vmem:[%s10510_s1 + $0xa] sm:$0x1] }
 0x883   :  { %v3583_v16 = vrot.slane %v3580_v2, 7 }
 0x884   :  { %2964 = vmatmul.mubr.f32.vlgmr.msra.gmra.mrb[18].mxu0 %v9748_v30  ;;  %6946 = vmatmul.mubr.f32.vlgmr.msra.gmra.mrb[32].mxu1 %v9748_v30 }
 0x885   :  { %6100 = vmatpush1.msk.msra.mxu1 %vm232_vm1, %v9628_v63  ;;  %3243 = vmatprep.mubr.f32.mxu1 %v8917_v0 }
 0x886   :  { %6983 = vmatprep.subr.mxu1 %v8917_v0  ;;  %6980 = vmatprep.mubr.msk.f32.mxu0 %vm8918_vm0, %v8917_v0 }
 0x887   :  { %8014 = vmatpush3.bf16.msra.mxu0 %v9770_v39 }
 0x888   :  { %6101 = vmatmul.mubr.msk.f32.vlgmr.msra.gmra.mrb[34].mxu1 %vm229_vm3, %v3176_v13  ;;  %8015 = vmatprep.subr.bf16.mxu0 %v8919_v32 }
 0x889   :  { %6984 = vmatpush3.msk.msra.mxu1 %vm232_vm1, %v9642_v55  ;;  %6985 = vmatprep.mubr.msk.f32.mxu1 %vm8918_vm0, %v8917_v0 }
 0x88a   :  { %8037 = vmatprep.subr.bf16.mxu1 %v9644_v56 }
 0x88b   :  { %8017 = vmatpush3.bf16.msra.mxu0 %v9779_v51 }
 0x88c   :  { %6986 = vmatmul.mubr.msk.f32.vlgmr.msra.gmra.mrb[36].mxu1 %vm229_vm3, %v3176_v13  ;;  %8018 = vmatprep.subr.bf16.mxu0 %v8919_v32 }
 0x88d   :  { %8039 = vmatpush1.bf16.msra.mxu1 %v9653_v10  ;;  %3384 = vmatprep.mubr.f32.mxu1 %v8917_v0 }
 0x88e   :  { %8041 = vmatprep.subr.bf16.mxu1 %v9664_v23 }
 0x88f   :  { %8020 = vmatpush3.bf16.msra.mxu0 %v9786_v6 }
 0x890   :  { %8021 = vmatprep.subr.bf16.mxu0 %v8919_v32 }
 0x891   :  { %8043 = vmatpush1.bf16.msra.mxu1 %v9667_v31 }
 0x892   :  { %8045 = vmatprep.subr.bf16.mxu1 %v9677_v35 }
 0x893   :  { %8023 = vmatpush3.bf16.msra.mxu0 %v9792_v24 }
 0x894   :  { %8024 = vmatprep.subr.bf16.mxu0 %v8919_v32 }
 0x895   :  { %8047 = vmatpush1.bf16.msra.mxu1 %v9680_v5 }
 0x896   :  { %8049 = vmatprep.subr.bf16.mxu1 %v9687_v27 }
 0x897   :  { %8026 = vmatpush3.bf16.msra.mxu0 %v9798_v61 }
 0x898   :  { %8027 = vmatprep.subr.bf16.mxu0 %v8919_v32 }
 0x899   :  { %8051 = vmatpush1.bf16.msra.mxu1 %v9690_v41 }
 0x89a   :  { %8053 = vmatprep.subr.bf16.mxu1 %v9697_v57 }
 0x89b   :  { %8029 = vmatpush3.bf16.msra.mxu0 %v9802_v7 }
 0x89c   :  { %8030 = vmatprep.subr.bf16.mxu0 %v8919_v32 }
 0x89d   :  { %8055 = vmatpush1.bf16.msra.mxu1 %v9700_v8 }
 0x89e   :  { %8057 = vmatprep.subr.bf16.mxu1 %v9705_v53 }
 0x89f   :  { %8032 = vmatpush3.bf16.msra.mxu0 %v9808_v52 }
 0x8a0   :  { %8033 = vmatprep.subr.bf16.mxu0 %v8919_v32 }
 0x8a1   :  { %8059 = vmatpush1.bf16.msra.mxu1 %v9709_v4 }
 0x8a2   :  { %8061 = vmatprep.subr.bf16.mxu1 %v9715_v22 }
 0x8a3   :  { %8035 = vmatpush3.bf16.msra.mxu0 %v9814_v33 }
 0x8a4   :  { %8068 = vmatprep.subr.bf16.mxu0 %v8919_v32 }
 0x8a5   :  { %8063 = vmatpush1.bf16.msra.mxu1 %v9719_v44 }
 0x8a6   :  { %8065 = vmatprep.subr.bf16.mxu1 %v9725_v26 }
 0x8a9   :  { %8067 = vmatpush1.bf16.msra.mxu1 %v9729_v29 }
 0x8aa   :  { %8092 = vmatprep.subr.bf16.mxu1 %v8919_v32 }
 0x957   :  { %v2965_v34 = vpop.f32.mrb[18].mxu0  ;;  %v3036_v1 = vpop.f32.mrb[32].mxu1 }
 0x958   :  { %v8612_v13 = vadd.f32 %v2965_v34, %v9828_v19  ;;  %v2967_v20 = vpop.f32.mrb[19].mxu0  ;;  %v6947_v21 = vpop.f32.mrb[33].mxu1  ;;  %v3060_v46 = vadd.f32 %v9839_v38, %v3036_v1  ;;  %v3579_v1 = vld [vmem:[%s10510_s1 + $0x2] sm:$0x1] }
 0x959   :  { %v8613_v59 = vadd.f32 %v2967_v20, %v9833_v50 }
 0x95a   :  { %v6095_v42 = vmul.f32 -1.442695, %v8612_v13 }
 0x95b   :  { %v6096_v60 = vmul.f32 -1.442695, %v8613_v59  ;;  %v8920_v59 = vmov 1966171168  }
 0x95c   :  { %8753 = vpow2.f32 %v6095_v42  ;;  %v3584_v42 = vsel %vm224_vm2, %v3583_v16, %v3579_v1 }
 0x95d   :  { %8755 = vpow2.f32 %v6096_v60  ;;  %v3145_v60 = vunpack.c.l.s4 %v8920_v59 }
 0x95f   :  { %v3316_v62 = vpop.f32.mrb[36].mxu1 }
 0x966   :  { %v8754_v9 = vpop.eup %8753 }
 0x967   :  { %v3044_v15 = vadd.f32 1.0, %v8754_v9  ;;  %v8756_v58 = vpop.eup %8755  ;;  %v3146_v9 = vunpack.c.0.s8 %v3145_v60 }
 0x968   :  { %v3051_v25 = vadd.f32 1.0, %v8756_v58 }
 0x969   :  { %8757 = vrcp.f32 %v3044_v15  ;;  %v9929_v15 = vld [vmem:[%s10520_s11] ss:$0 sm:$0xff]  ;;  %v9932_v58 = vsub.s32 %v3146_v9, %v9204_v37 }
 0x973   :  { %v8758_v3 = vpop.eup %8757 }
 0x974   :  { %v3061_v11 = vmul.f32 %v8758_v3, %v3060_v46 }
 0x976   :  { %v3062_v18 = vadd.f32 %v3061_v11, %v2896_v43 }
 0x978   :  { %8759 = vtanh.f32 %v3062_v18 }
 0x979   :  { %8761 = vrcp.f32 %v3051_v25 }
 0x982   :  { %v8760_v28 = vpop.eup %8759 }
 0x983   :  { %v3064_v34 = vsub.f32 %v9748_v30, %v8760_v28  ;;  %v8762_v13 = vpop.eup %8761  ;;  %v6987_v30 = vpop.f32.mrb[37].mxu1 }
 0x985   :  { %v3065_v20 = vmul.f32 %v8762_v13, %v3064_v34 }
 0x987   :  { %v9849_v21 = vadd.f32 %v8760_v28, %v3065_v20 }
 0x989   :  { %6981 = vmatmul.mubr.f32.vlgmr.msra.gmra.mrb[20].mxu0 %v9849_v21  ;;  %3385 = vmatmul.mubr.f32.vlgmr.msra.gmra.mrb[34].mxu1 %v9849_v21 }
 0x98a   :  { %8070 = vmatpush3.bf16.msra.mxu0 %v9658_v17  ;;  %7020 = vmatprep.mubr.msk.f32.mxu0 %vm8918_vm0, %v8917_v0 }
 0x98b   :  { %8071 = vmatprep.subr.bf16.mxu0 %v8919_v32  ;;  %8094 = vmatpush3.bf16.msra.mxu1 %v9770_v39 }
 0x98c   :  { %8095 = vmatprep.subr.bf16.mxu1 %v8919_v32  ;;  %7055 = vmatprep.mubr.msk.f32.mxu1 %vm8918_vm0, %v8917_v0 }
 0x98e   :  { %8073 = vmatpush3.bf16.msra.mxu0 %v9671_v40 }
 0x98f   :  { %8074 = vmatprep.subr.bf16.mxu0 %v8919_v32  ;;  %8097 = vmatpush3.bf16.msra.mxu1 %v9779_v51 }
 0x990   :  { %8098 = vmatprep.subr.bf16.mxu1 %v8919_v32 }
 0x992   :  { %8076 = vmatpush3.bf16.msra.mxu0 %v9683_v14 }
 0x993   :  { %8077 = vmatprep.subr.bf16.mxu0 %v8919_v32  ;;  %8100 = vmatpush3.bf16.msra.mxu1 %v9786_v6 }
 0x994   :  { %8101 = vmatprep.subr.bf16.mxu1 %v8919_v32 }
 0x996   :  { %8079 = vmatpush3.bf16.msra.mxu0 %v9693_v48 }
 0x997   :  { %8080 = vmatprep.subr.bf16.mxu0 %v8919_v32  ;;  %8103 = vmatpush3.bf16.msra.mxu1 %v9792_v24 }
 0x998   :  { %8104 = vmatprep.subr.bf16.mxu1 %v8919_v32 }
 0x99a   :  { %8082 = vmatpush3.bf16.msra.mxu0 %v9703_v49 }
 0x99b   :  { %8083 = vmatprep.subr.bf16.mxu0 %v8919_v32  ;;  %8106 = vmatpush3.bf16.msra.mxu1 %v9798_v61 }
 0x99c   :  { %8107 = vmatprep.subr.bf16.mxu1 %v8919_v32 }
 0x99e   :  { %8085 = vmatpush3.bf16.msra.mxu0 %v9711_v12 }
 0x99f   :  { %8086 = vmatprep.subr.bf16.mxu0 %v8919_v32  ;;  %8109 = vmatpush3.bf16.msra.mxu1 %v9802_v7 }
 0x9a0   :  { %8110 = vmatprep.subr.bf16.mxu1 %v8919_v32 }
 0x9a2   :  { %8088 = vmatpush3.bf16.msra.mxu0 %v9721_v45 }
 0x9a3   :  { %8089 = vmatprep.subr.bf16.mxu0 %v8919_v32  ;;  %8112 = vmatpush3.bf16.msra.mxu1 %v9808_v52 }
 0x9a4   :  { %8113 = vmatprep.subr.bf16.mxu1 %v8919_v32 }
 0x9a6   :  { %8091 = vmatpush3.bf16.msra.mxu0 %v9731_v36 }
 0x9a7   :  { %6106 = vmatprep.subr.msk.mxu0 %vm232_vm1, %v9632_v47  ;;  %8115 = vmatpush3.bf16.msra.mxu1 %v9814_v33 }
 0x9a8   :  { %8148 = vmatprep.subr.bf16.mxu1 %v8919_v32 }
 0x9a9   :  { %7021 = vmatmul.mubr.f32.vlgmr.msra.gmra.mrb[22].mxu0 %v9849_v21 }
 0x9aa   :  { %6107 = vmatpush1.msk.msra.mxu0 %vm232_vm1, %v9628_v63  ;;  %3651 = vmatprep.mubr.f32.mxu0 %v8917_v0 }
 0x9ab   :  { %7058 = vmatprep.subr.mxu0 %v8917_v0 }
 0x9ad   :  { %6108 = vmatmul.mubr.msk.f32.vlgmr.msra.gmra.mrb[24].mxu0 %vm229_vm3, %v3584_v42 }
 0x9ae   :  { %7059 = vmatpush3.msk.msra.mxu0 %vm232_vm1, %v9642_v55  ;;  %7060 = vmatprep.mubr.msk.f32.mxu0 %vm8918_vm0, %v8917_v0 }
 0x9af   :  { %8117 = vmatprep.subr.bf16.mxu0 %v9644_v56 }
 0x9b1   :  { %7061 = vmatmul.mubr.msk.f32.vlgmr.msra.gmra.mrb[26].mxu0 %vm229_vm3, %v3584_v42 }
 0x9b2   :  { %8119 = vmatpush1.bf16.msra.mxu0 %v9653_v10  ;;  %3792 = vmatprep.mubr.f32.mxu0 %v8917_v0 }
 0x9b3   :  { %8121 = vmatprep.subr.bf16.mxu0 %v9664_v23 }
 0x9b6   :  { %8123 = vmatpush1.bf16.msra.mxu0 %v9667_v31 }
 0x9b7   :  { %8125 = vmatprep.subr.bf16.mxu0 %v9677_v35 }
 0x9ba   :  { %8127 = vmatpush1.bf16.msra.mxu0 %v9680_v5 }
 0x9bb   :  { %8129 = vmatprep.subr.bf16.mxu0 %v9687_v27 }
 0x9be   :  { %8131 = vmatpush1.bf16.msra.mxu0 %v9690_v41 }
 0x9bf   :  { %8133 = vmatprep.subr.bf16.mxu0 %v9697_v57 }
 0x9c2   :  { %8135 = vmatpush1.bf16.msra.mxu0 %v9700_v8 }
 0x9c3   :  { %8137 = vmatprep.subr.bf16.mxu0 %v9705_v53 }
 0x9c6   :  { %8139 = vmatpush1.bf16.msra.mxu0 %v9709_v4 }
 0x9c7   :  { %8141 = vmatprep.subr.bf16.mxu0 %v9715_v22 }
 0x9ca   :  { %8143 = vmatpush1.bf16.msra.mxu0 %v9719_v44 }
 0x9cb   :  { %8145 = vmatprep.subr.bf16.mxu0 %v9725_v26 }
 0x9ce   :  { %8147 = vmatpush1.bf16.msra.mxu0 %v9729_v29 }
 0x9cf   :  { %8172 = vmatprep.subr.bf16.mxu0 %v8919_v32 }
 0xa5c   :  { %v3139_v46 = vpop.f32.mrb[20].mxu0  ;;  %v3386_v3 = vpop.f32.mrb[34].mxu1 }
 0xa5d   :  { %v3140_v43 = vadd.f32 %v9929_v15, %v3139_v46  ;;  %v8614_v11 = vadd.f32 %v3386_v3, %v9828_v19  ;;  %v6982_v18 = vpop.f32.mrb[21].mxu0  ;;  %v3388_v25 = vpop.f32.mrb[35].mxu1  ;;  %v3317_v3 = vadd.f32 %v3316_v62, %v9843_v54 }
 0xa5e   :  { %v8615_v37 = vadd.f32 %v3388_v25, %v9833_v50 }
 0xa5f   :  { %v3150_v28 = vrot.slane %v3140_v43, %v9932_v58  ;;  %v6104_v34 = vmul.f32 -1.442695, %v8614_v11 }
 0xa60   :  { %v6105_v16 = vmul.f32 -1.442695, %v8615_v37 }
 0xa61   :  { %v3151_v13 = vcombine.high %v3150_v28, %v3150_v28  ;;  %v3158_v20 = vrot.slane %v3150_v28, %v9932_v58  ;;  %8763 = vpow2.f32 %v6104_v34 }
 0xa62   :  { %8765 = vpow2.f32 %v6105_v16 }
 0xa63   :  { %v3165_v30 = vrot.slane %v3151_v13, %v9932_v58  ;;  %3169 = vst.msk [vmem:[%s10521_s12] sm:$0x1] %vm3168_vm4, %v3158_v20 }
 0xa65   :  { %3170 = vst.msk [vmem:[%s10521_s12 + $0x8] sm:$0x1] %vm3168_vm4, %v3165_v30  ;;  %v3988_v30 = vld [vmem:[%s10510_s1 + $0xb] sm:$0x1] }
 0xa66   :  { %v3991_v37 = vrot.slane %v3988_v30, 7 }
 0xa6b   :  { %v8764_v2 = vpop.eup %8763 }
 0xa6c   :  { %v3465_v1 = vadd.f32 1.0, %v8764_v2  ;;  %v8766_v59 = vpop.eup %8765  ;;  %v3987_v2 = vld [vmem:[%s10510_s1 + $0x3] sm:$0x1] }
 0xa6d   :  { %v3472_v11 = vadd.f32 1.0, %v8766_v59  ;;  %v3992_v16 = vsel %vm224_vm2, %v3991_v37, %v3987_v2 }
 0xa6e   :  { %8767 = vrcp.f32 %v3465_v1 }
 0xa78   :  { %v8768_v46 = vpop.eup %8767 }
 0xa7c   :  { %v3457_v42 = vpop.f32.mrb[22].mxu0 }
 0xa7d   :  { %v3475_v60 = vadd.f32 %v9839_v38, %v3457_v42  ;;  %v7022_v9 = vpop.f32.mrb[23].mxu0 }
 0xa7f   :  { %v3476_v43 = vmul.f32 %v8768_v46, %v3475_v60 }
 0xa81   :  { %v3477_v18 = vadd.f32 %v3476_v43, %v3317_v3 }
 0xa83   :  { %8769 = vtanh.f32 %v3477_v18 }
 0xa84   :  { %8771 = vrcp.f32 %v3472_v11 }
 0xa8d   :  { %v8770_v28 = vpop.eup %8769 }
 0xa8e   :  { %v3479_v25 = vsub.f32 %v9849_v21, %v8770_v28  ;;  %v8772_v34 = vpop.eup %8771  ;;  %v3724_v21 = vpop.f32.mrb[26].mxu0 }
 0xa8f   :  { %v7062_v62 = vpop.f32.mrb[27].mxu0 }
 0xa90   :  { %v3480_v13 = vmul.f32 %v8772_v34, %v3479_v25 }
 0xa92   :  { %v9951_v20 = vadd.f32 %v8770_v28, %v3480_v13 }
 0xa94   :  { %7056 = vmatmul.mubr.f32.vlgmr.msra.gmra.mrb[38].mxu1 %v9951_v20  ;;  %3793 = vmatmul.mubr.f32.vlgmr.msra.gmra.mrb[24].mxu0 %v9951_v20 }
 0xa95   :  { %8150 = vmatpush3.bf16.msra.mxu1 %v9658_v17  ;;  %7095 = vmatprep.mubr.msk.f32.mxu1 %vm8918_vm0, %v8917_v0 }
 0xa96   :  { %8151 = vmatprep.subr.bf16.mxu1 %v8919_v32  ;;  %8174 = vmatpush3.bf16.msra.mxu0 %v9770_v39 }
 0xa97   :  { %8175 = vmatprep.subr.bf16.mxu0 %v8919_v32  ;;  %7130 = vmatprep.mubr.msk.f32.mxu0 %vm8918_vm0, %v8917_v0 }
 0xa99   :  { %8153 = vmatpush3.bf16.msra.mxu1 %v9671_v40 }
 0xa9a   :  { %8154 = vmatprep.subr.bf16.mxu1 %v8919_v32  ;;  %8177 = vmatpush3.bf16.msra.mxu0 %v9779_v51 }
 0xa9b   :  { %8178 = vmatprep.subr.bf16.mxu0 %v8919_v32 }
 0xa9d   :  { %8156 = vmatpush3.bf16.msra.mxu1 %v9683_v14 }
 0xa9e   :  { %8157 = vmatprep.subr.bf16.mxu1 %v8919_v32  ;;  %8180 = vmatpush3.bf16.msra.mxu0 %v9786_v6 }
 0xa9f   :  { %8181 = vmatprep.subr.bf16.mxu0 %v8919_v32 }
 0xaa1   :  { %8159 = vmatpush3.bf16.msra.mxu1 %v9693_v48 }
 0xaa2   :  { %8160 = vmatprep.subr.bf16.mxu1 %v8919_v32  ;;  %8183 = vmatpush3.bf16.msra.mxu0 %v9792_v24 }
 0xaa3   :  { %8184 = vmatprep.subr.bf16.mxu0 %v8919_v32 }
 0xaa5   :  { %8162 = vmatpush3.bf16.msra.mxu1 %v9703_v49 }
 0xaa6   :  { %8163 = vmatprep.subr.bf16.mxu1 %v8919_v32  ;;  %8186 = vmatpush3.bf16.msra.mxu0 %v9798_v61 }
 0xaa7   :  { %8187 = vmatprep.subr.bf16.mxu0 %v8919_v32 }
 0xaa9   :  { %8165 = vmatpush3.bf16.msra.mxu1 %v9711_v12 }
 0xaaa   :  { %8166 = vmatprep.subr.bf16.mxu1 %v8919_v32  ;;  %8189 = vmatpush3.bf16.msra.mxu0 %v9802_v7 }
 0xaab   :  { %8190 = vmatprep.subr.bf16.mxu0 %v8919_v32 }
 0xaad   :  { %8168 = vmatpush3.bf16.msra.mxu1 %v9721_v45 }
 0xaae   :  { %8169 = vmatprep.subr.bf16.mxu1 %v8919_v32  ;;  %8192 = vmatpush3.bf16.msra.mxu0 %v9808_v52 }
 0xaaf   :  { %8193 = vmatprep.subr.bf16.mxu0 %v8919_v32 }
 0xab1   :  { %8171 = vmatpush3.bf16.msra.mxu1 %v9731_v36 }
 0xab2   :  { %6113 = vmatprep.subr.msk.mxu1 %vm232_vm1, %v9632_v47  ;;  %8195 = vmatpush3.bf16.msra.mxu0 %v9814_v33 }
 0xab3   :  { %8228 = vmatprep.subr.bf16.mxu0 %v8919_v32 }
 0xab4   :  { %7096 = vmatmul.mubr.f32.vlgmr.msra.gmra.mrb[40].mxu1 %v9951_v20 }
 0xab5   :  { %6114 = vmatpush1.msk.msra.mxu1 %vm232_vm1, %v9628_v63  ;;  %4059 = vmatprep.mubr.f32.mxu1 %v8917_v0 }
 0xab6   :  { %7133 = vmatprep.subr.mxu1 %v8917_v0 }
 0xab8   :  { %6115 = vmatmul.mubr.msk.f32.vlgmr.msra.gmra.mrb[42].mxu1 %vm229_vm3, %v3992_v16 }
 0xab9   :  { %7134 = vmatpush3.msk.msra.mxu1 %vm232_vm1, %v9642_v55  ;;  %7135 = vmatprep.mubr.msk.f32.mxu1 %vm8918_vm0, %v8917_v0 }
 0xaba   :  { %8197 = vmatprep.subr.bf16.mxu1 %v9644_v56 }
 0xabc   :  { %7136 = vmatmul.mubr.msk.f32.vlgmr.msra.gmra.mrb[44].mxu1 %vm229_vm3, %v3992_v16 }
 0xabd   :  { %8199 = vmatpush1.bf16.msra.mxu1 %v9653_v10  ;;  %4200 = vmatprep.mubr.f32.mxu1 %v8917_v0 }
 0xabe   :  { %8201 = vmatprep.subr.bf16.mxu1 %v9664_v23 }
 0xac1   :  { %8203 = vmatpush1.bf16.msra.mxu1 %v9667_v31 }
 0xac2   :  { %8205 = vmatprep.subr.bf16.mxu1 %v9677_v35 }
 0xac5   :  { %8207 = vmatpush1.bf16.msra.mxu1 %v9680_v5 }
 0xac6   :  { %8209 = vmatprep.subr.bf16.mxu1 %v9687_v27 }
 0xac9   :  { %8211 = vmatpush1.bf16.msra.mxu1 %v9690_v41 }
 0xaca   :  { %8213 = vmatprep.subr.bf16.mxu1 %v9697_v57 }
 0xacd   :  { %8215 = vmatpush1.bf16.msra.mxu1 %v9700_v8 }
 0xace   :  { %8217 = vmatprep.subr.bf16.mxu1 %v9705_v53 }
 0xad1   :  { %8219 = vmatpush1.bf16.msra.mxu1 %v9709_v4 }
 0xad2   :  { %8221 = vmatprep.subr.bf16.mxu1 %v9715_v22 }
 0xad5   :  { %8223 = vmatpush1.bf16.msra.mxu1 %v9719_v44 }
 0xad6   :  { %8225 = vmatprep.subr.bf16.mxu1 %v9725_v26 }
 0xad9   :  { %8227 = vmatpush1.bf16.msra.mxu1 %v9729_v29 }
 0xada   :  { %8252 = vmatprep.subr.bf16.mxu1 %v8919_v32 }
 0xb67   :  { %v3548_v1 = vpop.f32.mrb[38].mxu1  ;;  %v3794_v42 = vpop.f32.mrb[24].mxu0 }
 0xb68   :  { %v3549_v59 = vadd.f32 %v9929_v15, %v3548_v1  ;;  %v8616_v60 = vadd.f32 %v3794_v42, %v9828_v19  ;;  %v7057_v9 = vpop.f32.mrb[39].mxu1  ;;  %v3796_v46 = vpop.f32.mrb[25].mxu0  ;;  %v3725_v42 = vadd.f32 %v3724_v21, %v9843_v54 }
 0xb69   :  { %v8617_v25 = vadd.f32 %v3796_v46, %v9833_v50 }
 0xb6a   :  { %v3559_v3 = vrot.slane %v3549_v59, %v9932_v58  ;;  %v6111_v43 = vmul.f32 -1.442695, %v8616_v60 }
 0xb6b   :  { %v6112_v13 = vmul.f32 -1.442695, %v8617_v25 }
 0xb6c   :  { %v3560_v11 = vcombine.high %v3559_v3, %v3559_v3  ;;  %v3567_v18 = vrot.slane %v3559_v3, %v9932_v58  ;;  %8773 = vpow2.f32 %v6111_v43 }
 0xb6d   :  { %8775 = vpow2.f32 %v6112_v13 }
 0xb6e   :  { %v3574_v28 = vrot.slane %v3560_v11, %v9932_v58  ;;  %3577 = vst.msk [vmem:[%s10521_s12 + $0x1] sm:$0x1] %vm3168_vm4, %v3567_v18 }
 0xb70   :  { %3578 = vst.msk [vmem:[%s10521_s12 + $0x9] sm:$0x1] %vm3168_vm4, %v3574_v28  ;;  %v4396_v28 = vld [vmem:[%s10510_s1 + $0xc] sm:$0x1] }
 0xb71   :  { %v4399_v25 = vrot.slane %v4396_v28, 7 }
 0xb76   :  { %v8774_v34 = vpop.eup %8773 }
 0xb77   :  { %v3873_v62 = vadd.f32 1.0, %v8774_v34  ;;  %v8776_v37 = vpop.eup %8775  ;;  %v4395_v34 = vld [vmem:[%s10510_s1 + $0x4] sm:$0x1] }
 0xb78   :  { %v3880_v60 = vadd.f32 1.0, %v8776_v37  ;;  %v4400_v13 = vsel %vm224_vm2, %v4399_v25, %v4395_v34 }
 0xb79   :  { %8777 = vrcp.f32 %v3873_v62 }
 0xb83   :  { %v8778_v1 = vpop.eup %8777 }
 0xb87   :  { %v3865_v30 = vpop.f32.mrb[40].mxu1 }
 0xb88   :  { %v3883_v2 = vadd.f32 %v9839_v38, %v3865_v30  ;;  %v7097_v16 = vpop.f32.mrb[41].mxu1 }
 0xb8a   :  { %v3884_v59 = vmul.f32 %v8778_v1, %v3883_v2 }
 0xb8c   :  { %v3885_v9 = vadd.f32 %v3884_v59, %v3725_v42 }
 0xb8e   :  { %8779 = vtanh.f32 %v3885_v9 }
 0xb8f   :  { %8781 = vrcp.f32 %v3880_v60 }
 0xb98   :  { %v8780_v3 = vpop.eup %8779 }
 0xb99   :  { %v3887_v46 = vsub.f32 %v9951_v20, %v8780_v3  ;;  %v8782_v43 = vpop.eup %8781  ;;  %v4132_v20 = vpop.f32.mrb[44].mxu1 }
 0xb9a   :  { %v7137_v21 = vpop.f32.mrb[45].mxu1 }
 0xb9b   :  { %v3888_v11 = vmul.f32 %v8782_v43, %v3887_v46 }
 0xb9d   :  { %v10045_v18 = vadd.f32 %v8780_v3, %v3888_v11 }
 0xb9f   :  { %7131 = vmatmul.mubr.f32.vlgmr.msra.gmra.mrb[28].mxu0 %v10045_v18  ;;  %4201 = vmatmul.mubr.f32.vlgmr.msra.gmra.mrb[42].mxu1 %v10045_v18 }
 0xba0   :  { %8230 = vmatpush3.bf16.msra.mxu0 %v9658_v17  ;;  %7170 = vmatprep.mubr.msk.f32.mxu0 %vm8918_vm0, %v8917_v0 }
 0xba1   :  { %8231 = vmatprep.subr.bf16.mxu0 %v8919_v32  ;;  %8254 = vmatpush3.bf16.msra.mxu1 %v9770_v39 }
 0xba2   :  { %8255 = vmatprep.subr.bf16.mxu1 %v8919_v32  ;;  %7205 = vmatprep.mubr.msk.f32.mxu1 %vm8918_vm0, %v8917_v0 }
 0xba4   :  { %8233 = vmatpush3.bf16.msra.mxu0 %v9671_v40 }
 0xba5   :  { %8234 = vmatprep.subr.bf16.mxu0 %v8919_v32  ;;  %8257 = vmatpush3.bf16.msra.mxu1 %v9779_v51 }
 0xba6   :  { %8258 = vmatprep.subr.bf16.mxu1 %v8919_v32 }
 0xba8   :  { %8236 = vmatpush3.bf16.msra.mxu0 %v9683_v14 }
 0xba9   :  { %8237 = vmatprep.subr.bf16.mxu0 %v8919_v32  ;;  %8260 = vmatpush3.bf16.msra.mxu1 %v9786_v6 }
 0xbaa   :  { %8261 = vmatprep.subr.bf16.mxu1 %v8919_v32 }
 0xbac   :  { %8239 = vmatpush3.bf16.msra.mxu0 %v9693_v48 }
 0xbad   :  { %8240 = vmatprep.subr.bf16.mxu0 %v8919_v32  ;;  %8263 = vmatpush3.bf16.msra.mxu1 %v9792_v24 }
 0xbae   :  { %8264 = vmatprep.subr.bf16.mxu1 %v8919_v32 }
 0xbb0   :  { %8242 = vmatpush3.bf16.msra.mxu0 %v9703_v49 }
 0xbb1   :  { %8243 = vmatprep.subr.bf16.mxu0 %v8919_v32  ;;  %8266 = vmatpush3.bf16.msra.mxu1 %v9798_v61 }
 0xbb2   :  { %8267 = vmatprep.subr.bf16.mxu1 %v8919_v32 }
 0xbb4   :  { %8245 = vmatpush3.bf16.msra.mxu0 %v9711_v12 }
 0xbb5   :  { %8246 = vmatprep.subr.bf16.mxu0 %v8919_v32  ;;  %8269 = vmatpush3.bf16.msra.mxu1 %v9802_v7 }
 0xbb6   :  { %8270 = vmatprep.subr.bf16.mxu1 %v8919_v32 }
 0xbb8   :  { %8248 = vmatpush3.bf16.msra.mxu0 %v9721_v45 }
 0xbb9   :  { %8249 = vmatprep.subr.bf16.mxu0 %v8919_v32  ;;  %8272 = vmatpush3.bf16.msra.mxu1 %v9808_v52 }
 0xbba   :  { %8273 = vmatprep.subr.bf16.mxu1 %v8919_v32 }
 0xbbc   :  { %8251 = vmatpush3.bf16.msra.mxu0 %v9731_v36 }
 0xbbd   :  { %6120 = vmatprep.subr.msk.mxu0 %vm232_vm1, %v9632_v47  ;;  %8275 = vmatpush3.bf16.msra.mxu1 %v9814_v33 }
 0xbbe   :  { %8308 = vmatprep.subr.bf16.mxu1 %v8919_v32 }
 0xbbf   :  { %7171 = vmatmul.mubr.f32.vlgmr.msra.gmra.mrb[30].mxu0 %v10045_v18 }
 0xbc0   :  { %6121 = vmatpush1.msk.msra.mxu0 %vm232_vm1, %v9628_v63  ;;  %4467 = vmatprep.mubr.f32.mxu0 %v8917_v0 }
 0xbc1   :  { %7208 = vmatprep.subr.mxu0 %v8917_v0 }
 0xbc3   :  { %6122 = vmatmul.mubr.msk.f32.vlgmr.msra.gmra.mrb[32].mxu0 %vm229_vm3, %v4400_v13 }
 0xbc4   :  { %7209 = vmatpush3.msk.msra.mxu0 %vm232_vm1, %v9642_v55  ;;  %7210 = vmatprep.mubr.msk.f32.mxu0 %vm8918_vm0, %v8917_v0 }
 0xbc5   :  { %8277 = vmatprep.subr.bf16.mxu0 %v9644_v56 }
 0xbc7   :  { %7211 = vmatmul.mubr.msk.f32.vlgmr.msra.gmra.mrb[34].mxu0 %vm229_vm3, %v4400_v13  ;;  %v4133_v13 = vadd.f32 %v4132_v20, %v9843_v54 }
 0xbc8   :  { %8279 = vmatpush1.bf16.msra.mxu0 %v9653_v10  ;;  %4608 = vmatprep.mubr.f32.mxu0 %v8917_v0 }
 0xbc9   :  { %8281 = vmatprep.subr.bf16.mxu0 %v9664_v23 }
 0xbcc   :  { %8283 = vmatpush1.bf16.msra.mxu0 %v9667_v31 }
 0xbcd   :  { %8285 = vmatprep.subr.bf16.mxu0 %v9677_v35 }
 0xbd0   :  { %8287 = vmatpush1.bf16.msra.mxu0 %v9680_v5 }
 0xbd1   :  { %8289 = vmatprep.subr.bf16.mxu0 %v9687_v27 }
 0xbd4   :  { %8291 = vmatpush1.bf16.msra.mxu0 %v9690_v41 }
 0xbd5   :  { %8293 = vmatprep.subr.bf16.mxu0 %v9697_v57 }
 0xbd8   :  { %8295 = vmatpush1.bf16.msra.mxu0 %v9700_v8 }
 0xbd9   :  { %8297 = vmatprep.subr.bf16.mxu0 %v9705_v53 }
 0xbdc   :  { %8299 = vmatpush1.bf16.msra.mxu0 %v9709_v4 }
 0xbdd   :  { %8301 = vmatprep.subr.bf16.mxu0 %v9715_v22 }
 0xbe0   :  { %8303 = vmatpush1.bf16.msra.mxu0 %v9719_v44 }
 0xbe1   :  { %8305 = vmatprep.subr.bf16.mxu0 %v9725_v26 }
 0xbe4   :  { %8307 = vmatpush1.bf16.msra.mxu0 %v9729_v29 }
 0xbe5   :  { %8332 = vmatprep.subr.bf16.mxu0 %v8919_v32 }
 0xc72   :  { %v3956_v63 = vpop.f32.mrb[28].mxu0  ;;  %v4202_v55 = vpop.f32.mrb[42].mxu1 }
 0xc73   :  { %v3957_v62 = vadd.f32 %v9929_v15, %v3956_v63  ;;  %v8618_v30 = vadd.f32 %v4202_v55, %v9828_v19  ;;  %v7132_v37 = vpop.f32.mrb[29].mxu0  ;;  %v4204_v2 = vpop.f32.mrb[43].mxu1 }
 0xc74   :  { %v8619_v9 = vadd.f32 %v4204_v2, %v9833_v50 }
 0xc75   :  { %v3967_v16 = vrot.slane %v3957_v62, %v9932_v58  ;;  %v6118_v1 = vmul.f32 -1.442695, %v8618_v30 }
 0xc76   :  { %v6119_v46 = vmul.f32 -1.442695, %v8619_v9  ;;  %v4803_v9 = vld [vmem:[%s10510_s1 + $0x5] sm:$0x1] }
 0xc77   :  { %v3968_v42 = vcombine.high %v3967_v16, %v3967_v16  ;;  %v3975_v59 = vrot.slane %v3967_v16, %v9932_v58  ;;  %8783 = vpow2.f32 %v6118_v1 }
 0xc78   :  { %8785 = vpow2.f32 %v6119_v46  ;;  %v10201_v46 = vld [vmem:[%s10515_s6 + $0x8] sm:$0xf] }
 0xc79   :  { %v3982_v60 = vrot.slane %v3968_v42, %v9932_v58  ;;  %3985 = vst.msk [vmem:[%s10521_s12 + $0x2] sm:$0x1] %vm3168_vm4, %v3975_v59  ;;  %v4804_v59 = vld [vmem:[%s10510_s1 + $0xd] sm:$0x1] }
 0xc7b   :  { %3986 = vst.msk [vmem:[%s10521_s12 + $0xa] sm:$0x1] %vm3168_vm4, %v3982_v60  ;;  %v4807_v60 = vrot.slane %v4804_v59, 7 }
 0xc81   :  { %v8784_v3 = vpop.eup %8783 }
 0xc82   :  { %v4281_v43 = vadd.f32 1.0, %v8784_v3  ;;  %v8786_v21 = vpop.eup %8785  ;;  %v4808_v3 = vsel %vm224_vm2, %v4807_v60, %v4803_v9 }
 0xc83   :  { %v4288_v55 = vadd.f32 1.0, %v8786_v21 }
 0xc84   :  { %8787 = vrcp.f32 %v4281_v43 }
 0xc8e   :  { %v8788_v34 = vpop.eup %8787 }
 0xc92   :  { %v4273_v11 = vpop.f32.mrb[30].mxu0 }
 0xc93   :  { %v4291_v28 = vadd.f32 %v9839_v38, %v4273_v11  ;;  %v7172_v25 = vpop.f32.mrb[31].mxu0 }
 0xc95   :  { %v4292_v63 = vmul.f32 %v8788_v34, %v4291_v28 }
 0xc97   :  { %v4293_v62 = vadd.f32 %v4292_v63, %v4133_v13 }
 0xc99   :  { %8789 = vtanh.f32 %v4293_v62 }
 0xc9a   :  { %8791 = vrcp.f32 %v4288_v55  ;;  %v4540_v20 = vpop.f32.mrb[34].mxu0 }
 0xc9b   :  { %v7212_v42 = vpop.f32.mrb[35].mxu0 }
 0xca3   :  { %v8790_v30 = vpop.eup %8789 }
 0xca4   :  { %v4295_v37 = vsub.f32 %v10045_v18, %v8790_v30  ;;  %v8792_v2 = vpop.eup %8791  ;;  %v10184_v18 = vld [vmem:[%s10515_s6] sm:$0xff] }
 0xca6   :  { %v4296_v16 = vmul.f32 %v8792_v2, %v4295_v37 }
 0xca8   :  { %v10139_v1 = vadd.f32 %v8790_v30, %v4296_v16 }
 0xcaa   :  { %7206 = vmatmul.mubr.f32.vlgmr.msra.gmra.mrb[46].mxu1 %v10139_v1  ;;  %4609 = vmatmul.mubr.f32.vlgmr.msra.gmra.mrb[32].mxu0 %v10139_v1 }
 0xcab   :  { %8310 = vmatpush3.bf16.msra.mxu1 %v9658_v17  ;;  %7245 = vmatprep.mubr.msk.f32.mxu1 %vm8918_vm0, %v8917_v0 }
 0xcac   :  { %8311 = vmatprep.subr.bf16.mxu1 %v8919_v32  ;;  %8334 = vmatpush3.bf16.msra.mxu0 %v9770_v39 }
 0xcad   :  { %8335 = vmatprep.subr.bf16.mxu0 %v8919_v32  ;;  %7280 = vmatprep.mubr.msk.f32.mxu0 %vm8918_vm0, %v8917_v0 }
 0xcaf   :  { %8313 = vmatpush3.bf16.msra.mxu1 %v9671_v40 }
 0xcb0   :  { %8314 = vmatprep.subr.bf16.mxu1 %v8919_v32  ;;  %8337 = vmatpush3.bf16.msra.mxu0 %v9779_v51 }
 0xcb1   :  { %8338 = vmatprep.subr.bf16.mxu0 %v8919_v32 }
 0xcb3   :  { %8316 = vmatpush3.bf16.msra.mxu1 %v9683_v14 }
 0xcb4   :  { %8317 = vmatprep.subr.bf16.mxu1 %v8919_v32  ;;  %8340 = vmatpush3.bf16.msra.mxu0 %v9786_v6 }
 0xcb5   :  { %8341 = vmatprep.subr.bf16.mxu0 %v8919_v32 }
 0xcb7   :  { %8319 = vmatpush3.bf16.msra.mxu1 %v9693_v48 }
 0xcb8   :  { %8320 = vmatprep.subr.bf16.mxu1 %v8919_v32  ;;  %8343 = vmatpush3.bf16.msra.mxu0 %v9792_v24 }
 0xcb9   :  { %8344 = vmatprep.subr.bf16.mxu0 %v8919_v32 }
 0xcbb   :  { %8322 = vmatpush3.bf16.msra.mxu1 %v9703_v49 }
 0xcbc   :  { %8323 = vmatprep.subr.bf16.mxu1 %v8919_v32  ;;  %8346 = vmatpush3.bf16.msra.mxu0 %v9798_v61 }
 0xcbd   :  { %8347 = vmatprep.subr.bf16.mxu0 %v8919_v32 }
 0xcbf   :  { %8325 = vmatpush3.bf16.msra.mxu1 %v9711_v12 }
 0xcc0   :  { %8326 = vmatprep.subr.bf16.mxu1 %v8919_v32  ;;  %8349 = vmatpush3.bf16.msra.mxu0 %v9802_v7 }
 0xcc1   :  { %8350 = vmatprep.subr.bf16.mxu0 %v8919_v32 }
 0xcc3   :  { %8328 = vmatpush3.bf16.msra.mxu1 %v9721_v45 }
 0xcc4   :  { %8329 = vmatprep.subr.bf16.mxu1 %v8919_v32  ;;  %8352 = vmatpush3.bf16.msra.mxu0 %v9808_v52 }
 0xcc5   :  { %8353 = vmatprep.subr.bf16.mxu0 %v8919_v32 }
 0xcc7   :  { %8331 = vmatpush3.bf16.msra.mxu1 %v9731_v36 }
 0xcc8   :  { %6127 = vmatprep.subr.msk.mxu1 %vm232_vm1, %v9632_v47  ;;  %8355 = vmatpush3.bf16.msra.mxu0 %v9814_v33 }
 0xcc9   :  { %8388 = vmatprep.subr.bf16.mxu0 %v8919_v32 }
 0xcca   :  { %7246 = vmatmul.mubr.f32.vlgmr.msra.gmra.mrb[48].mxu1 %v10139_v1 }
 0xccb   :  { %6128 = vmatpush1.msk.msra.mxu1 %vm232_vm1, %v10184_v18  ;;  %4875 = vmatprep.mubr.f32.mxu1 %v8917_v0 }
 0xccc   :  { %7283 = vmatprep.subr.mxu1 %v8917_v0 }
 0xcce   :  { %6129 = vmatmul.mubr.msk.f32.vlgmr.msra.gmra.mrb[50].mxu1 %vm229_vm3, %v4808_v3 }
 0xccf   :  { %7284 = vmatpush3.msk.msra.mxu1 %vm232_vm1, %v10201_v46  ;;  %7285 = vmatprep.mubr.msk.f32.mxu1 %vm8918_vm0, %v8917_v0 }
 0xcd0   :  { %8357 = vmatprep.subr.bf16.mxu1 %v9644_v56 }
 0xcd2   :  { %7286 = vmatmul.mubr.msk.f32.vlgmr.msra.gmra.mrb[52].mxu1 %vm229_vm3, %v4808_v3 }
 0xcd3   :  { %8359 = vmatpush1.bf16.msra.mxu1 %v9653_v10  ;;  %5016 = vmatprep.mubr.f32.mxu1 %v8917_v0 }
 0xcd4   :  { %8361 = vmatprep.subr.bf16.mxu1 %v9664_v23 }
 0xcd7   :  { %8363 = vmatpush1.bf16.msra.mxu1 %v9667_v31 }
 0xcd8   :  { %8365 = vmatprep.subr.bf16.mxu1 %v9677_v35 }
 0xcdb   :  { %8367 = vmatpush1.bf16.msra.mxu1 %v9680_v5 }
 0xcdc   :  { %8369 = vmatprep.subr.bf16.mxu1 %v9687_v27 }
 0xcdf   :  { %8371 = vmatpush1.bf16.msra.mxu1 %v9690_v41 }
 0xce0   :  { %8373 = vmatprep.subr.bf16.mxu1 %v9697_v57 }
 0xce3   :  { %8375 = vmatpush1.bf16.msra.mxu1 %v9700_v8 }
 0xce4   :  { %8377 = vmatprep.subr.bf16.mxu1 %v9705_v53 }
 0xce7   :  { %8379 = vmatpush1.bf16.msra.mxu1 %v9709_v4 }
 0xce8   :  { %8381 = vmatprep.subr.bf16.mxu1 %v9715_v22 }
 0xceb   :  { %8383 = vmatpush1.bf16.msra.mxu1 %v9719_v44 }
 0xcec   :  { %8385 = vmatprep.subr.bf16.mxu1 %v9725_v26 }
 0xcef   :  { %8387 = vmatpush1.bf16.msra.mxu1 %v9729_v29 }
 0xcf0   :  { %8412 = vmatprep.subr.bf16.mxu1 %v8919_v32 }
 0xd7d   :  { %v4364_v43 = vpop.f32.mrb[46].mxu1  ;;  %v4610_v11 = vpop.f32.mrb[32].mxu0 }
 0xd7e   :  { %v4365_v21 = vadd.f32 %v9929_v15, %v4364_v43  ;;  %v8620_v28 = vadd.f32 %v4610_v11, %v9828_v19  ;;  %v7207_v25 = vpop.f32.mrb[47].mxu1  ;;  %v4612_v34 = vpop.f32.mrb[33].mxu0  ;;  %v4541_v11 = vadd.f32 %v4540_v20, %v9843_v54  ;;  %v5212_v20 = vld [vmem:[%s10510_s1 + $0xe] sm:$0x1] }
 0xd7f   :  { %v8621_v37 = vadd.f32 %v4612_v34, %v9833_v50 }
 0xd80   :  { %v4375_v13 = vrot.slane %v4365_v21, %v9932_v58  ;;  %v6125_v63 = vmul.f32 -1.442695, %v8620_v28 }
 0xd81   :  { %v6126_v16 = vmul.f32 -1.442695, %v8621_v37  ;;  %v5211_v37 = vld [vmem:[%s10510_s1 + $0x6] sm:$0x1] }
 0xd82   :  { %v4376_v55 = vcombine.high %v4375_v13, %v4375_v13  ;;  %v4383_v62 = vrot.slane %v4375_v13, %v9932_v58  ;;  %8793 = vpow2.f32 %v6125_v63 }
 0xd83   :  { %8795 = vpow2.f32 %v6126_v16 }
 0xd84   :  { %v4390_v30 = vrot.slane %v4376_v55, %v9932_v58  ;;  %4393 = vst.msk [vmem:[%s10521_s12 + $0x3] sm:$0x1] %vm3168_vm4, %v4383_v62 }
 0xd86   :  { %4394 = vst.msk [vmem:[%s10521_s12 + $0xb] sm:$0x1] %vm3168_vm4, %v4390_v30  ;;  %v5215_v30 = vrot.slane %v5212_v20, 7  ;;  %v10337_v20 = vld [vmem:[%s10518_s9] ss:$0 sm:$0xff] }
 0xd8c   :  { %v8794_v2 = vpop.eup %8793 }
 0xd8d   :  { %v4689_v42 = vadd.f32 1.0, %v8794_v2  ;;  %v8796_v60 = vpop.eup %8795  ;;  %v5216_v2 = vsel %vm224_vm2, %v5215_v30, %v5211_v37 }
 0xd8e   :  { %v4696_v28 = vadd.f32 1.0, %v8796_v60 }
 0xd8f   :  { %8797 = vrcp.f32 %v4689_v42 }
 0xd99   :  { %v8798_v43 = vpop.eup %8797 }
 0xd9d   :  { %v4681_v59 = vpop.f32.mrb[48].mxu1 }
 0xd9e   :  { %v4699_v9 = vadd.f32 %v9839_v38, %v4681_v59  ;;  %v7247_v3 = vpop.f32.mrb[49].mxu1 }
 0xda0   :  { %v4700_v21 = vmul.f32 %v8798_v43, %v4699_v9 }
 0xda2   :  { %v4701_v25 = vadd.f32 %v4700_v21, %v4541_v11 }
 0xda4   :  { %8799 = vtanh.f32 %v4701_v25 }
 0xda5   :  { %8801 = vrcp.f32 %v4696_v28  ;;  %v4948_v38 = vpop.f32.mrb[52].mxu1 }
 0xdae   :  { %v8800_v13 = vpop.eup %8799 }
 0xdaf   :  { %v4703_v34 = vsub.f32 %v10139_v1, %v8800_v13  ;;  %v8802_v63 = vpop.eup %8801  ;;  %v7287_v1 = vpop.f32.mrb[53].mxu1 }
 0xdb1   :  { %v4704_v55 = vmul.f32 %v8802_v63, %v4703_v34 }
 0xdb3   :  { %v10243_v62 = vadd.f32 %v8800_v13, %v4704_v55 }
 0xdb5   :  { %7281 = vmatmul.mubr.f32.vlgmr.msra.gmra.mrb[36].mxu0 %v10243_v62  ;;  %5017 = vmatmul.mubr.f32.vlgmr.msra.gmra.mrb[50].mxu1 %v10243_v62 }
 0xdb6   :  { %8390 = vmatpush3.bf16.msra.mxu0 %v9658_v17  ;;  %7320 = vmatprep.mubr.msk.f32.mxu0 %vm8918_vm0, %v8917_v0 }
 0xdb7   :  { %8391 = vmatprep.subr.bf16.mxu0 %v8919_v32  ;;  %8414 = vmatpush3.bf16.msra.mxu1 %v9770_v39 }
 0xdb8   :  { %8415 = vmatprep.subr.bf16.mxu1 %v8919_v32  ;;  %7355 = vmatprep.mubr.msk.f32.mxu1 %vm8918_vm0, %v8917_v0 }
 0xdba   :  { %8393 = vmatpush3.bf16.msra.mxu0 %v9671_v40 }
 0xdbb   :  { %8394 = vmatprep.subr.bf16.mxu0 %v8919_v32  ;;  %8417 = vmatpush3.bf16.msra.mxu1 %v9779_v51 }
 0xdbc   :  { %8418 = vmatprep.subr.bf16.mxu1 %v8919_v32 }
 0xdbe   :  { %8396 = vmatpush3.bf16.msra.mxu0 %v9683_v14 }
 0xdbf   :  { %8397 = vmatprep.subr.bf16.mxu0 %v8919_v32  ;;  %8420 = vmatpush3.bf16.msra.mxu1 %v9786_v6 }
 0xdc0   :  { %8421 = vmatprep.subr.bf16.mxu1 %v8919_v32 }
 0xdc2   :  { %8399 = vmatpush3.bf16.msra.mxu0 %v9693_v48 }
 0xdc3   :  { %8400 = vmatprep.subr.bf16.mxu0 %v8919_v32  ;;  %8423 = vmatpush3.bf16.msra.mxu1 %v9792_v24 }
 0xdc4   :  { %8424 = vmatprep.subr.bf16.mxu1 %v8919_v32 }
 0xdc6   :  { %8402 = vmatpush3.bf16.msra.mxu0 %v9703_v49 }
 0xdc7   :  { %8403 = vmatprep.subr.bf16.mxu0 %v8919_v32  ;;  %8426 = vmatpush3.bf16.msra.mxu1 %v9798_v61 }
 0xdc8   :  { %8427 = vmatprep.subr.bf16.mxu1 %v8919_v32 }
 0xdca   :  { %8405 = vmatpush3.bf16.msra.mxu0 %v9711_v12 }
 0xdcb   :  { %8406 = vmatprep.subr.bf16.mxu0 %v8919_v32  ;;  %8429 = vmatpush3.bf16.msra.mxu1 %v9802_v7 }
 0xdcc   :  { %8430 = vmatprep.subr.bf16.mxu1 %v8919_v32 }
 0xdce   :  { %8408 = vmatpush3.bf16.msra.mxu0 %v9721_v45 }
 0xdcf   :  { %8409 = vmatprep.subr.bf16.mxu0 %v8919_v32  ;;  %8432 = vmatpush3.bf16.msra.mxu1 %v9808_v52 }
 0xdd0   :  { %8433 = vmatprep.subr.bf16.mxu1 %v8919_v32 }
 0xdd2   :  { %8411 = vmatpush3.bf16.msra.mxu0 %v9731_v36 }
 0xdd3   :  { %6134 = vmatprep.subr.msk.mxu0 %vm232_vm1, %v9632_v47  ;;  %8435 = vmatpush3.bf16.msra.mxu1 %v9814_v33 }
 0xdd4   :  { %8468 = vmatprep.subr.bf16.mxu1 %v8919_v32 }
 0xdd5   :  { %7321 = vmatmul.mubr.f32.vlgmr.msra.gmra.mrb[38].mxu0 %v10243_v62 }
 0xdd6   :  { %6135 = vmatpush1.msk.msra.mxu0 %vm232_vm1, %v10184_v18  ;;  %5283 = vmatprep.mubr.f32.mxu0 %v8917_v0 }
 0xdd7   :  { %7358 = vmatprep.subr.mxu0 %v8917_v0 }
 0xdd9   :  { %6136 = vmatmul.mubr.msk.f32.vlgmr.msra.gmra.mrb[40].mxu0 %vm229_vm3, %v5216_v2 }
 0xdda   :  { %7359 = vmatpush3.msk.msra.mxu0 %vm232_vm1, %v10201_v46  ;;  %7360 = vmatprep.mubr.msk.f32.mxu0 %vm8918_vm0, %v8917_v0 }
 0xddb   :  { %8437 = vmatprep.subr.bf16.mxu0 %v9644_v56 }
 0xddd   :  { %7361 = vmatmul.mubr.msk.f32.vlgmr.msra.gmra.mrb[42].mxu0 %vm229_vm3, %v5216_v2 }
 0xdde   :  { %8439 = vmatpush1.bf16.msra.mxu0 %v9653_v10  ;;  %5424 = vmatprep.mubr.f32.mxu0 %v8917_v0 }
 0xddf   :  { %8441 = vmatprep.subr.bf16.mxu0 %v9664_v23 }
 0xde2   :  { %8443 = vmatpush1.bf16.msra.mxu0 %v9667_v31 }
 0xde3   :  { %8445 = vmatprep.subr.bf16.mxu0 %v9677_v35 }
 0xde6   :  { %8447 = vmatpush1.bf16.msra.mxu0 %v9680_v5 }
 0xde7   :  { %8449 = vmatprep.subr.bf16.mxu0 %v9687_v27 }
 0xdea   :  { %8451 = vmatpush1.bf16.msra.mxu0 %v9690_v41 }
 0xdeb   :  { %8453 = vmatprep.subr.bf16.mxu0 %v9697_v57 }
 0xdee   :  { %8455 = vmatpush1.bf16.msra.mxu0 %v9700_v8 }
 0xdef   :  { %8457 = vmatprep.subr.bf16.mxu0 %v9705_v53 }
 0xdf2   :  { %8459 = vmatpush1.bf16.msra.mxu0 %v9709_v4 }
 0xdf3   :  { %8461 = vmatprep.subr.bf16.mxu0 %v9715_v22 }
 0xdf6   :  { %8463 = vmatpush1.bf16.msra.mxu0 %v9719_v44 }
 0xdf7   :  { %8465 = vmatprep.subr.bf16.mxu0 %v9725_v26 }
 0xdfa   :  { %8467 = vmatpush1.bf16.msra.mxu0 %v9729_v29 }
 0xdfb   :  { %8492 = vmatprep.subr.bf16.mxu0 %v8919_v32 }
 0xe88   :  { %v4772_v16 = vpop.f32.mrb[36].mxu0  ;;  %v5018_v42 = vpop.f32.mrb[50].mxu1 }
 0xe89   :  { %v4773_v59 = vadd.f32 %v9929_v15, %v4772_v16  ;;  %v8622_v60 = vadd.f32 %v5018_v42, %v9828_v19  ;;  %v7282_v9 = vpop.f32.mrb[37].mxu0  ;;  %v5020_v3 = vpop.f32.mrb[51].mxu1  ;;  %v4949_v16 = vadd.f32 %v4948_v38, %v9843_v54 }
 0xe8a   :  { %v8623_v15 = vadd.f32 %v5020_v3, %v9833_v50 }
 0xe8b   :  { %v4783_v43 = vrot.slane %v4773_v59, %v9932_v58  ;;  %v6132_v11 = vmul.f32 -1.442695, %v8622_v60 }
 0xe8c   :  { %v6133_v34 = vmul.f32 -1.442695, %v8623_v15 }
 0xe8d   :  { %v4784_v21 = vcombine.high %v4783_v43, %v4783_v43  ;;  %v4791_v28 = vrot.slane %v4783_v43, %v9932_v58  ;;  %8803 = vpow2.f32 %v6132_v11 }
 0xe8e   :  { %8805 = vpow2.f32 %v6133_v34 }
 0xe8f   :  { %v4798_v25 = vrot.slane %v4784_v21, %v9932_v58  ;;  %4801 = vst.msk [vmem:[%s10521_s12 + $0x4] sm:$0x1] %vm3168_vm4, %v4791_v28  ;;  %v5620_v28 = vld [vmem:[%s10510_s1 + $0xf] sm:$0x1] }
 0xe91   :  { %4802 = vst.msk [vmem:[%s10521_s12 + $0xc] sm:$0x1] %vm3168_vm4, %v4798_v25  ;;  %v5619_v25 = vld [vmem:[%s10510_s1 + $0x7] sm:$0x1] }
 0xe97   :  { %v8804_v13 = vpop.eup %8803 }
 0xe98   :  { %v5097_v63 = vadd.f32 1.0, %v8804_v13  ;;  %v8806_v1 = vpop.eup %8805 }
 0xe99   :  { %v5104_v59 = vadd.f32 1.0, %v8806_v1 }
 0xe9a   :  { %8807 = vrcp.f32 %v5097_v63 }
 0xea4   :  { %v8808_v2 = vpop.eup %8807 }
 0xea8   :  { %v5089_v55 = vpop.f32.mrb[38].mxu0 }
 0xea9   :  { %v5107_v30 = vadd.f32 %v10337_v20, %v5089_v55  ;;  %v7322_v37 = vpop.f32.mrb[39].mxu0 }
 0xeab   :  { %v5108_v42 = vmul.f32 %v8808_v2, %v5107_v30 }
 0xead   :  { %v5109_v60 = vadd.f32 %v5108_v42, %v4949_v16 }
 0xeaf   :  { %8809 = vtanh.f32 %v5109_v60 }
 0xeb0   :  { %8811 = vrcp.f32 %v5104_v59 }
 0xeb9   :  { %v8810_v9 = vpop.eup %8809 }
 0xeba   :  { %v5111_v3 = vsub.f32 %v10243_v62, %v8810_v9  ;;  %v8812_v43 = vpop.eup %8811  ;;  %v5356_v62 = vpop.f32.mrb[42].mxu0 }
 0xebb   :  { %v7362_v38 = vpop.f32.mrb[43].mxu0  ;;  %v5357_v55 = vadd.f32 %v5356_v62, %v9843_v54 }
 0xebc   :  { %v5112_v11 = vmul.f32 %v8812_v43, %v5111_v3 }
 0xebe   :  { %v10342_v21 = vadd.f32 %v8810_v9, %v5112_v11 }
 0xec0   :  { %7356 = vmatmul.mubr.f32.vlgmr.msra.gmra.mrb[54].mxu1 %v10342_v21  ;;  %5425 = vmatmul.mubr.f32.vlgmr.msra.gmra.mrb[40].mxu0 %v10342_v21 }
 0xec1   :  { %8470 = vmatpush3.bf16.msra.mxu1 %v9658_v17  ;;  %7395 = vmatprep.mubr.msk.f32.mxu1 %vm8918_vm0, %v8917_v0 }
 0xec2   :  { %8471 = vmatprep.subr.bf16.mxu1 %v8919_v32  ;;  %8494 = vmatpush3.bf16.msra.mxu0 %v9770_v39 }
 0xec3   :  { %8495 = vmatprep.subr.bf16.mxu0 %v8919_v32  ;;  %7430 = vmatprep.mubr.msk.f32.mxu0 %vm8918_vm0, %v8917_v0 }
 0xec5   :  { %8473 = vmatpush3.bf16.msra.mxu1 %v9671_v40 }
 0xec6   :  { %8474 = vmatprep.subr.bf16.mxu1 %v8919_v32  ;;  %8497 = vmatpush3.bf16.msra.mxu0 %v9779_v51 }
 0xec7   :  { %8498 = vmatprep.subr.bf16.mxu0 %v8919_v32 }
 0xec9   :  { %8476 = vmatpush3.bf16.msra.mxu1 %v9683_v14 }
 0xeca   :  { %8477 = vmatprep.subr.bf16.mxu1 %v8919_v32  ;;  %8500 = vmatpush3.bf16.msra.mxu0 %v9786_v6 }
 0xecb   :  { %8501 = vmatprep.subr.bf16.mxu0 %v8919_v32 }
 0xecd   :  { %8479 = vmatpush3.bf16.msra.mxu1 %v9693_v48 }
 0xece   :  { %8480 = vmatprep.subr.bf16.mxu1 %v8919_v32  ;;  %8503 = vmatpush3.bf16.msra.mxu0 %v9792_v24 }
 0xecf   :  { %8504 = vmatprep.subr.bf16.mxu0 %v8919_v32 }
 0xed1   :  { %8482 = vmatpush3.bf16.msra.mxu1 %v9703_v49 }
 0xed2   :  { %8483 = vmatprep.subr.bf16.mxu1 %v8919_v32  ;;  %8506 = vmatpush3.bf16.msra.mxu0 %v9798_v61 }
 0xed3   :  { %8507 = vmatprep.subr.bf16.mxu0 %v8919_v32 }
 0xed5   :  { %8485 = vmatpush3.bf16.msra.mxu1 %v9711_v12 }
 0xed6   :  { %8486 = vmatprep.subr.bf16.mxu1 %v8919_v32  ;;  %8509 = vmatpush3.bf16.msra.mxu0 %v9802_v7 }
 0xed7   :  { %8510 = vmatprep.subr.bf16.mxu0 %v8919_v32 }
 0xed9   :  { %8488 = vmatpush3.bf16.msra.mxu1 %v9721_v45 }
 0xeda   :  { %8489 = vmatprep.subr.bf16.mxu1 %v8919_v32  ;;  %8512 = vmatpush3.bf16.msra.mxu0 %v9808_v52 }
 0xedb   :  { %8513 = vmatprep.subr.bf16.mxu0 %v8919_v32 }
 0xedd   :  { %8491 = vmatpush3.bf16.msra.mxu1 %v9731_v36 }
 0xede   :  { %6141 = vmatprep.subr.msk.mxu1 %vm232_vm1, %v9632_v47  ;;  %8515 = vmatpush3.bf16.msra.mxu0 %v9814_v33  ;;  %v5623_v47 = vrot.slane %v5620_v28, 7 }
 0xedf   :  { %8548 = vmatprep.subr.bf16.mxu0 %v8919_v32 }
 0xee0   :  { %7396 = vmatmul.mubr.f32.vlgmr.msra.gmra.mrb[56].mxu1 %v10342_v21  ;;  %v5624_v15 = vsel %vm224_vm2, %v5623_v47, %v5619_v25 }
 0xee1   :  { %6142 = vmatpush1.msk.msra.mxu1 %vm232_vm1, %v10184_v18  ;;  %5691 = vmatprep.mubr.f32.mxu1 %v8917_v0 }
 0xee2   :  { %7433 = vmatprep.subr.mxu1 %v8917_v0 }
 0xee4   :  { %6143 = vmatmul.mubr.msk.f32.vlgmr.msra.gmra.mrb[58].mxu1 %vm229_vm3, %v5624_v15 }
 0xee5   :  { %7434 = vmatpush3.msk.msra.mxu1 %vm232_vm1, %v10201_v46  ;;  %7435 = vmatprep.mubr.msk.f32.mxu1 %vm8918_vm0, %v8917_v0 }
 0xee6   :  { %8517 = vmatprep.subr.bf16.mxu1 %v9644_v56 }
 0xee8   :  { %7436 = vmatmul.mubr.msk.f32.vlgmr.msra.gmra.mrb[60].mxu1 %vm229_vm3, %v5624_v15 }
 0xee9   :  { %8519 = vmatpush1.bf16.msra.mxu1 %v9653_v10  ;;  %5832 = vmatprep.mubr.f32.mxu1 %v8917_v0 }
 0xeea   :  { %8521 = vmatprep.subr.bf16.mxu1 %v9664_v23  ;;  %v10422_v23 = vld [vmem:[%s10520_s11] ss:$0 sm:$0xff] }
 0xeed   :  { %8523 = vmatpush1.bf16.msra.mxu1 %v9667_v31 }
 0xeee   :  { %8525 = vmatprep.subr.bf16.mxu1 %v9677_v35 }
 0xef1   :  { %8527 = vmatpush1.bf16.msra.mxu1 %v9680_v5 }
 0xef2   :  { %8529 = vmatprep.subr.bf16.mxu1 %v9687_v27 }
 0xef5   :  { %8531 = vmatpush1.bf16.msra.mxu1 %v9690_v41 }
 0xef6   :  { %8533 = vmatprep.subr.bf16.mxu1 %v9697_v57 }
 0xef9   :  { %8535 = vmatpush1.bf16.msra.mxu1 %v9700_v8 }
 0xefa   :  { %8537 = vmatprep.subr.bf16.mxu1 %v9705_v53 }
 0xefd   :  { %8539 = vmatpush1.bf16.msra.mxu1 %v9709_v4 }
 0xefe   :  { %8541 = vmatprep.subr.bf16.mxu1 %v9715_v22 }
 0xf01   :  { %8543 = vmatpush1.bf16.msra.mxu1 %v9719_v44 }
 0xf02   :  { %8545 = vmatprep.subr.bf16.mxu1 %v9725_v26 }
 0xf05   :  { %8547 = vmatpush1.bf16.msra.mxu1 %v9729_v29 }
 0xf06   :  { %8572 = vmatprep.subr.bf16.mxu1 %v8919_v32 }
 0xf93   :  { %v5180_v56 = vpop.f32.mrb[54].mxu1  ;;  %v5426_v10 = vpop.f32.mrb[40].mxu0 }
 0xf94   :  { %v5181_v31 = vadd.f32 %v10422_v23, %v5180_v56  ;;  %v8624_v35 = vadd.f32 %v5426_v10, %v9828_v19  ;;  %v7357_v5 = vpop.f32.mrb[55].mxu1  ;;  %v5428_v27 = vpop.f32.mrb[41].mxu0 }
 0xf95   :  { %v8625_v22 = vadd.f32 %v5428_v27, %v9833_v50 }
 0xf96   :  { %v5191_v41 = vrot.slane %v5181_v31, %v9932_v58  ;;  %v6139_v57 = vmul.f32 -1.442695, %v8624_v35 }
 0xf97   :  { %v6140_v26 = vmul.f32 -1.442695, %v8625_v22 }
 0xf98   :  { %v5192_v8 = vcombine.high %v5191_v41, %v5191_v41  ;;  %v5199_v53 = vrot.slane %v5191_v41, %v9932_v58  ;;  %8813 = vpow2.f32 %v6139_v57 }
 0xf99   :  { %8815 = vpow2.f32 %v6140_v26 }
 0xf9a   :  { %v5206_v4 = vrot.slane %v5192_v8, %v9932_v58  ;;  %5209 = vst.msk [vmem:[%s10521_s12 + $0x5] sm:$0x1] %vm3168_vm4, %v5199_v53 }
 0xf9c   :  { %5210 = vst.msk [vmem:[%s10521_s12 + $0xd] sm:$0x1] %vm3168_vm4, %v5206_v4 }
 0xfa2   :  { %v8814_v44 = vpop.eup %8813 }
 0xfa3   :  { %v5505_v29 = vadd.f32 1.0, %v8814_v44  ;;  %v8816_v46 = vpop.eup %8815 }
 0xfa4   :  { %v5512_v30 = vadd.f32 1.0, %v8816_v46 }
 0xfa5   :  { %8817 = vrcp.f32 %v5505_v29 }
 0xfaf   :  { %v8818_v63 = vpop.eup %8817 }
 0xfb3   :  { %v5497_v18 = vpop.f32.mrb[56].mxu1 }
 0xfb4   :  { %v5515_v13 = vadd.f32 %v10337_v20, %v5497_v18  ;;  %v7397_v34 = vpop.f32.mrb[57].mxu1 }
 0xfb6   :  { %v5516_v1 = vmul.f32 %v8818_v63, %v5515_v13 }
 0xfb8   :  { %v5517_v37 = vadd.f32 %v5516_v1, %v5357_v55 }
 0xfba   :  { %8819 = vtanh.f32 %v5517_v37 }
 0xfbb   :  { %8821 = vrcp.f32 %v5512_v30 }
 0xfc4   :  { %v8820_v2 = vpop.eup %8819 }
 0xfc5   :  { %v5519_v16 = vsub.f32 %v10342_v21, %v8820_v2  ;;  %v8822_v42 = vpop.eup %8821 }
 0xfc7   :  { %v5520_v59 = vmul.f32 %v8822_v42, %v5519_v16 }
 0xfc9   :  { %v10441_v60 = vadd.f32 %v8820_v2, %v5520_v59 }
 0xfcb   :  { %7431 = vmatmul.mubr.f32.vlgmr.msra.gmra.mrb[44].mxu0 %v10441_v60  ;;  %5833 = vmatmul.mubr.f32.vlgmr.msra.gmra.mrb[58].mxu1 %v10441_v60 }
 0xfcc   :  { %8550 = vmatpush3.bf16.msra.mxu0 %v9658_v17  ;;  %7470 = vmatprep.mubr.msk.f32.mxu0 %vm8918_vm0, %v8917_v0 }
 0xfcd   :  { %8551 = vmatprep.subr.bf16.mxu0 %v8919_v32  ;;  %8574 = vmatpush3.bf16.msra.mxu1 %v9770_v39 }
 0xfce   :  { %8575 = vmatprep.subr.bf16.mxu1 %v8919_v32  ;;  %7505 = vmatprep.mubr.msk.f32.mxu1 %vm8918_vm0, %v8917_v0  ;;  %v5764_v0 = vpop.f32.mrb[60].mxu1 }
 0xfcf   :  { %v7437_v17 = vpop.f32.mrb[61].mxu1  ;;  %v5765_v11 = vadd.f32 %v5764_v0, %v9843_v54 }
 0xfd0   :  { %8553 = vmatpush3.bf16.msra.mxu0 %v9671_v40 }
 0xfd1   :  { %8554 = vmatprep.subr.bf16.mxu0 %v8919_v32  ;;  %8577 = vmatpush3.bf16.msra.mxu1 %v9779_v51 }
 0xfd2   :  { %8578 = vmatprep.subr.bf16.mxu1 %v8919_v32 }
 0xfd4   :  { %8556 = vmatpush3.bf16.msra.mxu0 %v9683_v14 }
 0xfd5   :  { %8557 = vmatprep.subr.bf16.mxu0 %v8919_v32  ;;  %8580 = vmatpush3.bf16.msra.mxu1 %v9786_v6 }
 0xfd6   :  { %8581 = vmatprep.subr.bf16.mxu1 %v8919_v32 }
 0xfd8   :  { %8559 = vmatpush3.bf16.msra.mxu0 %v9693_v48 }
 0xfd9   :  { %8560 = vmatprep.subr.bf16.mxu0 %v8919_v32  ;;  %8583 = vmatpush3.bf16.msra.mxu1 %v9792_v24 }
 0xfda   :  { %8584 = vmatprep.subr.bf16.mxu1 %v8919_v32 }
 0xfdc   :  { %8562 = vmatpush3.bf16.msra.mxu0 %v9703_v49 }
 0xfdd   :  { %8563 = vmatprep.subr.bf16.mxu0 %v8919_v32  ;;  %8586 = vmatpush3.bf16.msra.mxu1 %v9798_v61 }
 0xfde   :  { %8587 = vmatprep.subr.bf16.mxu1 %v8919_v32 }
 0xfe0   :  { %8565 = vmatpush3.bf16.msra.mxu0 %v9711_v12 }
 0xfe1   :  { %8566 = vmatprep.subr.bf16.mxu0 %v8919_v32  ;;  %8589 = vmatpush3.bf16.msra.mxu1 %v9802_v7 }
 0xfe2   :  { %8590 = vmatprep.subr.bf16.mxu1 %v8919_v32 }
 0xfe4   :  { %8568 = vmatpush3.bf16.msra.mxu0 %v9721_v45 }
 0xfe5   :  { %8569 = vmatprep.subr.bf16.mxu0 %v8919_v32  ;;  %8592 = vmatpush3.bf16.msra.mxu1 %v9808_v52 }
 0xfe6   :  { %8593 = vmatprep.subr.bf16.mxu1 %v8919_v32 }
 0xfe8   :  { %8571 = vmatpush3.bf16.msra.mxu0 %v9731_v36 }
 0xfe9   :  { %8595 = vmatpush3.bf16.msra.mxu1 %v9814_v33 }
 0xfeb   :  { %7471 = vmatmul.mubr.f32.vlgmr.msra.gmra.mrb[46].mxu0 %v10441_v60 }
0x109e   :  { %v5588_v40 = vpop.f32.mrb[44].mxu0  ;;  %v5834_v14 = vpop.f32.mrb[58].mxu1 }
0x109f   :  { %v5589_v48 = vadd.f32 %v10422_v23, %v5588_v40  ;;  %v8626_v49 = vadd.f32 %v5834_v14, %v9828_v19  ;;  %v7432_v12 = vpop.f32.mrb[45].mxu0  ;;  %v5836_v45 = vpop.f32.mrb[59].mxu1 }
0x10a0   :  { %v8627_v24 = vadd.f32 %v5836_v45, %v9833_v50 }
0x10a1   :  { %v5599_v39 = vrot.slane %v5589_v48, %v9932_v58  ;;  %v6146_v51 = vmul.f32 -1.442695, %v8626_v49 }
0x10a2   :  { %v6147_v7 = vmul.f32 -1.442695, %v8627_v24 }
0x10a3   :  { %v5600_v32 = vcombine.high %v5599_v39, %v5599_v39  ;;  %v5607_v36 = vrot.slane %v5599_v39, %v9932_v58  ;;  %8823 = vpow2.f32 %v6146_v51 }
0x10a4   :  { %8825 = vpow2.f32 %v6147_v7 }
0x10a5   :  { %v5614_v6 = vrot.slane %v5600_v32, %v9932_v58  ;;  %5617 = vst.msk [vmem:[%s10521_s12 + $0x6] sm:$0x1] %vm3168_vm4, %v5607_v36 }
0x10a7   :  { %5618 = vst.msk [vmem:[%s10521_s12 + $0xe] sm:$0x1] %vm3168_vm4, %v5614_v6 }
0x10ad   :  { %v8824_v61 = vpop.eup %8823 }
0x10ae   :  { %v5913_v52 = vadd.f32 1.0, %v8824_v61  ;;  %v8826_v19 = vpop.eup %8825 }
0x10af   :  { %v5920_v62 = vadd.f32 1.0, %v8826_v19 }
0x10b0   :  { %8827 = vrcp.f32 %v5913_v52 }
0x10ba   :  { %v8828_v43 = vpop.eup %8827 }
0x10be   :  { %v5905_v33 = vpop.f32.mrb[46].mxu0 }
0x10bf   :  { %v5923_v9 = vadd.f32 %v10337_v20, %v5905_v33  ;;  %v7472_v3 = vpop.f32.mrb[47].mxu0 }
0x10c1   :  { %v5924_v21 = vmul.f32 %v8828_v43, %v5923_v9 }
0x10c3   :  { %v5925_v38 = vadd.f32 %v5924_v21, %v5765_v11 }
0x10c5   :  { %8829 = vtanh.f32 %v5925_v38 }
0x10c6   :  { %8831 = vrcp.f32 %v5920_v62 }
0x10cf   :  { %v8830_v28 = vpop.eup %8829 }
0x10d0   :  { %v5927_v50 = vsub.f32 %v10441_v60, %v8830_v28  ;;  %v8832_v47 = vpop.eup %8831 }
0x10d2   :  { %v5928_v25 = vmul.f32 %v8832_v47, %v5927_v50 }
0x10d4   :  { %v5929_v15 = vadd.f32 %v8830_v28, %v5928_v25 }
0x10d6   :  { %7506 = vmatmul.mubr.f32.vlgmr.msra.gmra.mrb[62].mxu1 %v5929_v15 }
0x11a9   :  { %v5996_v56 = vpop.f32.mrb[62].mxu1 }
0x11aa   :  { %v5997_v10 = vadd.f32 %v10422_v23, %v5996_v56  ;;  %v7507_v20 = vpop.f32.mrb[63].mxu1 }
0x11ac   :  { %v6007_v31 = vrot.slane %v5997_v10, %v9932_v58 }
0x11ae   :  { %v6008_v35 = vcombine.high %v6007_v31, %v6007_v31  ;;  %v6015_v54 = vrot.slane %v6007_v31, %v9932_v58 }
0x11b0   :  { %v6022_v5 = vrot.slane %v6008_v35, %v9932_v58  ;;  %6025 = vst.msk [vmem:[%s10521_s12 + $0x7] sm:$0x1] %vm3168_vm4, %v6015_v54 }
0x11b2   :  { %6026 = vst.msk [vmem:[%s10521_s12 + $0xf] sm:$0x1] %vm3168_vm4, %v6022_v5 }
0x11b3   :  { %6031 = vsyncpa [#allocation3], 1 }
0x11b4   :  { %6032 = vsyncpa [#allocation5], 1 }

</bundles_post_ra>
